<compile_context>
chip_gen: v5e
topology: v5e:2x2
jax: 0.10.0
libtpu: 0.0.40
codegen_flags: <defaults>
</compile_context>

<pallas_src>
import jax
import jax.numpy as jnp
from jax.experimental import pallas as pl
from jax.experimental.pallas import tpu as pltpu

NUM_FEATURES = 4      # len(config.FEATURES); consistent with Linear(20, 8) after cat(4 + 16)
SLOPE = 0.01          # nn.LeakyReLU default negative_slope
NCLS = 1000           # logical classifier width
NCLS_PAD = 1024       # lane-dense padded classifier width
BM = 8                # batch tile (sublane height)
HW_TILE_CAP = 16384   # max spatial lanes per grid step (3*8*16384*4B = 1.5 MiB / buffer)


def _leaky(x):
    return jnp.where(x >= 0, x, SLOPE * x)


def _vpu_linear(h, w, acc):
    """acc + h @ w as K broadcast multiply-adds on the VPU (for tiny K/N)."""
    for k in range(w.shape[0]):               # static unroll, K is small
        acc = acc + h[:, k:k + 1] * w[k:k + 1, :]
    return acc


# ---------------------------------------------------------------------------
# Fused kernel: tiled pool -> classifier proxy -> resnet_linear -> fc3 -> fc4
#               -> cat(features, .) -> fc5 -> fc6   (all LeakyReLUs included).
# ---------------------------------------------------------------------------
def make_fused_kernel(num_channels, hw_true):
    inv_hw = 1.0 / float(hw_true)

    def fused_kernel(x_ref, feat_ref,
                     wcls_ref, bcls_ref, wr_ref, br_ref,
                     w3_ref, b3_ref, w4_ref, b4_ref,
                     w5f_ref, w5i_ref, b5_ref, w6_ref, b6_ref,
                     o_ref, pool_acc):
        j = pl.program_id(1)

        # ---- AdaptiveAvgPool2d((1,1)) accumulated across HW tiles (P3 pattern)
        @pl.when(j == 0)
        def _():
            pool_acc[...] = jnp.zeros_like(pool_acc)

        x = x_ref[...].astype(jnp.float32)                        # (C, BM, HW_TILE)
        pool_acc[...] += jnp.sum(x, axis=-1, keepdims=True)       # lane reduction

        # ---- regression head only on the final HW tile
        @pl.when(j == pl.num_programs(1) - 1)
        def _():
            pooled = pool_acc[...] * inv_hw                       # (C, BM, 1); zero pad lanes contributed 0

            # backbone-classifier proxy: Linear(C, 1000 padded to 1024) via VPU MACs (K=3)
            wcls = wcls_ref[...]                                  # (C, 1024)
            logits = bcls_ref[...]                                # (1, 1024) broadcasts over batch
            for c in range(num_channels):
                logits = logits + pooled[c] * wcls[c:c + 1, :]    # (BM,1)*(1,1024) -> (BM,1024)

            # resnet_linear: 1024(pad of 1000) -> 512, LeakyReLU (bf16 MXU, f32 acc)
            h = jnp.dot(logits.astype(jnp.bfloat16), wr_ref[...],
                        preferred_element_type=jnp.float32) + br_ref[...]
            h = _leaky(h)

            # fc_regression3: 512 -> 64, LeakyReLU
            h = jnp.dot(h, w3_ref[...], preferred_element_type=jnp.float32) + b3_ref[...]
            h = _leaky(h)

            # fc_regression4: 64 -> 16 (no activation before concat, per the module)
            h = jnp.dot(h, w4_ref[...], preferred_element_type=jnp.float32) + b4_ref[...]

            # torch.cat((features, img_feat), 1) + fc_regression5 (20 -> 8) as split VPU MACs
            feat = feat_ref[...].astype(jnp.float32)              # (BM, 4)
            out5 = _vpu_linear(feat, w5f_ref[...], b5_ref[...])   # features rows (K=4)
            out5 = _vpu_linear(h, w5i_ref[...], out5)             # image-feature rows (K=16)
            out5 = _leaky(out5)

            # fc_regression6: 8 -> NUM_FEATURES, LeakyReLU
            out6 = _vpu_linear(out5, w6_ref[...], b6_ref[...])
            o_ref[...] = _leaky(out6)

    return fused_kernel


# ---------------------------------------------------------------------------
# Wrapper
# ---------------------------------------------------------------------------
def lettuce_net_eff_direct_forward(images, targets, features, params):
    # `targets` kept for signature parity with the PyTorch forward; unused.
    del targets
    B, C, H, W = images.shape
    HW = H * W
    B_pad = max(BM, ((B + BM - 1) // BM) * BM)

    # Lane-dense spatial padding + HW tiling (zero pad -> sum unaffected, divide by true HW).
    HW_pad = ((HW + 127) // 128) * 128
    HW_TILE = min(HW_pad, HW_TILE_CAP)
    HW_pad = ((HW_pad + HW_TILE - 1) // HW_TILE) * HW_TILE
    n_hw = HW_pad // HW_TILE

    # NCHW -> (C, B_pad, HW_pad): batch on sublanes, spatial on lanes. Keep native dtype
    # (cast happens inside the kernel -> minimal HBM->VMEM DMA bytes).
    x = images.reshape(B, C, HW).transpose(1, 0, 2)
    x = jnp.pad(x, ((0, 0), (0, B_pad - B), (0, HW_pad - HW)))
    feats = jnp.pad(features.astype(jnp.float32), ((0, B_pad - B), (0, 0)))

    args = (x, feats,
            params["Wcls"], params["bcls"], params["Wr"], params["br"],
            params["W3"], params["b3"], params["W4"], params["b4"],
            params["W5f"], params["W5i"], params["b5"], params["W6"], params["b6"])

    grid = (B_pad // BM, n_hw)
    in_specs = [
        pl.BlockSpec((C, BM, HW_TILE), lambda i, j: (0, i, j)),          # x (streamed over HW)
        pl.BlockSpec((BM, NUM_FEATURES), lambda i, j: (i, 0)),           # features
        pl.BlockSpec((C, NCLS_PAD), lambda i, j: (0, 0)),                # Wcls (padded)
        pl.BlockSpec((1, NCLS_PAD), lambda i, j: (0, 0)),                # bcls (padded)
        pl.BlockSpec((NCLS_PAD, 512), lambda i, j: (0, 0)),              # Wr   (bf16, padded)
        pl.BlockSpec((1, 512), lambda i, j: (0, 0)),                     # br
        pl.BlockSpec((512, 64), lambda i, j: (0, 0)),                    # W3
        pl.BlockSpec((1, 64), lambda i, j: (0, 0)),                      # b3
        pl.BlockSpec((64, 16), lambda i, j: (0, 0)),                     # W4
        pl.BlockSpec((1, 16), lambda i, j: (0, 0)),                      # b4
        pl.BlockSpec((NUM_FEATURES, 8), lambda i, j: (0, 0)),            # W5 (features rows)
        pl.BlockSpec((16, 8), lambda i, j: (0, 0)),                      # W5 (img rows)
        pl.BlockSpec((1, 8), lambda i, j: (0, 0)),                       # b5
        pl.BlockSpec((8, NUM_FEATURES), lambda i, j: (0, 0)),            # W6
        pl.BlockSpec((1, NUM_FEATURES), lambda i, j: (0, 0)),            # b6
    ]
    out_specs = pl.BlockSpec((BM, NUM_FEATURES), lambda i, j: (i, 0))    # resident across HW axis

    out = pl.pallas_call(
        make_fused_kernel(C, HW),
        out_shape=jax.ShapeDtypeStruct((B_pad, NUM_FEATURES), jnp.float32),
        grid_spec=pltpu.PrefetchScalarGridSpec(
            num_scalar_prefetch=0,
            grid=grid,
            in_specs=in_specs,
            out_specs=out_specs,
            scratch_shapes=[pltpu.VMEM((C, BM, 1), jnp.float32)],        # pooled-sum accumulator
        ),
        compiler_params=pltpu.CompilerParams(
            dimension_semantics=("parallel", "arbitrary"),  # batch tiles -> 2 TCs; HW is a reduction
        ),
    )(*args)
    return out[:B]


# ---------------------------------------------------------------------------
# Parameter init (PyTorch nn.Linear-style uniform bounds) + TPU-layout prep.
# Weights stored transposed, i.e. (fan_in, fan_out), for y = x @ W + b.
# ---------------------------------------------------------------------------
def init_linear(key, fan_in, fan_out):
    kw, kb = jax.random.split(key)
    bound = 1.0 / float(fan_in) ** 0.5
    w = jax.random.uniform(kw, (fan_in, fan_out), jnp.float32, -bound, bound)
    b = jax.random.uniform(kb, (1, fan_out), jnp.float32, -bound, bound)
    return w, b


def prepare_params(raw):
    """Zero-pad the 1000-wide axis to 1024 and cast Wr to bf16 for the MXU."""
    pad = NCLS_PAD - NCLS
    Wcls = jnp.pad(raw["Wcls"], ((0, 0), (0, pad)))                   # (C, 1024), extra cols = 0
    bcls = jnp.pad(raw["bcls"], ((0, 0), (0, pad)))                   # (1, 1024)
    Wr = jnp.pad(raw["Wr"], ((0, pad), (0, 0))).astype(jnp.bfloat16)  # (1024, 512), extra rows = 0
    return dict(
        Wcls=Wcls, bcls=bcls, Wr=Wr, br=raw["br"],
        W3=raw["W3"], b3=raw["b3"], W4=raw["W4"], b4=raw["b4"],
        W5f=raw["W5"][:NUM_FEATURES], W5i=raw["W5"][NUM_FEATURES:], b5=raw["b5"],
        W6=raw["W6"], b6=raw["b6"],
    )


if __name__ == "__main__":
    root = jax.random.PRNGKey(0)
    keys = jax.random.split(root, 10)

    B, C, H, W = 2, 3, 16, 16
    images = jax.random.normal(keys[0], (B, C, H, W), jnp.float32)        # NCHW, like PyTorch
    targets = jax.random.normal(keys[1], (B, NUM_FEATURES), jnp.float32)  # unused by forward
    features = jax.random.normal(keys[2], (B, NUM_FEATURES), jnp.float32)

    # Backbone-tail proxy classifier (stand-in for EfficientNet-b3 _fc: 1536 -> 1000).
    Wcls, bcls = init_linear(keys[3], C, NCLS)
    # Head linears actually used by forward().
    Wr, br = init_linear(keys[4], NCLS, 512)        # resnet_linear
    W3, b3 = init_linear(keys[5], 512, 64)          # fc_regression3
    W4, b4 = init_linear(keys[6], 64, 16)           # fc_regression4
    W5, b5 = init_linear(keys[7], 20, 8)            # fc_regression5 ([features(4) | img(16)])
    W6, b6 = init_linear(keys[8], 8, NUM_FEATURES)  # fc_regression6

    params = prepare_params(dict(
        Wcls=Wcls, bcls=bcls, Wr=Wr, br=br, W3=W3, b3=b3,
        W4=W4, b4=b4, W5=W5, b5=b5, W6=W6, b6=b6))

    out = lettuce_net_eff_direct_forward(images, targets, features, params)
    out = jax.block_until_ready(out)
    assert out.shape == (B, NUM_FEATURES) and out.dtype == jnp.float32
    print("KERNEL_OK")
</pallas_src>

<mosaic_0001>
module attributes {stable_mosaic.version = 11 : i64} {
  func.func @fused_kernel(%arg0: i32, %arg1: i32, %arg2: memref<3x8x256xf32, #tpu.memory_space<vmem>>, %arg3: memref<8x4xf32, #tpu.memory_space<vmem>>, %arg4: memref<3x1024xf32, #tpu.memory_space<vmem>>, %arg5: memref<1x1024xf32, #tpu.memory_space<vmem>>, %arg6: memref<1024x512xbf16, #tpu.memory_space<vmem>>, %arg7: memref<1x512xf32, #tpu.memory_space<vmem>>, %arg8: memref<512x64xf32, #tpu.memory_space<vmem>>, %arg9: memref<1x64xf32, #tpu.memory_space<vmem>>, %arg10: memref<64x16xf32, #tpu.memory_space<vmem>>, %arg11: memref<1x16xf32, #tpu.memory_space<vmem>>, %arg12: memref<4x8xf32, #tpu.memory_space<vmem>>, %arg13: memref<16x8xf32, #tpu.memory_space<vmem>>, %arg14: memref<1x8xf32, #tpu.memory_space<vmem>>, %arg15: memref<8x4xf32, #tpu.memory_space<vmem>>, %arg16: memref<1x4xf32, #tpu.memory_space<vmem>>, %arg17: memref<8x4xf32, #tpu.memory_space<vmem>>, %arg18: memref<3x8x1xf32, #tpu.memory_space<vmem>>) attributes {dimension_semantics = [#tpu.dimension_semantics<parallel>, #tpu.dimension_semantics<arbitrary>], iteration_bounds = array<i64: 1, 1>, scalar_prefetch = 0 : i64, scratch_operands = 1 : i64, tpu.core_type = #tpu.core_type<tc>, window_params = [{transform_indices = @transform_0, window_bounds = array<i64: 3, 8, 256>}, {transform_indices = @transform_1, window_bounds = array<i64: 8, 4>}, {pipeline_mode = #tpu.pipeline_mode<synchronous>, transform_indices = @transform_2, window_bounds = array<i64: 3, 1024>}, {pipeline_mode = #tpu.pipeline_mode<synchronous>, transform_indices = @transform_3, window_bounds = array<i64: 1, 1024>}, {pipeline_mode = #tpu.pipeline_mode<synchronous>, transform_indices = @transform_4, window_bounds = array<i64: 1024, 512>}, {pipeline_mode = #tpu.pipeline_mode<synchronous>, transform_indices = @transform_5, window_bounds = array<i64: 1, 512>}, {pipeline_mode = #tpu.pipeline_mode<synchronous>, transform_indices = @transform_6, window_bounds = array<i64: 512, 64>}, {pipeline_mode = #tpu.pipeline_mode<synchronous>, transform_indices = @transform_7, window_bounds = array<i64: 1, 64>}, {pipeline_mode = #tpu.pipeline_mode<synchronous>, transform_indices = @transform_8, window_bounds = array<i64: 64, 16>}, {pipeline_mode = #tpu.pipeline_mode<synchronous>, transform_indices = @transform_9, window_bounds = array<i64: 1, 16>}, {pipeline_mode = #tpu.pipeline_mode<synchronous>, transform_indices = @transform_10, window_bounds = array<i64: 4, 8>}, {pipeline_mode = #tpu.pipeline_mode<synchronous>, transform_indices = @transform_11, window_bounds = array<i64: 16, 8>}, {pipeline_mode = #tpu.pipeline_mode<synchronous>, transform_indices = @transform_12, window_bounds = array<i64: 1, 8>}, {pipeline_mode = #tpu.pipeline_mode<synchronous>, transform_indices = @transform_13, window_bounds = array<i64: 8, 4>}, {pipeline_mode = #tpu.pipeline_mode<synchronous>, transform_indices = @transform_14, window_bounds = array<i64: 1, 4>}, {transform_indices = @transform_15, window_bounds = array<i64: 8, 4>}]} {
    %c0_i32 = arith.constant 0 : i32
    %0 = arith.cmpi eq, %arg1, %c0_i32 : i32
    %1 = arith.extui %0 : i1 to i32
    %c0_i32_0 = arith.constant 0 : i32
    %2 = arith.cmpi ne, %1, %c0_i32_0 : i32
    scf.if %2 {
      %cst_11 = arith.constant 0.000000e+00 : f32
      %12 = vector.broadcast %cst_11 : f32 to vector<3x8x1xf32>
      %c0_12 = arith.constant 0 : index
      %c0_13 = arith.constant 0 : index
      %c0_14 = arith.constant 0 : index
      %13 = vector.load %arg18[%c0_12, %c0_13, %c0_14] : memref<3x8x1xf32, #tpu.memory_space<vmem>>, vector<3x8x1xf32>
      tpu.vector_store %arg18[%c0_12, %c0_13, %c0_14], %12 {strides = array<i32>} : memref<3x8x1xf32, #tpu.memory_space<vmem>>, vector<3x8x1xf32>,
    } else {
    }
    %c0 = arith.constant 0 : index
    %c0_1 = arith.constant 0 : index
    %c0_2 = arith.constant 0 : index
    %3 = vector.load %arg2[%c0, %c0_1, %c0_2] : memref<3x8x256xf32, #tpu.memory_space<vmem>>, vector<3x8x256xf32>
    %c0_3 = arith.constant 0 : index
    %c0_4 = arith.constant 0 : index
    %c0_5 = arith.constant 0 : index
    %4 = vector.load %arg18[%c0_3, %c0_4, %c0_5] : memref<3x8x1xf32, #tpu.memory_space<vmem>>, vector<3x8x1xf32>
    %cst = arith.constant dense<0.000000e+00> : vector<3x8xf32>
    %5 = vector.multi_reduction <add>, %3, %cst [2] : vector<3x8x256xf32> to vector<3x8xf32>
    %6 = vector.shape_cast %5 : vector<3x8xf32> to vector<3x8x1xf32>
    %7 = arith.addf %4, %6 : vector<3x8x1xf32>
    %c0_6 = arith.constant 0 : index
    %c0_7 = arith.constant 0 : index
    %c0_8 = arith.constant 0 : index
    %8 = vector.load %arg18[%c0_6, %c0_7, %c0_8] : memref<3x8x1xf32, #tpu.memory_space<vmem>>, vector<3x8x1xf32>
    tpu.vector_store %arg18[%c0_6, %c0_7, %c0_8], %7 {strides = array<i32>} : memref<3x8x1xf32, #tpu.memory_space<vmem>>, vector<3x8x1xf32>,
    %c0_i32_9 = arith.constant 0 : i32
    %9 = arith.cmpi eq, %arg1, %c0_i32_9 : i32
    %10 = arith.extui %9 : i1 to i32
    %c0_i32_10 = arith.constant 0 : i32
    %11 = arith.cmpi ne, %10, %c0_i32_10 : i32
    scf.if %11 {
      %c0_11 = arith.constant 0 : index
      %c0_12 = arith.constant 0 : index
      %c0_13 = arith.constant 0 : index
      %12 = vector.load %arg18[%c0_11, %c0_12, %c0_13] : memref<3x8x1xf32, #tpu.memory_space<vmem>>, vector<3x8x1xf32>
      %cst_14 = arith.constant 3.906250e-03 : f32
      %13 = vector.broadcast %cst_14 : f32 to vector<3x8x1xf32>
      %14 = arith.mulf %12, %13 : vector<3x8x1xf32>
      %c0_15 = arith.constant 0 : index
      %c0_16 = arith.constant 0 : index
      %15 = vector.load %arg4[%c0_15, %c0_16] : memref<3x1024xf32, #tpu.memory_space<vmem>>, vector<3x1024xf32>
      %c0_17 = arith.constant 0 : index
      %c0_18 = arith.constant 0 : index
      %16 = vector.load %arg5[%c0_17, %c0_18] : memref<1x1024xf32, #tpu.memory_space<vmem>>, vector<1x1024xf32>
      %17 = vector.extract_strided_slice %14 {offsets = [0, 0, 0], sizes = [1, 8, 1], strides = [1, 1, 1]} : vector<3x8x1xf32> to vector<1x8x1xf32>
      %18 = vector.shape_cast %17 : vector<1x8x1xf32> to vector<8x1xf32>
      %19 = vector.extract_strided_slice %15 {offsets = [0, 0], sizes = [1, 1024], strides = [1, 1]} : vector<3x1024xf32> to vector<1x1024xf32>
      %20 = vector.broadcast %18 : vector<8x1xf32> to vector<8x1024xf32>
      %21 = vector.broadcast %19 : vector<1x1024xf32> to vector<8x1024xf32>
      %22 = arith.mulf %20, %21 : vector<8x1024xf32>
      %23 = vector.broadcast %16 : vector<1x1024xf32> to vector<8x1024xf32>
      %24 = arith.addf %23, %22 : vector<8x1024xf32>
      %25 = vector.extract_strided_slice %14 {offsets = [1, 0, 0], sizes = [1, 8, 1], strides = [1, 1, 1]} : vector<3x8x1xf32> to vector<1x8x1xf32>
      %26 = vector.shape_cast %25 : vector<1x8x1xf32> to vector<8x1xf32>
      %27 = vector.extract_strided_slice %15 {offsets = [1, 0], sizes = [1, 1024], strides = [1, 1]} : vector<3x1024xf32> to vector<1x1024xf32>
      %28 = vector.broadcast %26 : vector<8x1xf32> to vector<8x1024xf32>
      %29 = vector.broadcast %27 : vector<1x1024xf32> to vector<8x1024xf32>
      %30 = arith.mulf %28, %29 : vector<8x1024xf32>
      %31 = arith.addf %24, %30 : vector<8x1024xf32>
      %32 = vector.extract_strided_slice %14 {offsets = [2, 0, 0], sizes = [1, 8, 1], strides = [1, 1, 1]} : vector<3x8x1xf32> to vector<1x8x1xf32>
      %33 = vector.shape_cast %32 : vector<1x8x1xf32> to vector<8x1xf32>
      %34 = vector.extract_strided_slice %15 {offsets = [2, 0], sizes = [1, 1024], strides = [1, 1]} : vector<3x1024xf32> to vector<1x1024xf32>
      %35 = vector.broadcast %33 : vector<8x1xf32> to vector<8x1024xf32>
      %36 = vector.broadcast %34 : vector<1x1024xf32> to vector<8x1024xf32>
      %37 = arith.mulf %35, %36 : vector<8x1024xf32>
      %38 = arith.addf %31, %37 : vector<8x1024xf32>
      %39 = arith.truncf %38 : vector<8x1024xf32> to vector<8x1024xbf16>
      %c0_19 = arith.constant 0 : index
      %c0_20 = arith.constant 0 : index
      %40 = vector.load %arg6[%c0_19, %c0_20] : memref<1024x512xbf16, #tpu.memory_space<vmem>>, vector<1024x512xbf16>
      %cst_21 = arith.constant dense<0.000000e+00> : vector<8x512xf32>
      %41 = tpu.matmul %39, %40, %cst_21 {dimension_numbers = #tpu.dot_dimension_numbers<[1], [0], [0], [1], [0, 0, 1, 1], [], []>} : vector<8x1024xbf16>, vector<1024x512xbf16>, vector<8x512xf32> -> vector<8x512xf32>
      %c0_22 = arith.constant 0 : index
      %c0_23 = arith.constant 0 : index
      %42 = vector.load %arg7[%c0_22, %c0_23] : memref<1x512xf32, #tpu.memory_space<vmem>>, vector<1x512xf32>
      %43 = vector.broadcast %42 : vector<1x512xf32> to vector<8x512xf32>
      %44 = arith.addf %41, %43 : vector<8x512xf32>
      %cst_24 = arith.constant 0.000000e+00 : f32
      %45 = vector.broadcast %cst_24 : f32 to vector<8x512xf32>
      %46 = arith.cmpf oge, %44, %45 : vector<8x512xf32>
      %cst_25 = arith.constant 0.00999999977 : f32
      %47 = vector.broadcast %cst_25 : f32 to vector<8x512xf32>
      %48 = arith.mulf %47, %44 : vector<8x512xf32>
      %49 = arith.select %46, %44, %48 : vector<8x512xi1>, vector<8x512xf32>
      %c0_26 = arith.constant 0 : index
      %c0_27 = arith.constant 0 : index
      %50 = vector.load %arg8[%c0_26, %c0_27] : memref<512x64xf32, #tpu.memory_space<vmem>>, vector<512x64xf32>
      %cst_28 = arith.constant dense<0.000000e+00> : vector<8x64xf32>
      %51 = tpu.matmul %49, %50, %cst_28 {dimension_numbers = #tpu.dot_dimension_numbers<[1], [0], [0], [1], [0, 0, 1, 1], [], []>} : vector<8x512xf32>, vector<512x64xf32>, vector<8x64xf32> -> vector<8x64xf32>
      %c0_29 = arith.constant 0 : index
      %c0_30 = arith.constant 0 : index
      %52 = vector.load %arg9[%c0_29, %c0_30] : memref<1x64xf32, #tpu.memory_space<vmem>>, vector<1x64xf32>
      %53 = vector.broadcast %52 : vector<1x64xf32> to vector<8x64xf32>
      %54 = arith.addf %51, %53 : vector<8x64xf32>
      %cst_31 = arith.constant 0.000000e+00 : f32
      %55 = vector.broadcast %cst_31 : f32 to vector<8x64xf32>
      %56 = arith.cmpf oge, %54, %55 : vector<8x64xf32>
      %cst_32 = arith.constant 0.00999999977 : f32
      %57 = vector.broadcast %cst_32 : f32 to vector<8x64xf32>
      %58 = arith.mulf %57, %54 : vector<8x64xf32>
      %59 = arith.select %56, %54, %58 : vector<8x64xi1>, vector<8x64xf32>
      %c0_33 = arith.constant 0 : index
      %c0_34 = arith.constant 0 : index
      %60 = vector.load %arg10[%c0_33, %c0_34] : memref<64x16xf32, #tpu.memory_space<vmem>>, vector<64x16xf32>
      %cst_35 = arith.constant dense<0.000000e+00> : vector<8x16xf32>
      %61 = tpu.matmul %59, %60, %cst_35 {dimension_numbers = #tpu.dot_dimension_numbers<[1], [0], [0], [1], [0, 0, 1, 1], [], []>} : vector<8x64xf32>, vector<64x16xf32>, vector<8x16xf32> -> vector<8x16xf32>
      %c0_36 = arith.constant 0 : index
      %c0_37 = arith.constant 0 : index
      %62 = vector.load %arg11[%c0_36, %c0_37] : memref<1x16xf32, #tpu.memory_space<vmem>>, vector<1x16xf32>
      %63 = vector.broadcast %62 : vector<1x16xf32> to vector<8x16xf32>
      %64 = arith.addf %61, %63 : vector<8x16xf32>
      %c0_38 = arith.constant 0 : index
      %c0_39 = arith.constant 0 : index
      %65 = vector.load %arg3[%c0_38, %c0_39] : memref<8x4xf32, #tpu.memory_space<vmem>>, vector<8x4xf32>
      %c0_40 = arith.constant 0 : index
      %c0_41 = arith.constant 0 : index
      %66 = vector.load %arg12[%c0_40, %c0_41] : memref<4x8xf32, #tpu.memory_space<vmem>>, vector<4x8xf32>
      %c0_42 = arith.constant 0 : index
      %c0_43 = arith.constant 0 : index
      %67 = vector.load %arg14[%c0_42, %c0_43] : memref<1x8xf32, #tpu.memory_space<vmem>>, vector<1x8xf32>
      %68 = vector.extract_strided_slice %65 {offsets = [0, 0], sizes = [8, 1], strides = [1, 1]} : vector<8x4xf32> to vector<8x1xf32>
      %69 = vector.extract_strided_slice %66 {offsets = [0, 0], sizes = [1, 8], strides = [1, 1]} : vector<4x8xf32> to vector<1x8xf32>
      %70 = vector.broadcast %68 : vector<8x1xf32> to vector<8x8xf32>
      %71 = vector.broadcast %69 : vector<1x8xf32> to vector<8x8xf32>
      %72 = arith.mulf %70, %71 : vector<8x8xf32>
      %73 = vector.broadcast %67 : vector<1x8xf32> to vector<8x8xf32>
      %74 = arith.addf %73, %72 : vector<8x8xf32>
      %75 = vector.extract_strided_slice %65 {offsets = [0, 1], sizes = [8, 1], strides = [1, 1]} : vector<8x4xf32> to vector<8x1xf32>
      %76 = vector.extract_strided_slice %66 {offsets = [1, 0], sizes = [1, 8], strides = [1, 1]} : vector<4x8xf32> to vector<1x8xf32>
      %77 = vector.broadcast %75 : vector<8x1xf32> to vector<8x8xf32>
      %78 = vector.broadcast %76 : vector<1x8xf32> to vector<8x8xf32>
      %79 = arith.mulf %77, %78 : vector<8x8xf32>
      %80 = arith.addf %74, %79 : vector<8x8xf32>
      %81 = vector.extract_strided_slice %65 {offsets = [0, 2], sizes = [8, 1], strides = [1, 1]} : vector<8x4xf32> to vector<8x1xf32>
      %82 = vector.extract_strided_slice %66 {offsets = [2, 0], sizes = [1, 8], strides = [1, 1]} : vector<4x8xf32> to vector<1x8xf32>
      %83 = vector.broadcast %81 : vector<8x1xf32> to vector<8x8xf32>
      %84 = vector.broadcast %82 : vector<1x8xf32> to vector<8x8xf32>
      %85 = arith.mulf %83, %84 : vector<8x8xf32>
      %86 = arith.addf %80, %85 : vector<8x8xf32>
      %87 = vector.extract_strided_slice %65 {offsets = [0, 3], sizes = [8, 1], strides = [1, 1]} : vector<8x4xf32> to vector<8x1xf32>
      %88 = vector.extract_strided_slice %66 {offsets = [3, 0], sizes = [1, 8], strides = [1, 1]} : vector<4x8xf32> to vector<1x8xf32>
      %89 = vector.broadcast %87 : vector<8x1xf32> to vector<8x8xf32>
      %90 = vector.broadcast %88 : vector<1x8xf32> to vector<8x8xf32>
      %91 = arith.mulf %89, %90 : vector<8x8xf32>
      %92 = arith.addf %86, %91 : vector<8x8xf32>
      %c0_44 = arith.constant 0 : index
      %c0_45 = arith.constant 0 : index
      %93 = vector.load %arg13[%c0_44, %c0_45] : memref<16x8xf32, #tpu.memory_space<vmem>>, vector<16x8xf32>
      %94 = vector.extract_strided_slice %64 {offsets = [0, 0], sizes = [8, 1], strides = [1, 1]} : vector<8x16xf32> to vector<8x1xf32>
      %95 = vector.extract_strided_slice %93 {offsets = [0, 0], sizes = [1, 8], strides = [1, 1]} : vector<16x8xf32> to vector<1x8xf32>
      %96 = vector.broadcast %94 : vector<8x1xf32> to vector<8x8xf32>
      %97 = vector.broadcast %95 : vector<1x8xf32> to vector<8x8xf32>
      %98 = arith.mulf %96, %97 : vector<8x8xf32>
      %99 = arith.addf %92, %98 : vector<8x8xf32>
      %100 = vector.extract_strided_slice %64 {offsets = [0, 1], sizes = [8, 1], strides = [1, 1]} : vector<8x16xf32> to vector<8x1xf32>
      %101 = vector.extract_strided_slice %93 {offsets = [1, 0], sizes = [1, 8], strides = [1, 1]} : vector<16x8xf32> to vector<1x8xf32>
      %102 = vector.broadcast %100 : vector<8x1xf32> to vector<8x8xf32>
      %103 = vector.broadcast %101 : vector<1x8xf32> to vector<8x8xf32>
      %104 = arith.mulf %102, %103 : vector<8x8xf32>
      %105 = arith.addf %99, %104 : vector<8x8xf32>
      %106 = vector.extract_strided_slice %64 {offsets = [0, 2], sizes = [8, 1], strides = [1, 1]} : vector<8x16xf32> to vector<8x1xf32>
      %107 = vector.extract_strided_slice %93 {offsets = [2, 0], sizes = [1, 8], strides = [1, 1]} : vector<16x8xf32> to vector<1x8xf32>
      %108 = vector.broadcast %106 : vector<8x1xf32> to vector<8x8xf32>
      %109 = vector.broadcast %107 : vector<1x8xf32> to vector<8x8xf32>
      %110 = arith.mulf %108, %109 : vector<8x8xf32>
      %111 = arith.addf %105, %110 : vector<8x8xf32>
      %112 = vector.extract_strided_slice %64 {offsets = [0, 3], sizes = [8, 1], strides = [1, 1]} : vector<8x16xf32> to vector<8x1xf32>
      %113 = vector.extract_strided_slice %93 {offsets = [3, 0], sizes = [1, 8], strides = [1, 1]} : vector<16x8xf32> to vector<1x8xf32>
      %114 = vector.broadcast %112 : vector<8x1xf32> to vector<8x8xf32>
      %115 = vector.broadcast %113 : vector<1x8xf32> to vector<8x8xf32>
      %116 = arith.mulf %114, %115 : vector<8x8xf32>
      %117 = arith.addf %111, %116 : vector<8x8xf32>
      %118 = vector.extract_strided_slice %64 {offsets = [0, 4], sizes = [8, 1], strides = [1, 1]} : vector<8x16xf32> to vector<8x1xf32>
      %119 = vector.extract_strided_slice %93 {offsets = [4, 0], sizes = [1, 8], strides = [1, 1]} : vector<16x8xf32> to vector<1x8xf32>
      %120 = vector.broadcast %118 : vector<8x1xf32> to vector<8x8xf32>
      %121 = vector.broadcast %119 : vector<1x8xf32> to vector<8x8xf32>
      %122 = arith.mulf %120, %121 : vector<8x8xf32>
      %123 = arith.addf %117, %122 : vector<8x8xf32>
      %124 = vector.extract_strided_slice %64 {offsets = [0, 5], sizes = [8, 1], strides = [1, 1]} : vector<8x16xf32> to vector<8x1xf32>
      %125 = vector.extract_strided_slice %93 {offsets = [5, 0], sizes = [1, 8], strides = [1, 1]} : vector<16x8xf32> to vector<1x8xf32>
      %126 = vector.broadcast %124 : vector<8x1xf32> to vector<8x8xf32>
      %127 = vector.broadcast %125 : vector<1x8xf32> to vector<8x8xf32>
      %128 = arith.mulf %126, %127 : vector<8x8xf32>
      %129 = arith.addf %123, %128 : vector<8x8xf32>
      %130 = vector.extract_strided_slice %64 {offsets = [0, 6], sizes = [8, 1], strides = [1, 1]} : vector<8x16xf32> to vector<8x1xf32>
      %131 = vector.extract_strided_slice %93 {offsets = [6, 0], sizes = [1, 8], strides = [1, 1]} : vector<16x8xf32> to vector<1x8xf32>
      %132 = vector.broadcast %130 : vector<8x1xf32> to vector<8x8xf32>
      %133 = vector.broadcast %131 : vector<1x8xf32> to vector<8x8xf32>
      %134 = arith.mulf %132, %133 : vector<8x8xf32>
      %135 = arith.addf %129, %134 : vector<8x8xf32>
      %136 = vector.extract_strided_slice %64 {offsets = [0, 7], sizes = [8, 1], strides = [1, 1]} : vector<8x16xf32> to vector<8x1xf32>
      %137 = vector.extract_strided_slice %93 {offsets = [7, 0], sizes = [1, 8], strides = [1, 1]} : vector<16x8xf32> to vector<1x8xf32>
      %138 = vector.broadcast %136 : vector<8x1xf32> to vector<8x8xf32>
      %139 = vector.broadcast %137 : vector<1x8xf32> to vector<8x8xf32>
      %140 = arith.mulf %138, %139 : vector<8x8xf32>
      %141 = arith.addf %135, %140 : vector<8x8xf32>
      %142 = vector.extract_strided_slice %64 {offsets = [0, 8], sizes = [8, 1], strides = [1, 1]} : vector<8x16xf32> to vector<8x1xf32>
      %143 = vector.extract_strided_slice %93 {offsets = [8, 0], sizes = [1, 8], strides = [1, 1]} : vector<16x8xf32> to vector<1x8xf32>
      %144 = vector.broadcast %142 : vector<8x1xf32> to vector<8x8xf32>
      %145 = vector.broadcast %143 : vector<1x8xf32> to vector<8x8xf32>
      %146 = arith.mulf %144, %145 : vector<8x8xf32>
      %147 = arith.addf %141, %146 : vector<8x8xf32>
      %148 = vector.extract_strided_slice %64 {offsets = [0, 9], sizes = [8, 1], strides = [1, 1]} : vector<8x16xf32> to vector<8x1xf32>
      %149 = vector.extract_strided_slice %93 {offsets = [9, 0], sizes = [1, 8], strides = [1, 1]} : vector<16x8xf32> to vector<1x8xf32>
      %150 = vector.broadcast %148 : vector<8x1xf32> to vector<8x8xf32>
      %151 = vector.broadcast %149 : vector<1x8xf32> to vector<8x8xf32>
      %152 = arith.mulf %150, %151 : vector<8x8xf32>
      %153 = arith.addf %147, %152 : vector<8x8xf32>
      %154 = vector.extract_strided_slice %64 {offsets = [0, 10], sizes = [8, 1], strides = [1, 1]} : vector<8x16xf32> to vector<8x1xf32>
      %155 = vector.extract_strided_slice %93 {offsets = [10, 0], sizes = [1, 8], strides = [1, 1]} : vector<16x8xf32> to vector<1x8xf32>
      %156 = vector.broadcast %154 : vector<8x1xf32> to vector<8x8xf32>
      %157 = vector.broadcast %155 : vector<1x8xf32> to vector<8x8xf32>
      %158 = arith.mulf %156, %157 : vector<8x8xf32>
      %159 = arith.addf %153, %158 : vector<8x8xf32>
      %160 = vector.extract_strided_slice %64 {offsets = [0, 11], sizes = [8, 1], strides = [1, 1]} : vector<8x16xf32> to vector<8x1xf32>
      %161 = vector.extract_strided_slice %93 {offsets = [11, 0], sizes = [1, 8], strides = [1, 1]} : vector<16x8xf32> to vector<1x8xf32>
      %162 = vector.broadcast %160 : vector<8x1xf32> to vector<8x8xf32>
      %163 = vector.broadcast %161 : vector<1x8xf32> to vector<8x8xf32>
      %164 = arith.mulf %162, %163 : vector<8x8xf32>
      %165 = arith.addf %159, %164 : vector<8x8xf32>
      %166 = vector.extract_strided_slice %64 {offsets = [0, 12], sizes = [8, 1], strides = [1, 1]} : vector<8x16xf32> to vector<8x1xf32>
      %167 = vector.extract_strided_slice %93 {offsets = [12, 0], sizes = [1, 8], strides = [1, 1]} : vector<16x8xf32> to vector<1x8xf32>
      %168 = vector.broadcast %166 : vector<8x1xf32> to vector<8x8xf32>
      %169 = vector.broadcast %167 : vector<1x8xf32> to vector<8x8xf32>
      %170 = arith.mulf %168, %169 : vector<8x8xf32>
      %171 = arith.addf %165, %170 : vector<8x8xf32>
      %172 = vector.extract_strided_slice %64 {offsets = [0, 13], sizes = [8, 1], strides = [1, 1]} : vector<8x16xf32> to vector<8x1xf32>
      %173 = vector.extract_strided_slice %93 {offsets = [13, 0], sizes = [1, 8], strides = [1, 1]} : vector<16x8xf32> to vector<1x8xf32>
      %174 = vector.broadcast %172 : vector<8x1xf32> to vector<8x8xf32>
      %175 = vector.broadcast %173 : vector<1x8xf32> to vector<8x8xf32>
      %176 = arith.mulf %174, %175 : vector<8x8xf32>
      %177 = arith.addf %171, %176 : vector<8x8xf32>
      %178 = vector.extract_strided_slice %64 {offsets = [0, 14], sizes = [8, 1], strides = [1, 1]} : vector<8x16xf32> to vector<8x1xf32>
      %179 = vector.extract_strided_slice %93 {offsets = [14, 0], sizes = [1, 8], strides = [1, 1]} : vector<16x8xf32> to vector<1x8xf32>
      %180 = vector.broadcast %178 : vector<8x1xf32> to vector<8x8xf32>
      %181 = vector.broadcast %179 : vector<1x8xf32> to vector<8x8xf32>
      %182 = arith.mulf %180, %181 : vector<8x8xf32>
      %183 = arith.addf %177, %182 : vector<8x8xf32>
      %184 = vector.extract_strided_slice %64 {offsets = [0, 15], sizes = [8, 1], strides = [1, 1]} : vector<8x16xf32> to vector<8x1xf32>
      %185 = vector.extract_strided_slice %93 {offsets = [15, 0], sizes = [1, 8], strides = [1, 1]} : vector<16x8xf32> to vector<1x8xf32>
      %186 = vector.broadcast %184 : vector<8x1xf32> to vector<8x8xf32>
      %187 = vector.broadcast %185 : vector<1x8xf32> to vector<8x8xf32>
      %188 = arith.mulf %186, %187 : vector<8x8xf32>
      %189 = arith.addf %183, %188 : vector<8x8xf32>
      %cst_46 = arith.constant 0.000000e+00 : f32
      %190 = vector.broadcast %cst_46 : f32 to vector<8x8xf32>
      %191 = arith.cmpf oge, %189, %190 : vector<8x8xf32>
      %cst_47 = arith.constant 0.00999999977 : f32
      %192 = vector.broadcast %cst_47 : f32 to vector<8x8xf32>
      %193 = arith.mulf %192, %189 : vector<8x8xf32>
      %194 = arith.select %191, %189, %193 : vector<8x8xi1>, vector<8x8xf32>
      %c0_48 = arith.constant 0 : index
      %c0_49 = arith.constant 0 : index
      %195 = vector.load %arg15[%c0_48, %c0_49] : memref<8x4xf32, #tpu.memory_space<vmem>>, vector<8x4xf32>
      %c0_50 = arith.constant 0 : index
      %c0_51 = arith.constant 0 : index
      %196 = vector.load %arg16[%c0_50, %c0_51] : memref<1x4xf32, #tpu.memory_space<vmem>>, vector<1x4xf32>
      %197 = vector.extract_strided_slice %194 {offsets = [0, 0], sizes = [8, 1], strides = [1, 1]} : vector<8x8xf32> to vector<8x1xf32>
      %198 = vector.extract_strided_slice %195 {offsets = [0, 0], sizes = [1, 4], strides = [1, 1]} : vector<8x4xf32> to vector<1x4xf32>
      %199 = vector.broadcast %197 : vector<8x1xf32> to vector<8x4xf32>
      %200 = vector.broadcast %198 : vector<1x4xf32> to vector<8x4xf32>
      %201 = arith.mulf %199, %200 : vector<8x4xf32>
      %202 = vector.broadcast %196 : vector<1x4xf32> to vector<8x4xf32>
      %203 = arith.addf %202, %201 : vector<8x4xf32>
      %204 = vector.extract_strided_slice %194 {offsets = [0, 1], sizes = [8, 1], strides = [1, 1]} : vector<8x8xf32> to vector<8x1xf32>
      %205 = vector.extract_strided_slice %195 {offsets = [1, 0], sizes = [1, 4], strides = [1, 1]} : vector<8x4xf32> to vector<1x4xf32>
      %206 = vector.broadcast %204 : vector<8x1xf32> to vector<8x4xf32>
      %207 = vector.broadcast %205 : vector<1x4xf32> to vector<8x4xf32>
      %208 = arith.mulf %206, %207 : vector<8x4xf32>
      %209 = arith.addf %203, %208 : vector<8x4xf32>
      %210 = vector.extract_strided_slice %194 {offsets = [0, 2], sizes = [8, 1], strides = [1, 1]} : vector<8x8xf32> to vector<8x1xf32>
      %211 = vector.extract_strided_slice %195 {offsets = [2, 0], sizes = [1, 4], strides = [1, 1]} : vector<8x4xf32> to vector<1x4xf32>
      %212 = vector.broadcast %210 : vector<8x1xf32> to vector<8x4xf32>
      %213 = vector.broadcast %211 : vector<1x4xf32> to vector<8x4xf32>
      %214 = arith.mulf %212, %213 : vector<8x4xf32>
      %215 = arith.addf %209, %214 : vector<8x4xf32>
      %216 = vector.extract_strided_slice %194 {offsets = [0, 3], sizes = [8, 1], strides = [1, 1]} : vector<8x8xf32> to vector<8x1xf32>
      %217 = vector.extract_strided_slice %195 {offsets = [3, 0], sizes = [1, 4], strides = [1, 1]} : vector<8x4xf32> to vector<1x4xf32>
      %218 = vector.broadcast %216 : vector<8x1xf32> to vector<8x4xf32>
      %219 = vector.broadcast %217 : vector<1x4xf32> to vector<8x4xf32>
      %220 = arith.mulf %218, %219 : vector<8x4xf32>
      %221 = arith.addf %215, %220 : vector<8x4xf32>
      %222 = vector.extract_strided_slice %194 {offsets = [0, 4], sizes = [8, 1], strides = [1, 1]} : vector<8x8xf32> to vector<8x1xf32>
      %223 = vector.extract_strided_slice %195 {offsets = [4, 0], sizes = [1, 4], strides = [1, 1]} : vector<8x4xf32> to vector<1x4xf32>
      %224 = vector.broadcast %222 : vector<8x1xf32> to vector<8x4xf32>
      %225 = vector.broadcast %223 : vector<1x4xf32> to vector<8x4xf32>
      %226 = arith.mulf %224, %225 : vector<8x4xf32>
      %227 = arith.addf %221, %226 : vector<8x4xf32>
      %228 = vector.extract_strided_slice %194 {offsets = [0, 5], sizes = [8, 1], strides = [1, 1]} : vector<8x8xf32> to vector<8x1xf32>
      %229 = vector.extract_strided_slice %195 {offsets = [5, 0], sizes = [1, 4], strides = [1, 1]} : vector<8x4xf32> to vector<1x4xf32>
      %230 = vector.broadcast %228 : vector<8x1xf32> to vector<8x4xf32>
      %231 = vector.broadcast %229 : vector<1x4xf32> to vector<8x4xf32>
      %232 = arith.mulf %230, %231 : vector<8x4xf32>
      %233 = arith.addf %227, %232 : vector<8x4xf32>
      %234 = vector.extract_strided_slice %194 {offsets = [0, 6], sizes = [8, 1], strides = [1, 1]} : vector<8x8xf32> to vector<8x1xf32>
      %235 = vector.extract_strided_slice %195 {offsets = [6, 0], sizes = [1, 4], strides = [1, 1]} : vector<8x4xf32> to vector<1x4xf32>
      %236 = vector.broadcast %234 : vector<8x1xf32> to vector<8x4xf32>
      %237 = vector.broadcast %235 : vector<1x4xf32> to vector<8x4xf32>
      %238 = arith.mulf %236, %237 : vector<8x4xf32>
      %239 = arith.addf %233, %238 : vector<8x4xf32>
      %240 = vector.extract_strided_slice %194 {offsets = [0, 7], sizes = [8, 1], strides = [1, 1]} : vector<8x8xf32> to vector<8x1xf32>
      %241 = vector.extract_strided_slice %195 {offsets = [7, 0], sizes = [1, 4], strides = [1, 1]} : vector<8x4xf32> to vector<1x4xf32>
      %242 = vector.broadcast %240 : vector<8x1xf32> to vector<8x4xf32>
      %243 = vector.broadcast %241 : vector<1x4xf32> to vector<8x4xf32>
      %244 = arith.mulf %242, %243 : vector<8x4xf32>
      %245 = arith.addf %239, %244 : vector<8x4xf32>
      %cst_52 = arith.constant 0.000000e+00 : f32
      %246 = vector.broadcast %cst_52 : f32 to vector<8x4xf32>
      %247 = arith.cmpf oge, %245, %246 : vector<8x4xf32>
      %cst_53 = arith.constant 0.00999999977 : f32
      %248 = vector.broadcast %cst_53 : f32 to vector<8x4xf32>
      %249 = arith.mulf %248, %245 : vector<8x4xf32>
      %250 = arith.select %247, %245, %249 : vector<8x4xi1>, vector<8x4xf32>
      %c0_54 = arith.constant 0 : index
      %c0_55 = arith.constant 0 : index
      %251 = vector.load %arg17[%c0_54, %c0_55] : memref<8x4xf32, #tpu.memory_space<vmem>>, vector<8x4xf32>
      tpu.vector_store %arg17[%c0_54, %c0_55], %250 {strides = array<i32>} : memref<8x4xf32, #tpu.memory_space<vmem>>, vector<8x4xf32>,
    } else {
    }
    return
  }
  func.func @transform_0(%arg0: i32, %arg1: i32) -> (i32, i32, i32) {
    %c0_i32 = arith.constant 0 : i32
    %c0_i32_0 = arith.constant 0 : i32
    return %c0_i32, %arg0, %arg1 : i32, i32, i32
  }
  func.func @transform_1(%arg0: i32, %arg1: i32) -> (i32, i32) {
    %c0_i32 = arith.constant 0 : i32
    %c0_i32_0 = arith.constant 0 : i32
    return %arg0, %c0_i32 : i32, i32
  }
  func.func @transform_2(%arg0: i32, %arg1: i32) -> (i32, i32) {
    %c0_i32 = arith.constant 0 : i32
    %c0_i32_0 = arith.constant 0 : i32
    %c0_i32_1 = arith.constant 0 : i32
    return %c0_i32, %c0_i32_0 : i32, i32
  }
  func.func @transform_3(%arg0: i32, %arg1: i32) -> (i32, i32) {
    %c0_i32 = arith.constant 0 : i32
    %c0_i32_0 = arith.constant 0 : i32
    %c0_i32_1 = arith.constant 0 : i32
    return %c0_i32, %c0_i32_0 : i32, i32
  }
  func.func @transform_4(%arg0: i32, %arg1: i32) -> (i32, i32) {
    %c0_i32 = arith.constant 0 : i32
    %c0_i32_0 = arith.constant 0 : i32
    %c0_i32_1 = arith.constant 0 : i32
    return %c0_i32, %c0_i32_0 : i32, i32
  }
  func.func @transform_5(%arg0: i32, %arg1: i32) -> (i32, i32) {
    %c0_i32 = arith.constant 0 : i32
    %c0_i32_0 = arith.constant 0 : i32
    %c0_i32_1 = arith.constant 0 : i32
    return %c0_i32, %c0_i32_0 : i32, i32
  }
  func.func @transform_6(%arg0: i32, %arg1: i32) -> (i32, i32) {
    %c0_i32 = arith.constant 0 : i32
    %c0_i32_0 = arith.constant 0 : i32
    %c0_i32_1 = arith.constant 0 : i32
    return %c0_i32, %c0_i32_0 : i32, i32
  }
  func.func @transform_7(%arg0: i32, %arg1: i32) -> (i32, i32) {
    %c0_i32 = arith.constant 0 : i32
    %c0_i32_0 = arith.constant 0 : i32
    %c0_i32_1 = arith.constant 0 : i32
    return %c0_i32, %c0_i32_0 : i32, i32
  }
  func.func @transform_8(%arg0: i32, %arg1: i32) -> (i32, i32) {
    %c0_i32 = arith.constant 0 : i32
    %c0_i32_0 = arith.constant 0 : i32
    %c0_i32_1 = arith.constant 0 : i32
    return %c0_i32, %c0_i32_0 : i32, i32
  }
  func.func @transform_9(%arg0: i32, %arg1: i32) -> (i32, i32) {
    %c0_i32 = arith.constant 0 : i32
    %c0_i32_0 = arith.constant 0 : i32
    %c0_i32_1 = arith.constant 0 : i32
    return %c0_i32, %c0_i32_0 : i32, i32
  }
  func.func @transform_10(%arg0: i32, %arg1: i32) -> (i32, i32) {
    %c0_i32 = arith.constant 0 : i32
    %c0_i32_0 = arith.constant 0 : i32
    %c0_i32_1 = arith.constant 0 : i32
    return %c0_i32, %c0_i32_0 : i32, i32
  }
  func.func @transform_11(%arg0: i32, %arg1: i32) -> (i32, i32) {
    %c0_i32 = arith.constant 0 : i32
    %c0_i32_0 = arith.constant 0 : i32
    %c0_i32_1 = arith.constant 0 : i32
    return %c0_i32, %c0_i32_0 : i32, i32
  }
  func.func @transform_12(%arg0: i32, %arg1: i32) -> (i32, i32) {
    %c0_i32 = arith.constant 0 : i32
    %c0_i32_0 = arith.constant 0 : i32
    %c0_i32_1 = arith.constant 0 : i32
    return %c0_i32, %c0_i32_0 : i32, i32
  }
  func.func @transform_13(%arg0: i32, %arg1: i32) -> (i32, i32) {
    %c0_i32 = arith.constant 0 : i32
    %c0_i32_0 = arith.constant 0 : i32
    %c0_i32_1 = arith.constant 0 : i32
    return %c0_i32, %c0_i32_0 : i32, i32
  }
  func.func @transform_14(%arg0: i32, %arg1: i32) -> (i32, i32) {
    %c0_i32 = arith.constant 0 : i32
    %c0_i32_0 = arith.constant 0 : i32
    %c0_i32_1 = arith.constant 0 : i32
    return %c0_i32, %c0_i32_0 : i32, i32
  }
  func.func @transform_15(%arg0: i32, %arg1: i32) -> (i32, i32) {
    %c0_i32 = arith.constant 0 : i32
    %c0_i32_0 = arith.constant 0 : i32
    return %arg0, %c0_i32 : i32, i32
  }
}

</mosaic_0001>

<bundles_post_ra>
// kernel: tpu_custom_call.1
= control target key start
LH: loop header
LB: loop body
LE: loop exit
PB: predicated region body
PF: predicated region fallthrough
CT: control target
= control target key end

     0   :  { %20 = vsyncpa [#allocation4], 0  ;;  %s4024_s21 = smov [#allocation3]   ;;  %s4025_s23 = smov 256   ;;  %s4636_s0 = inlined_call_operand.vmem [shape: f32[3,8,256], index: 0, kind: input, shape index: {}]   ;;  %s4637_s1 = inlined_call_operand.vmem [shape: f32[8,4], index: 1, kind: input, shape index: {}]   ;;  %s4638_s2 = inlined_call_operand.vmem [shape: f32[3,1024], index: 2, kind: input, shape index: {}]   ;;  %s4639_s3 = inlined_call_operand.vmem [shape: f32[1,1024], index: 3, kind: input, shape index: {}]   ;;  %s4640_s4 = inlined_call_operand.hbm [shape: bf16[1024,512], index: 4, kind: input, shape index: {}]   ;;  %s4641_s5 = inlined_call_operand.vmem [shape: f32[1,512], index: 5, kind: input, shape index: {}]   ;;  %s4642_s6 = inlined_call_operand.vmem [shape: f32[512,64], index: 6, kind: input, shape index: {}]   ;;  %s4643_s7 = inlined_call_operand.vmem [shape: f32[1,64], index: 7, kind: input, shape index: {}]   ;;  %s4644_s8 = inlined_call_operand.vmem [shape: f32[64,16], index: 8, kind: input, shape index: {}]   ;;  %s4645_s9 = inlined_call_operand.vmem [shape: f32[1,16], index: 9, kind: input, shape index: {}]   ;;  %s4646_s10 = inlined_call_operand.vmem [shape: f32[4,8], index: 10, kind: input, shape index: {}]   ;;  %s4647_s11 = inlined_call_operand.vmem [shape: f32[16,8], index: 11, kind: input, shape index: {}]   ;;  %s4648_s12 = inlined_call_operand.vmem [shape: f32[1,8], index: 12, kind: input, shape index: {}]   ;;  %s4649_s13 = inlined_call_operand.vmem [shape: f32[8,4], index: 13, kind: input, shape index: {}]   ;;  %s4650_s14 = inlined_call_operand.vmem [shape: f32[1,4], index: 14, kind: input, shape index: {}]   ;;  %s4651_s15 = inlined_call_operand.vmem [shape: f32[8,4], index: 15, kind: output, shape index: {}]  }
   0x1   :  { %s33_s20 = sshll.u32 %s4640_s4, 4  ;;  %s35_s22 = sshll.u32 %s4024_s21, 4  ;;  %s34_s20 = int_to_ptr.hbm [resolvable:$true] %s33_s20  ;;  %s36_s22 = int_to_ptr.vmem [resolvable:$true] %s35_s22 }
   0x2   :  { %s4026_s24 = smov 16  }
   0x3   :  { %41 = dma.hbm_to_vmem [thread:$0]  %s34_s20, 32768, %s36_s22, [#allocation4], %s4025_s23, %s4025_s23, %s4026_s24  }
   0x4   :  { %4022 = dma.done.wait [#allocation4], 32768  }
   0x5   :  { %4023 = vsyncadd [#allocation4], 4294934528  ;;  %vm70_vm0 = vcmask 7168   ;;  %v4027_v0 = vmov 0.0   ;;  %v74_v1 = vld [vmem:[%s4636_s0] sm:$0xff]  ;;  %v75_v2 = vld [vmem:[%s4636_s0 + $0x8] sm:$0xff] }
   0x6   :  { %71 = vst.msk [vmem:[#allocation2] sm:$0xff] %vm70_vm0, %v4027_v0  ;;  %v83_v3 = vadd.f32 %v75_v2, %v74_v1  ;;  %v78_v4 = vld [vmem:[%s4636_s0 + $0x20] sm:$0xff]  ;;  %v79_v5 = vld [vmem:[%s4636_s0 + $0x28] sm:$0xff]  ;;  %v76_v7 = vld [vmem:[%s4636_s0 + $0x10] sm:$0xff]  ;;  %v4028_v10 = vmov 0   ;;  %vm2414_vm6 = vcmask 523264  }
   0x7   :  { %72 = vst.msk [vmem:[#allocation2 + $0x8] sm:$0xff] %vm70_vm0, %v4027_v0  ;;  %v89_v6 = vadd.f32 %v79_v5, %v78_v4  ;;  %v77_v8 = vld [vmem:[%s4636_s0 + $0x18] sm:$0xff]  ;;  %3964 = vset.pattern.permute.xlu1 %v4028_v10  ;;  %3965 = vset.pattern.permute.xlu2 %v4028_v10  ;;  %v3718_v14 = vld [vmem:[#allocation3 + $0xec] sm:$0xf0]  ;;  %vm2656_vm8 = vcmask 31744  }
   0x8   :  { %73 = vst.msk [vmem:[#allocation2 + $0x10] sm:$0xff] %vm70_vm0, %v4027_v0  ;;  %84 = vadd.xlane.f32.xlu0 %v83_v3  ;;  %v86_v9 = vadd.f32 %v77_v8, %v76_v7  ;;  %v2777_v13 = vld [vmem:[#allocation3 + $0xe0] sm:$0xf]  ;;  %v3750_v17 = vld [vmem:[#allocation3 + $0x1ec] sm:$0xf0] }
   0x9   :  { %90 = vadd.xlane.f32.xlu1 %v89_v6  ;;  %3966 = vset.pattern.permute.xlu0 %v4028_v10  ;;  %v2905_v15 = vld [vmem:[#allocation3 + $0x1e0] sm:$0xf]  ;;  %v2778_v16 = vor.u32 %v3718_v14, %v2777_v13  ;;  %v3782_v19 = vld [vmem:[#allocation3 + $0x2ec] sm:$0xf0] }
   0xa   :  { %v3033_v18 = vld [vmem:[#allocation3 + $0x2e0] sm:$0xf]  ;;  %v2906_v20 = vor.u32 %v3750_v17, %v2905_v15  ;;  %v3814_v23 = vld [vmem:[#allocation3 + $0x3ec] sm:$0xf0] }
   0xb   :  { %v3034_v21 = vor.u32 %v3782_v19, %v3033_v18  ;;  %v3161_v22 = vld [vmem:[#allocation3 + $0x3e0] sm:$0xf]  ;;  %1823 = vmatpush.bf16.msra.mxu0 %v2778_v16  ;;  %v3714_v27 = vld [vmem:[#allocation3 + $0xcc] sm:$0xf0] }
   0xc   :  { %v2761_v24 = vld [vmem:[#allocation3 + $0xc0] sm:$0xf]  ;;  %v3162_v26 = vor.u32 %v3814_v23, %v3161_v22  ;;  %v3746_v29 = vld [vmem:[#allocation3 + $0x1cc] sm:$0xf0]  ;;  %1836 = vmatpush.bf16.msra.mxu1 %v2906_v20 }
   0xd   :  { %v80_v11 = vld [vmem:[#allocation2] sm:$0xff]  ;;  %v2889_v28 = vld [vmem:[#allocation3 + $0x1c0] sm:$0xf]  ;;  %1849 = vmatpush.bf16.msra.mxu2 %v3034_v21  ;;  %v2762_v32 = vor.u32 %v3714_v27, %v2761_v24  ;;  %v3778_v35 = vld [vmem:[#allocation3 + $0x2cc] sm:$0xf0] }
   0xe   :  { %v2890_v33 = vor.u32 %v3746_v29, %v2889_v28  ;;  %v3017_v34 = vld [vmem:[#allocation3 + $0x2c0] sm:$0xf]  ;;  %1862 = vmatpush.bf16.msra.mxu3 %v3162_v26  ;;  %v3810_v39 = vld [vmem:[#allocation3 + $0x3cc] sm:$0xf0] }
   0xf   :  { %v82_v12 = vld [vmem:[#allocation2 + $0x10] sm:$0xff]  ;;  %v3145_v36 = vld [vmem:[#allocation3 + $0x3c0] sm:$0xf]  ;;  %v3018_v38 = vor.u32 %v3778_v35, %v3017_v34  ;;  %v3710_v41 = vld [vmem:[#allocation3 + $0xac] sm:$0xf0]  ;;  %1824 = vmatpush.bf16.msra.mxu0 %v2762_v32 }
  0x10   :  { %87 = vadd.xlane.f32.xlu0 %v86_v9  ;;  %v2745_v40 = vld [vmem:[#allocation3 + $0xa0] sm:$0xf]  ;;  %v3146_v42 = vor.u32 %v3810_v39, %v3145_v36  ;;  %v3742_v44 = vld [vmem:[#allocation3 + $0x1ac] sm:$0xf0]  ;;  %1837 = vmatpush.bf16.msra.mxu1 %v2890_v33 }
  0x11   :  { %v2873_v43 = vld [vmem:[#allocation3 + $0x1a0] sm:$0xf]  ;;  %v81_v45 = vld [vmem:[#allocation2 + $0x8] sm:$0xff]  ;;  %v2746_v46 = vor.u32 %v3710_v41, %v2745_v40  ;;  %1850 = vmatpush.bf16.msra.mxu2 %v3018_v38 }
  0x12   :  { %v3001_v47 = vld [vmem:[#allocation3 + $0x2a0] sm:$0xf]  ;;  %v3774_v48 = vld [vmem:[#allocation3 + $0x2ac] sm:$0xf0]  ;;  %v2874_v49 = vor.u32 %v3742_v44, %v2873_v43  ;;  %1863 = vmatpush.bf16.msra.mxu3 %v3146_v42 }
  0x13   :  { %v3002_v50 = vor.u32 %v3774_v48, %v3001_v47  ;;  %v3129_v51 = vld [vmem:[#allocation3 + $0x3a0] sm:$0xf]  ;;  %v3806_v52 = vld [vmem:[#allocation3 + $0x3ac] sm:$0xf0]  ;;  %1825 = vmatpush.bf16.msra.mxu0 %v2746_v46 }
  0x14   :  { %v2729_v53 = vld [vmem:[#allocation3 + $0x80] sm:$0xf]  ;;  %v3130_v54 = vor.u32 %v3806_v52, %v3129_v51  ;;  %v3706_v55 = vld [vmem:[#allocation3 + $0x8c] sm:$0xf0]  ;;  %1838 = vmatpush.bf16.msra.mxu1 %v2874_v49 }
  0x15   :  { %v2857_v56 = vld [vmem:[#allocation3 + $0x180] sm:$0xf]  ;;  %v3738_v57 = vld [vmem:[#allocation3 + $0x18c] sm:$0xf0]  ;;  %v2730_v62 = vor.u32 %v3706_v55, %v2729_v53  ;;  %1851 = vmatpush.bf16.msra.mxu2 %v3002_v50 }
  0x16   :  { %v2985_v58 = vld [vmem:[#allocation3 + $0x280] sm:$0xf]  ;;  %v3770_v59 = vld [vmem:[#allocation3 + $0x28c] sm:$0xf0]  ;;  %v2858_v2 = vor.u32 %v3738_v57, %v2857_v56  ;;  %1864 = vmatpush.bf16.msra.mxu3 %v3130_v54 }
  0x17   :  { %v3113_v60 = vld [vmem:[#allocation3 + $0x380] sm:$0xf]  ;;  %v3802_v63 = vld [vmem:[#allocation3 + $0x38c] sm:$0xf0]  ;;  %v2986_v7 = vor.u32 %v3770_v59, %v2985_v58  ;;  %1826 = vmatpush.bf16.msra.mxu0 %v2730_v62 }
  0x18   :  { %v2713_v0 = vld [vmem:[#allocation3 + $0x60] sm:$0xf]  ;;  %v3702_v3 = vld [vmem:[#allocation3 + $0x6c] sm:$0xf0]  ;;  %v3114_v8 = vor.u32 %v3802_v63, %v3113_v60  ;;  %1839 = vmatpush.bf16.msra.mxu1 %v2858_v2 }
  0x19   :  { %v2841_v4 = vld [vmem:[#allocation3 + $0x160] sm:$0xf]  ;;  %v3734_v5 = vld [vmem:[#allocation3 + $0x16c] sm:$0xf0]  ;;  %v2714_v15 = vor.u32 %v3702_v3, %v2713_v0  ;;  %1852 = vmatpush.bf16.msra.mxu2 %v2986_v7 }
  0x1a   :  { %v2969_v9 = vld [vmem:[#allocation3 + $0x260] sm:$0xf]  ;;  %v3798_v14 = vld [vmem:[#allocation3 + $0x36c] sm:$0xf0]  ;;  %v2842_v16 = vor.u32 %v3734_v5, %v2841_v4  ;;  %1865 = vmatpush.bf16.msra.mxu3 %v3114_v8 }
  0x1b   :  { %v3097_v13 = vld [vmem:[#allocation3 + $0x360] sm:$0xf]  ;;  %v3698_v18 = vld [vmem:[#allocation3 + $0x4c] sm:$0xf0]  ;;  %1827 = vmatpush.bf16.msra.mxu0 %v2714_v15 }
  0x1c   :  { %v2697_v17 = vld [vmem:[#allocation3 + $0x40] sm:$0xf]  ;;  %v3098_v20 = vor.u32 %v3798_v14, %v3097_v13  ;;  %v3730_v22 = vld [vmem:[#allocation3 + $0x14c] sm:$0xf0]  ;;  %1840 = vmatpush.bf16.msra.mxu1 %v2842_v16 }
  0x1d   :  { %v2825_v21 = vld [vmem:[#allocation3 + $0x140] sm:$0xf]  ;;  %v3762_v24 = vld [vmem:[#allocation3 + $0x24c] sm:$0xf0]  ;;  %v2698_v28 = vor.u32 %v3698_v18, %v2697_v17 }
  0x1e   :  { %v2953_v23 = vld [vmem:[#allocation3 + $0x240] sm:$0xf]  ;;  %v3794_v26 = vld [vmem:[#allocation3 + $0x34c] sm:$0xf0]  ;;  %1866 = vmatpush.bf16.msra.mxu3 %v3098_v20 }
  0x1f   :  { %v2681_v29 = vld [vmem:[#allocation3 + $0x20] sm:$0xf]  ;;  %v3726_v33 = vld [vmem:[#allocation3 + $0x12c] sm:$0xf0]  ;;  %v2954_v35 = vor.u32 %v3762_v24, %v2953_v23  ;;  %1828 = vmatpush.bf16.msra.mxu0 %v2698_v28 }
  0x20   :  { %v2809_v32 = vld [vmem:[#allocation3 + $0x120] sm:$0xf]  ;;  %v3758_v38 = vld [vmem:[#allocation3 + $0x22c] sm:$0xf0] }
  0x21   :  { %v3065_v40 = vld [vmem:[#allocation3 + $0x320] sm:$0xf]  ;;  %v3790_v41 = vld [vmem:[#allocation3 + $0x32c] sm:$0xf0] }
  0x22   :  { %v2665_v44 = vld [vmem:[#allocation3] sm:$0xf]  ;;  %v3690_v46 = vld [vmem:[#allocation3 + $0xc] sm:$0xf0]  ;;  %v3066_v50 = vor.u32 %v3790_v41, %v3065_v40 }
  0x23   :  { %v2793_v47 = vld [vmem:[#allocation3 + $0x100] sm:$0xf]  ;;  %v3722_v48 = vld [vmem:[#allocation3 + $0x10c] sm:$0xf0]  ;;  %v2666_v57 = vor.u32 %v3690_v46, %v2665_v44 }
  0x24   :  { %v2921_v51 = vld [vmem:[#allocation3 + $0x200] sm:$0xf]  ;;  %v3754_v52 = vld [vmem:[#allocation3 + $0x20c] sm:$0xf0] }
  0x25   :  { %v3049_v53 = vld [vmem:[#allocation3 + $0x300] sm:$0xf]  ;;  %v3786_v54 = vld [vmem:[#allocation3 + $0x30c] sm:$0xf0] }
  0x26   :  { %v3289_v55 = vld [vmem:[#allocation3 + $0x4e0] sm:$0xf]  ;;  %v3846_v56 = vld [vmem:[#allocation3 + $0x4ec] sm:$0xf0]  ;;  %v3050_v2 = vor.u32 %v3786_v54, %v3049_v53 }
  0x27   :  { %v3417_v58 = vld [vmem:[#allocation3 + $0x5e0] sm:$0xf]  ;;  %v3878_v59 = vld [vmem:[#allocation3 + $0x5ec] sm:$0xf0]  ;;  %v3290_v3 = vor.u32 %v3846_v56, %v3289_v55 }
  0x28   :  { %v3545_v60 = vld [vmem:[#allocation3 + $0x6e0] sm:$0xf]  ;;  %v3910_v62 = vld [vmem:[#allocation3 + $0x6ec] sm:$0xf0]  ;;  %v3418_v4 = vor.u32 %v3878_v59, %v3417_v58 }
  0x29   :  { %v3673_v63 = vld [vmem:[#allocation3 + $0x7e0] sm:$0xf]  ;;  %v3942_v0 = vld [vmem:[#allocation3 + $0x7ec] sm:$0xf0]  ;;  %v3546_v7 = vor.u32 %v3910_v62, %v3545_v60 }
  0x2a   :  { %v3273_v5 = vld [vmem:[#allocation3 + $0x4c0] sm:$0xf]  ;;  %v3674_v8 = vor.u32 %v3942_v0, %v3673_v63  ;;  %v3906_v13 = vld [vmem:[#allocation3 + $0x6cc] sm:$0xf0] }
  0x2b   :  { %v3657_v14 = vld [vmem:[#allocation3 + $0x7c0] sm:$0xf]  ;;  %v3938_v15 = vld [vmem:[#allocation3 + $0x7cc] sm:$0xf0] }
  0x2c   :  { %v3257_v20 = vld [vmem:[#allocation3 + $0x4a0] sm:$0xf]  ;;  %v3870_v24 = vld [vmem:[#allocation3 + $0x5ac] sm:$0xf0] }
  0x2d   :  { %v3625_v40 = vld [vmem:[#allocation3 + $0x780] sm:$0xf]  ;;  %v3926_v54 = vld [vmem:[#allocation3 + $0x76c] sm:$0xf0] }
  0x2e   :  { %v3225_v44 = vld [vmem:[#allocation3 + $0x460] sm:$0xf]  ;;  %v3858_v60 = vld [vmem:[#allocation3 + $0x54c] sm:$0xf0] }
  0x2f   :  { %v3353_v46 = vld [vmem:[#allocation3 + $0x560] sm:$0xf]  ;;  %v3890_v62 = vld [vmem:[#allocation3 + $0x64c] sm:$0xf0] }
  0x30   :  { %v3609_v53 = vld [vmem:[#allocation3 + $0x760] sm:$0xf] }
  0x31   :  { %v3610_v55 = vor.u32 %v3926_v54, %v3609_v53  ;;  %v3209_v56 = vld [vmem:[#allocation3 + $0x440] sm:$0xf] }
  0x32   :  { %v3337_v58 = vld [vmem:[#allocation3 + $0x540] sm:$0xf] }
  0x33   :  { %v3338_v63 = vor.u32 %v3858_v60, %v3337_v58  ;;  %v4179_v60 = vld [vmem:[#allocation3 + $0x1e4] sm:$0xf] }
  0x7b   :  { %v85_v25 = vpop.xlane.xlu0 %84 }
  0x7c   :  { %v92_v30 = vadd.f32 %v85_v25, %v80_v11  ;;  %v91_v31 = vpop.xlane.xlu1 %90  ;;  %v3766_v11 = vld [vmem:[#allocation3 + $0x26c] sm:$0xf0]  ;;  %v3081_v25 = vld [vmem:[#allocation3 + $0x340] sm:$0xf] }
  0x7d   :  { %v94_v37 = vadd.f32 %v91_v31, %v82_v12  ;;  %v2970_v19 = vor.u32 %v3766_v11, %v2969_v9  ;;  %v3694_v31 = vld [vmem:[#allocation3 + $0x2c] sm:$0xf0]  ;;  %v3082_v36 = vor.u32 %v3794_v26, %v3081_v25  ;;  %v3401_v9 = vld [vmem:[#allocation3 + $0x5c0] sm:$0xf] }
  0x7e   :  { %96 = vst.msk [vmem:[#allocation2] sm:$0xff] %vm70_vm0, %v92_v30  ;;  %v2826_v30 = vor.u32 %v3730_v22, %v2825_v21  ;;  %v2682_v43 = vor.u32 %v3694_v31, %v2681_v29  ;;  %v3874_v11 = vld [vmem:[#allocation3 + $0x5cc] sm:$0xf0]  ;;  %v3385_v22 = vld [vmem:[#allocation3 + $0x5a0] sm:$0xf] }
  0x7f   :  { %98 = vst.msk [vmem:[#allocation2 + $0x10] sm:$0xff] %vm70_vm0, %v94_v37  ;;  %1853 = vmatpush.bf16.msra.mxu2 %v2970_v19  ;;  %v2937_v37 = vld [vmem:[#allocation3 + $0x220] sm:$0xf]  ;;  %1867 = vmatpush.bf16.msra.mxu3 %v3082_v36  ;;  %v3402_v17 = vor.u32 %v3874_v11, %v3401_v9  ;;  %v3658_v19 = vor.u32 %v3938_v15, %v3657_v14  ;;  %v3838_v21 = vld [vmem:[#allocation3 + $0x4ac] sm:$0xf0] }
  0x80   :  { %1841 = vmatpush.bf16.msra.mxu1 %v2826_v30  ;;  %v2938_v49 = vor.u32 %v3758_v38, %v2937_v37  ;;  %1829 = vmatpush.bf16.msra.mxu0 %v2682_v43  ;;  %v3258_v23 = vor.u32 %v3838_v21, %v3257_v20  ;;  %v3513_v25 = vld [vmem:[#allocation3 + $0x6a0] sm:$0xf]  ;;  %v3902_v26 = vld [vmem:[#allocation3 + $0x6ac] sm:$0xf0] }
  0x81   :  { %v3514_v28 = vor.u32 %v3902_v26, %v3513_v25  ;;  %v3641_v29 = vld [vmem:[#allocation3 + $0x7a0] sm:$0xf]  ;;  %v3934_v30 = vld [vmem:[#allocation3 + $0x7ac] sm:$0xf0] }
  0x82   :  { %v3241_v31 = vld [vmem:[#allocation3 + $0x480] sm:$0xf]  ;;  %v3918_v15 = vld [vmem:[#allocation3 + $0x72c] sm:$0xf0] }
  0x83   :  { %v88_v61 = vpop.xlane.xlu0 %87  ;;  %1854 = vmatpush.bf16.msra.mxu2 %v2954_v35  ;;  %1868 = vmatpush.bf16.msra.mxu3 %v3066_v50  ;;  %v3866_v35 = vld [vmem:[#allocation3 + $0x58c] sm:$0xf0]  ;;  %v3497_v38 = vld [vmem:[#allocation3 + $0x680] sm:$0xf] }
  0x84   :  { %v93_v1 = vadd.f32 %v88_v61, %v81_v45  ;;  %v2810_v45 = vor.u32 %v3726_v33, %v2809_v32  ;;  %v2794_v61 = vor.u32 %v3722_v48, %v2793_v47  ;;  %1830 = vmatpush.bf16.msra.mxu0 %v2666_v57  ;;  %v3642_v32 = vor.u32 %v3934_v30, %v3641_v29  ;;  %v3834_v33 = vld [vmem:[#allocation3 + $0x48c] sm:$0xf0]  ;;  %v3449_v11 = vld [vmem:[#allocation3 + $0x620] sm:$0xf]  ;;  %v108_v29 = vld [vmem:[%s4638_s2] sm:$0x77] }
  0x85   :  { %v102_v6 = vld [vmem:[#allocation2] sm:$0xff]  ;;  %v3242_v36 = vor.u32 %v3834_v33, %v3241_v31  ;;  %v3862_v48 = vld [vmem:[#allocation3 + $0x56c] sm:$0xf0]  ;;  %v3433_v21 = vld [vmem:[#allocation3 + $0x600] sm:$0xf]  ;;  %v184_v31 = vperm.slane %v108_v29, 1 }
  0x86   :  { %97 = vst.msk [vmem:[#allocation2 + $0x8] sm:$0xff] %vm70_vm0, %v93_v1  ;;  %v105_v12 = vmul.f32 0.00390625, %v102_v6  ;;  %v104_v27 = vld [vmem:[#allocation2 + $0x10] sm:$0xff]  ;;  %1842 = vmatpush.bf16.msra.mxu1 %v2810_v45  ;;  %v2922_v1 = vor.u32 %v3754_v52, %v2921_v51  ;;  %v3842_v6 = vld [vmem:[#allocation3 + $0x4cc] sm:$0xf0]  ;;  %v3354_v51 = vor.u32 %v3862_v48, %v3353_v46  ;;  %v185_v33 = vperm.slane %v108_v29, 5 }
  0x87   :  { %v107_v42 = vmul.f32 0.00390625, %v104_v27  ;;  %1855 = vmatpush.bf16.msra.mxu2 %v2938_v49  ;;  %1869 = vmatpush.bf16.msra.mxu3 %v3050_v2  ;;  %v3274_v16 = vor.u32 %v3842_v6, %v3273_v5  ;;  %v3386_v27 = vor.u32 %v3870_v24, %v3385_v22  ;;  %v3830_v45 = vld [vmem:[#allocation3 + $0x46c] sm:$0xf0]  ;;  %v3481_v49 = vld [vmem:[#allocation3 + $0x660] sm:$0xf] }
  0x88   :  { %115 = vperm.xlu1 %3964, %v105_v12   ;;  %v3529_v12 = vld [vmem:[#allocation3 + $0x6c0] sm:$0xf]  ;;  %1875 = vmatpush.bf16.msrb.mxu0 %v3290_v3  ;;  %v3226_v47 = vor.u32 %v3830_v45, %v3225_v44  ;;  %v3894_v50 = vld [vmem:[#allocation3 + $0x66c] sm:$0xf0]  ;;  %v201_v45 = vperm.slane %v185_v33, 1 }
  0x89   :  { %v3530_v18 = vor.u32 %v3906_v13, %v3529_v12  ;;  %v3482_v52 = vor.u32 %v3894_v50, %v3481_v49  ;;  %v3826_v57 = vld [vmem:[#allocation3 + $0x44c] sm:$0xf0]  ;;  %v3193_v3 = vld [vmem:[#allocation3 + $0x420] sm:$0xf] }
  0x8a   :  { %1843 = vmatpush.bf16.msra.mxu1 %v2794_v61  ;;  %v3210_v59 = vor.u32 %v3826_v57, %v3209_v56  ;;  %v3465_v61 = vld [vmem:[#allocation3 + $0x640] sm:$0xf]  ;;  %v3922_v2 = vld [vmem:[#allocation3 + $0x74c] sm:$0xf0]  ;;  %v4175_v57 = vld [vmem:[#allocation3 + $0xe4] sm:$0xf] }
  0x8b   :  { %1856 = vmatpush.bf16.msra.mxu2 %v2922_v1  ;;  %1914 = vmatpush.bf16.msrb.mxu3 %v3674_v8  ;;  %v3466_v0 = vor.u32 %v3890_v62, %v3465_v61  ;;  %v3593_v1 = vld [vmem:[#allocation3 + $0x740] sm:$0xf]  ;;  %v3822_v5 = vld [vmem:[#allocation3 + $0x42c] sm:$0xf0]  ;;  %v4182_v62 = vld [vmem:[#allocation3 + $0x1f0] sm:$0xf0] }
  0x8c   :  { %1876 = vmatpush.bf16.msrb.mxu0 %v3274_v16  ;;  %v3321_v6 = vld [vmem:[#allocation3 + $0x520] sm:$0xf]  ;;  %v3194_v8 = vor.u32 %v3822_v5, %v3193_v3  ;;  %v3886_v12 = vld [vmem:[#allocation3 + $0x62c] sm:$0xf0]  ;;  %v4189_v3 = vld [vmem:[#allocation3 + $0x3e4] sm:$0xf] }
  0x8d   :  { %v103_v34 = vld [vmem:[#allocation2 + $0x8] sm:$0xff]  ;;  %v3577_v13 = vld [vmem:[#allocation3 + $0x720] sm:$0xf]  ;;  %v3450_v14 = vor.u32 %v3886_v12, %v3449_v11 }
  0x8e   :  { %v106_v39 = vmul.f32 0.00390625, %v103_v34  ;;  %1888 = vmatpush.bf16.msrb.mxu1 %v3418_v4  ;;  %v3369_v34 = vld [vmem:[#allocation3 + $0x580] sm:$0xf]  ;;  %v3594_v4 = vor.u32 %v3922_v2, %v3593_v1  ;;  %v3850_v20 = vld [vmem:[#allocation3 + $0x50c] sm:$0xf0] }
  0x8f   :  { %1901 = vmatpush.bf16.msrb.mxu2 %v3546_v7  ;;  %1915 = vmatpush.bf16.msrb.mxu3 %v3658_v19  ;;  %v3370_v37 = vor.u32 %v3866_v35, %v3369_v34  ;;  %v3854_v7 = vld [vmem:[#allocation3 + $0x52c] sm:$0xf0]  ;;  %v3177_v16 = vld [vmem:[#allocation3 + $0x400] sm:$0xf]  ;;  %v230_v34 = vperm.slane %v108_v29, 6 }
  0x90   :  { %181 = vperm.xlu2 %3965, %v106_v39   ;;  %1877 = vmatpush.bf16.msrb.mxu0 %v3258_v23  ;;  %v3898_v39 = vld [vmem:[#allocation3 + $0x68c] sm:$0xf0]  ;;  %v3322_v9 = vor.u32 %v3854_v7, %v3321_v6  ;;  %v3305_v19 = vld [vmem:[#allocation3 + $0x500] sm:$0xf] }
  0x91   :  { %v3498_v41 = vor.u32 %v3898_v39, %v3497_v38  ;;  %v3882_v23 = vld [vmem:[#allocation3 + $0x60c] sm:$0xf0]  ;;  %v3561_v24 = vld [vmem:[#allocation3 + $0x700] sm:$0xf]  ;;  %v3306_v26 = vor.u32 %v3850_v20, %v3305_v19  ;;  %v4163_v38 = vld [vmem:[%s4639_s3] sm:$0xff]  ;;  %v246_v46 = vperm.slane %v230_v34, 2 }
  0x92   :  { %1889 = vmatpush.bf16.msrb.mxu1 %v3402_v17  ;;  %v3818_v17 = vld [vmem:[#allocation3 + $0x40c] sm:$0xf0]  ;;  %v155_v49 = vperm.slane %v4163_v38, 0  ;;  %v157_v54 = vperm.slane %v4163_v38, 2  ;;  %v158_v1 = vperm.slane %v4163_v38, 3 }
  0x93   :  { %1902 = vmatpush.bf16.msrb.mxu2 %v3530_v18  ;;  %1916 = vmatpush.bf16.msrb.mxu3 %v3642_v32  ;;  %v3578_v18 = vor.u32 %v3918_v15, %v3577_v13  ;;  %v3178_v22 = vor.u32 %v3818_v17, %v3177_v16  ;;  %v3914_v25 = vld [vmem:[#allocation3 + $0x70c] sm:$0xf0]  ;;  %v229_v32 = vperm.slane %v108_v29, 2  ;;  %v160_v17 = vperm.slane %v4163_v38, 5 }
  0x94   :  { %1878 = vmatpush.bf16.msrb.mxu0 %v3242_v36  ;;  %v109_v30 = vld [vmem:[%s4638_s2 + $0x8] sm:$0x77]  ;;  %v122_v36 = vperm.slane %v108_v29, 0 }
  0x95   :  { %v186_v35 = vperm.slane %v109_v30, 1  ;;  %v124_v39 = vperm.slane %v109_v30, 0  ;;  %v245_v44 = vperm.slane %v229_v32, 2  ;;  %v232_v56 = vperm.slane %v109_v30, 6 }
  0x96   :  { %1890 = vmatpush.bf16.msrb.mxu1 %v3386_v27  ;;  %v3434_v27 = vor.u32 %v3882_v23, %v3433_v21  ;;  %v138_v48 = vperm.slane %v122_v36, 0 }
  0x97   :  { %1903 = vmatpush.bf16.msrb.mxu2 %v3514_v28  ;;  %v3562_v28 = vor.u32 %v3914_v25, %v3561_v24  ;;  %v140_v53 = vperm.slane %v124_v39, 0  ;;  %v248_v6 = vperm.slane %v232_v56, 2  ;;  %v4222_v39 = vld [vmem:[#allocation3 + $0xd0] sm:$0xf0] }
  0x98   :  { %226 = vperm.xlu2 %3965, %v107_v42   ;;  %v3930_v42 = vld [vmem:[#allocation3 + $0x78c] sm:$0xf0]  ;;  %1879 = vmatpush.bf16.msrb.mxu0 %v3226_v47  ;;  %v202_v47 = vperm.slane %v186_v35, 1 }
  0x99   :  { %v3626_v43 = vor.u32 %v3930_v42, %v3625_v40  ;;  %v200_v40 = vperm.slane %v184_v31, 1  ;;  %v187_v42 = vperm.slane %v109_v30, 5 }
  0x9a   :  { %1891 = vmatpush.bf16.msrb.mxu1 %v3370_v37  ;;  %v123_v37 = vperm.slane %v108_v29, 4 }
  0x9b   :  { %1904 = vmatpush.bf16.msrb.mxu2 %v3498_v41  ;;  %1917 = vmatpush.bf16.msrb.mxu3 %v3626_v43  ;;  %v231_v41 = vperm.slane %v109_v30, 2  ;;  %v203_v2 = vperm.slane %v187_v42, 1 }
  0x9c   :  { %1880 = vmatpush.bf16.msrb.mxu0 %v3210_v59  ;;  %v139_v50 = vperm.slane %v123_v37, 0  ;;  %v4177_v59 = vld [vmem:[#allocation3 + $0xf0] sm:$0xf0] }
  0x9d   :  { %v247_v58 = vperm.slane %v231_v41, 2  ;;  %v2782_v7 = vor.u32 %v4175_v57, %v4177_v59  ;;  %v4226_v41 = vld [vmem:[#allocation3 + $0x1d0] sm:$0xf0]  ;;  %v3772_v59 = vld [vmem:[#allocation3 + $0x2a4] sm:$0xf] }
  0x9e   :  { %1892 = vmatpush.bf16.msrb.mxu1 %v3354_v51  ;;  %v156_v51 = vperm.slane %v4163_v38, 1 }
  0x9f   :  { %1905 = vmatpush.bf16.msrb.mxu2 %v3482_v52  ;;  %1918 = vmatpush.bf16.msrb.mxu3 %v3610_v55  ;;  %v4172_v52 = vld [vmem:[%s4638_s2 + $0x10] sm:$0x77]  ;;  %v125_v55 = vperm.slane %v109_v30, 4  ;;  %v4218_v30 = vld [vmem:[#allocation3 + $0xc4] sm:$0xf] }
  0xa0   :  { %1881 = vmatpush.bf16.msrb.mxu0 %v3194_v8  ;;  %v126_v61 = vperm.slane %v4172_v52, 0  ;;  %v159_v8 = vperm.slane %v4163_v38, 4  ;;  %v127_v13 = vperm.slane %v4172_v52, 4  ;;  %v188_v15 = vperm.slane %v4172_v52, 1 }
  0xa1   :  { %v141_v5 = vperm.slane %v125_v55, 0  ;;  %v233_v16 = vperm.slane %v4172_v52, 2 }
  0xa2   :  { %1893 = vmatpush.bf16.msrb.mxu1 %v3338_v63  ;;  %v4184_v63 = vld [vmem:[#allocation3 + $0x2e4] sm:$0xf]  ;;  %v142_v12 = vperm.slane %v126_v61, 0  ;;  %v143_v31 = vperm.slane %v127_v13, 0 }
  0xa3   :  { %1906 = vmatpush.bf16.msrb.mxu2 %v3466_v0  ;;  %1919 = vmatpush.bf16.msrb.mxu3 %v3594_v4  ;;  %v4186_v0 = vld [vmem:[#allocation3 + $0x2f0] sm:$0xf0] }
  0xa4   :  { %1882 = vmatpush.bf16.msrb.mxu0 %v3178_v22  ;;  %v4191_v4 = vld [vmem:[#allocation3 + $0x3f0] sm:$0xf0]  ;;  %v3038_v11 = vor.u32 %v4184_v63, %v4186_v0  ;;  %v189_v22 = vperm.slane %v4172_v52, 5 }
  0xa6   :  { %1894 = vmatpush.bf16.msrb.mxu1 %v3322_v9  ;;  %v2910_v9 = vor.u32 %v4179_v60, %v4182_v62  ;;  %v3003_v60 = vld [vmem:[#allocation3 + $0x2b0] sm:$0xf0]  ;;  %v249_v62 = vperm.slane %v233_v16, 2 }
  0xa7   :  { %1907 = vmatpush.bf16.msrb.mxu2 %v3450_v14  ;;  %1920 = vmatpush.bf16.msrb.mxu3 %v3578_v18  ;;  %v3166_v14 = vor.u32 %v4189_v3, %v4191_v4  ;;  %v3704_v3 = vld [vmem:[#allocation3 + $0x84] sm:$0xf]  ;;  %v2731_v16 = vld [vmem:[#allocation3 + $0x90] sm:$0xf0] }
  0xaa   :  { %1895 = vmatpush.bf16.msrb.mxu1 %v3306_v26 }
  0xab   :  { %1908 = vmatpush.bf16.msrb.mxu2 %v3434_v27  ;;  %1921 = vmatpush.bf16.msrb.mxu3 %v3562_v28  ;;  %v4215_v28 = vld [vmem:[%s4638_s2 + $0x18] sm:$0x77] }
  0xac   :  { %v128_v32 = vperm.slane %v4215_v28, 0  ;;  %v129_v33 = vperm.slane %v4215_v28, 4 }
  0xae   :  { %v144_v56 = vperm.slane %v128_v32, 0  ;;  %v145_v61 = vperm.slane %v129_v33, 0  ;;  %v4250_v32 = vld [vmem:[#allocation3 + $0xa4] sm:$0xf]  ;;  %v4252_v33 = vld [vmem:[#allocation3 + $0xb0] sm:$0xf0] }
  0xaf   :  { %v2750_v57 = vor.u32 %v4250_v32, %v4252_v33  ;;  %v2715_v33 = vld [vmem:[#allocation3 + $0x70] sm:$0xf0] }
  0xea   :  { %v4165_v43 = vpop.permute.xlu2 %181 }
  0xeb   :  { %v208_v19 = vmul.f32 %v200_v40, %v4165_v43  ;;  %v209_v20 = vmul.f32 %v201_v45, %v4165_v43  ;;  %v210_v21 = vmul.f32 %v202_v47, %v4165_v43  ;;  %v211_v29 = vmul.f32 %v203_v2, %v4165_v43  ;;  %v4224_v40 = vld [vmem:[#allocation3 + $0x1c4] sm:$0xf] }
  0xec   :  { %v2894_v55 = vor.u32 %v4224_v40, %v4226_v41  ;;  %v2734_v41 = vor.u32 %v3704_v3, %v2731_v16  ;;  %v3067_v16 = vld [vmem:[#allocation3 + $0x330] sm:$0xf0] }
  0xf2   :  { %v4210_v23 = vpop.permute.xlu2 %226 }
  0xf3   :  { %v253_v42 = vmul.f32 %v245_v44, %v4210_v23  ;;  %v254_v45 = vmul.f32 %v246_v46, %v4210_v23  ;;  %v255_v47 = vmul.f32 %v247_v58, %v4210_v23  ;;  %v4238_v58 = vld [vmem:[#allocation3 + $0x2d0] sm:$0xf0] }
  0xfa   :  { %v116_v18 = vpop.permute.xlu1 %115 }
  0xfb   :  { %v146_v24 = vmul.f32 %v138_v48, %v116_v18  ;;  %v147_v25 = vmul.f32 %v139_v50, %v116_v18  ;;  %v148_v26 = vmul.f32 %v140_v53, %v116_v18  ;;  %v149_v27 = vmul.f32 %v141_v5, %v116_v18  ;;  %v4236_v5 = vld [vmem:[#allocation3 + $0x2c4] sm:$0xf] }
  0xfc   :  { %v256_v48 = vmul.f32 %v248_v6, %v4210_v23  ;;  %v150_v6 = vmul.f32 %v142_v12, %v116_v18  ;;  %v151_v13 = vmul.f32 %v143_v31, %v116_v18  ;;  %v152_v12 = vmul.f32 %v144_v56, %v116_v18 }
  0xfd   :  { %v171_v34 = vadd.f32 %v155_v49, %v146_v24  ;;  %v172_v35 = vadd.f32 %v156_v51, %v147_v25  ;;  %v173_v36 = vadd.f32 %v157_v54, %v148_v26  ;;  %v174_v37 = vadd.f32 %v158_v1, %v149_v27  ;;  %v3808_v27 = vld [vmem:[#allocation3 + $0x3c4] sm:$0xf] }
  0xfe   :  { %v2766_v54 = vor.u32 %v4218_v30, %v4222_v39  ;;  %v161_v31 = vperm.slane %v4163_v38, 6  ;;  %v3115_v30 = vld [vmem:[#allocation3 + $0x390] sm:$0xf0]  ;;  %v257_v39 = vmul.f32 %v249_v62, %v4210_v23  ;;  %v3760_v62 = vld [vmem:[#allocation3 + $0x244] sm:$0xf] }
  0xff   :  { %v216_v50 = vadd.f32 %v208_v19, %v171_v34  ;;  %v217_v53 = vadd.f32 %v209_v20, %v172_v35  ;;  %v218_v49 = vadd.f32 %v210_v21, %v173_v36  ;;  %v219_v51 = vadd.f32 %v211_v29, %v174_v37  ;;  %v3147_v29 = vld [vmem:[#allocation3 + $0x3d0] sm:$0xf0]  ;;  %v3740_v37 = vld [vmem:[#allocation3 + $0x1a4] sm:$0xf] }
 0x100   :  { %v190_v19 = vperm.slane %v4215_v28, 1  ;;  %v191_v20 = vperm.slane %v4215_v28, 5  ;;  %v153_v34 = vmul.f32 %v145_v61, %v116_v18  ;;  %v162_v35 = vperm.slane %v4163_v38, 7  ;;  %v2875_v18 = vld [vmem:[#allocation3 + $0x1b0] sm:$0xf0] }
 0x101   :  { %v261_v1 = vadd.f32 %v253_v42, %v216_v50  ;;  %v262_v44 = vadd.f32 %v254_v45, %v217_v53  ;;  %v263_v2 = vadd.f32 %v255_v47, %v218_v49  ;;  %v264_v46 = vadd.f32 %v256_v48, %v219_v51  ;;  %v3736_v61 = vld [vmem:[#allocation3 + $0x184] sm:$0xf] }
 0x102   :  { %v3022_v36 = vor.u32 %v4236_v5, %v4238_v58  ;;  %v204_v42 = vperm.slane %v188_v15, 1  ;;  %v205_v45 = vperm.slane %v189_v22, 1  ;;  %v234_v47 = vperm.slane %v4172_v52, 6  ;;  %v3768_v5 = vld [vmem:[#allocation3 + $0x284] sm:$0xf] }
 0x103   :  { %v4242_v21 = vpack.c.bf16 %v261_v1, %v261_v1  ;;  %v4244_v24 = vpack.c.bf16 %v262_v44, %v262_v44  ;;  %v4246_v25 = vpack.c.bf16 %v263_v2, %v263_v2  ;;  %v4248_v26 = vpack.c.bf16 %v264_v46, %v264_v46  ;;  %v2859_v1 = vld [vmem:[#allocation3 + $0x190] sm:$0xf0] }
 0x104   :  { %v206_v48 = vperm.slane %v190_v19, 1  ;;  %v235_v50 = vperm.slane %v4215_v28, 2  ;;  %v207_v53 = vperm.slane %v191_v20, 1  ;;  %v236_v49 = vperm.slane %v4215_v28, 6  ;;  %v3700_v20 = vld [vmem:[#allocation3 + $0x64] sm:$0xf] }
 0x105   :  { %1831 = vmatmul.bf16.vlgmr.msra.gmra.mxu0 %v4242_v21  ;;  %1844 = vmatmul.bf16.vlgmr.msra.gmra.mxu1 %v4244_v24  ;;  %v3150_v15 = vor.u32 %v3808_v27, %v3147_v29  ;;  %v175_v22 = vadd.f32 %v159_v8, %v150_v6  ;;  %v176_v51 = vadd.f32 %v160_v17, %v151_v13  ;;  %v3131_v17 = vld [vmem:[#allocation3 + $0x3b0] sm:$0xf0]  ;;  %v3800_v13 = vld [vmem:[#allocation3 + $0x384] sm:$0xf] }
 0x106   :  { %1857 = vmatmul.bf16.vlgmr.msra.gmra.mxu2 %v4246_v25  ;;  %1870 = vmatmul.bf16.vlgmr.msra.gmra.mxu3 %v4248_v26  ;;  %v178_v8 = vadd.f32 %v162_v35, %v153_v34  ;;  %v2878_v38 = vor.u32 %v3740_v37, %v2875_v18  ;;  %v212_v63 = vmul.f32 %v204_v42, %v4165_v43  ;;  %v252_v56 = vperm.slane %v236_v49, 2  ;;  %v3764_v37 = vld [vmem:[#allocation3 + $0x264] sm:$0xf]  ;;  %v2971_v42 = vld [vmem:[#allocation3 + $0x270] sm:$0xf0] }
 0x107   :  { %1927 = vmatpush.bf16.msra.mxu0 %v2782_v7  ;;  %1940 = vmatpush.bf16.msra.mxu1 %v2910_v9  ;;  %v177_v7 = vadd.f32 %v161_v31, %v152_v12  ;;  %v3804_v9 = vld [vmem:[#allocation3 + $0x3a4] sm:$0xf]  ;;  %v213_v0 = vmul.f32 %v205_v45, %v4165_v43  ;;  %v214_v4 = vmul.f32 %v206_v48, %v4165_v43  ;;  %v2843_v31 = vld [vmem:[#allocation3 + $0x170] sm:$0xf0] }
 0x108   :  { %1953 = vmatpush.bf16.msra.mxu2 %v3038_v11  ;;  %1966 = vmatpush.bf16.msra.mxu3 %v3166_v14  ;;  %v250_v11 = vperm.slane %v234_v47, 2  ;;  %v251_v14 = vperm.slane %v235_v50, 2  ;;  %v215_v28 = vmul.f32 %v207_v53, %v4165_v43  ;;  %v3006_v52 = vor.u32 %v3772_v59, %v3003_v60  ;;  %v2987_v43 = vld [vmem:[#allocation3 + $0x290] sm:$0xf0]  ;;  %v3732_v12 = vld [vmem:[#allocation3 + $0x164] sm:$0xf] }
 0x109   :  { %v220_v44 = vadd.f32 %v212_v63, %v175_v22  ;;  %v221_v2 = vadd.f32 %v213_v0, %v176_v51  ;;  %v3134_v46 = vor.u32 %v3804_v9, %v3131_v17  ;;  %v222_v58 = vadd.f32 %v214_v4, %v177_v7  ;;  %v3796_v45 = vld [vmem:[#allocation3 + $0x364] sm:$0xf]  ;;  %v3099_v47 = vld [vmem:[#allocation3 + $0x370] sm:$0xf0] }
 0x10a   :  { %v223_v6 = vadd.f32 %v215_v28, %v178_v8  ;;  %v258_v40 = vmul.f32 %v250_v11, %v4210_v23  ;;  %v260_v19 = vmul.f32 %v252_v56, %v4210_v23  ;;  %v2990_v27 = vor.u32 %v3768_v5, %v2987_v43  ;;  %v3696_v49 = vld [vmem:[#allocation3 + $0x44] sm:$0xf]  ;;  %v2827_v60 = vld [vmem:[#allocation3 + $0x150] sm:$0xf0] }
 0x10b   :  { %1928 = vmatpush.bf16.msra.mxu0 %v2766_v54  ;;  %1941 = vmatpush.bf16.msra.mxu1 %v2894_v55  ;;  %v2862_v54 = vor.u32 %v3736_v61, %v2859_v1  ;;  %v259_v55 = vmul.f32 %v251_v14, %v4210_v23  ;;  %v265_v29 = vadd.f32 %v257_v39, %v220_v44  ;;  %v3728_v59 = vld [vmem:[#allocation3 + $0x144] sm:$0xf]  ;;  %v2955_v7 = vld [vmem:[#allocation3 + $0x250] sm:$0xf0] }
 0x10c   :  { %1954 = vmatpush.bf16.msra.mxu2 %v3022_v36  ;;  %1967 = vmatpush.bf16.msra.mxu3 %v3150_v15  ;;  %v266_v32 = vadd.f32 %v258_v40, %v221_v2  ;;  %v3118_v34 = vor.u32 %v3800_v13, %v3115_v30  ;;  %v268_v36 = vadd.f32 %v260_v19, %v223_v6  ;;  %v2699_v15 = vld [vmem:[#allocation3 + $0x50] sm:$0xf0]  ;;  %v3792_v8 = vld [vmem:[#allocation3 + $0x344] sm:$0xf] }
 0x10d   :  { %v267_v35 = vadd.f32 %v259_v55, %v222_v58  ;;  %v2718_v18 = vor.u32 %v3700_v20, %v2715_v33  ;;  %v2846_v23 = vor.u32 %v3732_v12, %v2843_v31  ;;  %v4301_v48 = vpack.c.bf16 %v265_v29, %v265_v29  ;;  %v3692_v63 = vld [vmem:[#allocation3 + $0x24] sm:$0xf]  ;;  %v2683_v0 = vld [vmem:[#allocation3 + $0x30] sm:$0xf0] }
 0x10e   :  { %v4303_v50 = vpack.c.bf16 %v266_v32, %v266_v32  ;;  %v2974_v53 = vor.u32 %v3764_v37, %v2971_v42  ;;  %v4307_v51 = vpack.c.bf16 %v268_v36, %v268_v36  ;;  %v2702_v9 = vor.u32 %v3696_v49, %v2699_v15  ;;  %v3724_v4 = vld [vmem:[#allocation3 + $0x124] sm:$0xf]  ;;  %v2811_v14 = vld [vmem:[#allocation3 + $0x130] sm:$0xf0] }
 0x10f   :  { %1929 = vmatpush.bf16.msra.mxu0 %v2750_v57  ;;  %1942 = vmatpush.bf16.msra.mxu1 %v2878_v38  ;;  %v4305_v22 = vpack.c.bf16 %v267_v35, %v267_v35  ;;  %v3102_v57 = vor.u32 %v3796_v45, %v3099_v47  ;;  %v3083_v38 = vld [vmem:[#allocation3 + $0x350] sm:$0xf0]  ;;  %v2830_v17 = vor.u32 %v3728_v59, %v2827_v60  ;;  %v3756_v28 = vld [vmem:[#allocation3 + $0x224] sm:$0xf] }
 0x110   :  { %1955 = vmatpush.bf16.msra.mxu2 %v3006_v52  ;;  %1968 = vmatpush.bf16.msra.mxu3 %v3134_v46  ;;  %v2958_v11 = vor.u32 %v3760_v62, %v2955_v7  ;;  %v3086_v3 = vor.u32 %v3792_v8, %v3083_v38  ;;  %v2939_v56 = vld [vmem:[#allocation3 + $0x230] sm:$0xf0]  ;;  %v3788_v52 = vld [vmem:[#allocation3 + $0x324] sm:$0xf]  ;;  %v2686_v1 = vor.u32 %v3692_v63, %v2683_v0 }
 0x111   :  { %v3688_v61 = vld [vmem:[#allocation3 + $0x4] sm:$0xf]  ;;  %v2814_v44 = vor.u32 %v3724_v4, %v2811_v14  ;;  %v2667_v2 = vld [vmem:[#allocation3 + $0x10] sm:$0xf0]  ;;  %v2942_v43 = vor.u32 %v3756_v28, %v2939_v56  ;;  %v3070_v58 = vor.u32 %v3788_v52, %v3067_v16 }
 0x112   :  { %v3720_v46 = vld [vmem:[#allocation3 + $0x104] sm:$0xf]  ;;  %v2795_v5 = vld [vmem:[#allocation3 + $0x110] sm:$0xf0]  ;;  %v2670_v20 = vor.u32 %v3688_v61, %v2667_v2 }
 0x113   :  { %1930 = vmatpush.bf16.msra.mxu0 %v2734_v41  ;;  %1943 = vmatpush.bf16.msra.mxu1 %v2862_v54  ;;  %v3752_v6 = vld [vmem:[#allocation3 + $0x204] sm:$0xf]  ;;  %v2923_v13 = vld [vmem:[#allocation3 + $0x210] sm:$0xf0] }
 0x114   :  { %1956 = vmatpush.bf16.msra.mxu2 %v2990_v27  ;;  %1969 = vmatpush.bf16.msra.mxu3 %v3118_v34  ;;  %v3784_v30 = vld [vmem:[#allocation3 + $0x304] sm:$0xf]  ;;  %v3051_v39 = vld [vmem:[#allocation3 + $0x310] sm:$0xf0]  ;;  %v2798_v27 = vor.u32 %v3720_v46, %v2795_v5  ;;  %v2926_v12 = vor.u32 %v3752_v6, %v2923_v13 }
 0x115   :  { %1883 = vmatmul.bf16.vlgmr.msrb.gmra.mxu0 %v4301_v48  ;;  %1896 = vmatmul.bf16.vlgmr.msrb.gmra.mxu1 %v4303_v50  ;;  %v3844_v40 = vld [vmem:[#allocation3 + $0x4e4] sm:$0xf]  ;;  %v3291_v41 = vld [vmem:[#allocation3 + $0x4f0] sm:$0xf0]  ;;  %v3054_v31 = vor.u32 %v3784_v30, %v3051_v39 }
 0x116   :  { %1909 = vmatmul.bf16.vlgmr.msrb.gmra.mxu2 %v4305_v22  ;;  %1922 = vmatmul.bf16.vlgmr.msrb.gmra.mxu3 %v4307_v51  ;;  %v3876_v54 = vld [vmem:[#allocation3 + $0x5e4] sm:$0xf]  ;;  %v3419_v55 = vld [vmem:[#allocation3 + $0x5f0] sm:$0xf0]  ;;  %v3294_v34 = vor.u32 %v3844_v40, %v3291_v41 }
 0x117   :  { %1931 = vmatpush.bf16.msra.mxu0 %v2718_v18  ;;  %1944 = vmatpush.bf16.msra.mxu1 %v2846_v23  ;;  %v3908_v19 = vld [vmem:[#allocation3 + $0x6e4] sm:$0xf]  ;;  %v3547_v29 = vld [vmem:[#allocation3 + $0x6f0] sm:$0xf0]  ;;  %v3422_v35 = vor.u32 %v3876_v54, %v3419_v55 }
 0x118   :  { %1957 = vmatpush.bf16.msra.mxu2 %v2974_v53  ;;  %1970 = vmatpush.bf16.msra.mxu3 %v3102_v57  ;;  %v3940_v32 = vld [vmem:[#allocation3 + $0x7e4] sm:$0xf]  ;;  %v3675_v33 = vld [vmem:[#allocation3 + $0x7f0] sm:$0xf0]  ;;  %v3550_v42 = vor.u32 %v3908_v19, %v3547_v29 }
 0x119   :  { %v3840_v36 = vld [vmem:[#allocation3 + $0x4c4] sm:$0xf]  ;;  %v3275_v37 = vld [vmem:[#allocation3 + $0x4d0] sm:$0xf0]  ;;  %v3678_v45 = vor.u32 %v3940_v32, %v3675_v33 }
 0x11a   :  { %v3872_v47 = vld [vmem:[#allocation3 + $0x5c4] sm:$0xf]  ;;  %v3403_v18 = vld [vmem:[#allocation3 + $0x5d0] sm:$0xf0]  ;;  %v3278_v57 = vor.u32 %v3840_v36, %v3275_v37 }
 0x11b   :  { %1932 = vmatpush.bf16.msra.mxu0 %v2702_v9  ;;  %1945 = vmatpush.bf16.msra.mxu1 %v2830_v17  ;;  %v3904_v23 = vld [vmem:[#allocation3 + $0x6c4] sm:$0xf]  ;;  %v3531_v53 = vld [vmem:[#allocation3 + $0x6d0] sm:$0xf0]  ;;  %v3406_v59 = vor.u32 %v3872_v47, %v3403_v18 }
 0x11c   :  { %1958 = vmatpush.bf16.msra.mxu2 %v2958_v11  ;;  %1971 = vmatpush.bf16.msra.mxu3 %v3086_v3  ;;  %v3936_v49 = vld [vmem:[#allocation3 + $0x7c4] sm:$0xf]  ;;  %v3659_v15 = vld [vmem:[#allocation3 + $0x7d0] sm:$0xf0]  ;;  %v3534_v7 = vor.u32 %v3904_v23, %v3531_v53 }
 0x11d   :  { %v3836_v60 = vld [vmem:[#allocation3 + $0x4a4] sm:$0xf]  ;;  %v3259_v62 = vld [vmem:[#allocation3 + $0x4b0] sm:$0xf0]  ;;  %v3662_v8 = vor.u32 %v3936_v49, %v3659_v15 }
 0x11e   :  { %v3868_v38 = vld [vmem:[#allocation3 + $0x5a4] sm:$0xf]  ;;  %v3387_v9 = vld [vmem:[#allocation3 + $0x5b0] sm:$0xf0]  ;;  %v3262_v3 = vor.u32 %v3836_v60, %v3259_v62 }
 0x11f   :  { %1933 = vmatpush.bf16.msra.mxu0 %v2686_v1  ;;  %1946 = vmatpush.bf16.msra.mxu1 %v2814_v44  ;;  %v3900_v17 = vld [vmem:[#allocation3 + $0x6a4] sm:$0xf]  ;;  %v3515_v63 = vld [vmem:[#allocation3 + $0x6b0] sm:$0xf0]  ;;  %v3390_v4 = vor.u32 %v3868_v38, %v3387_v9 }
 0x120   :  { %1959 = vmatpush.bf16.msra.mxu2 %v2942_v43  ;;  %1972 = vmatpush.bf16.msra.mxu3 %v3070_v58  ;;  %v3932_v0 = vld [vmem:[#allocation3 + $0x7a4] sm:$0xf]  ;;  %v3643_v11 = vld [vmem:[#allocation3 + $0x7b0] sm:$0xf0]  ;;  %v3518_v56 = vor.u32 %v3900_v17, %v3515_v63 }
 0x121   :  { %v3832_v14 = vld [vmem:[#allocation3 + $0x484] sm:$0xf]  ;;  %v3243_v28 = vld [vmem:[#allocation3 + $0x490] sm:$0xf0]  ;;  %v3646_v52 = vor.u32 %v3932_v0, %v3643_v11 }
 0x122   :  { %v3864_v16 = vld [vmem:[#allocation3 + $0x584] sm:$0xf]  ;;  %v3371_v61 = vld [vmem:[#allocation3 + $0x590] sm:$0xf0]  ;;  %v3246_v5 = vor.u32 %v3832_v14, %v3243_v28 }
 0x123   :  { %1934 = vmatpush.bf16.msra.mxu0 %v2670_v20  ;;  %1947 = vmatpush.bf16.msra.mxu1 %v2798_v27  ;;  %v3896_v1 = vld [vmem:[#allocation3 + $0x684] sm:$0xf]  ;;  %v3499_v44 = vld [vmem:[#allocation3 + $0x690] sm:$0xf0]  ;;  %v3374_v43 = vor.u32 %v3864_v16, %v3371_v61  ;;  %v3719_v16 = vld [vmem:[#allocation3 + $0xf4] sm:$0xf0] }
 0x124   :  { %1960 = vmatpush.bf16.msra.mxu2 %v2926_v12  ;;  %1973 = vmatpush.bf16.msra.mxu3 %v3054_v31  ;;  %v3928_v2 = vld [vmem:[#allocation3 + $0x784] sm:$0xf]  ;;  %v3627_v46 = vld [vmem:[#allocation3 + $0x790] sm:$0xf0]  ;;  %v3502_v13 = vor.u32 %v3896_v1, %v3499_v44  ;;  %v2913_v61 = vld [vmem:[#allocation3 + $0x1e8] sm:$0xf] }
 0x125   :  { %v3828_v58 = vld [vmem:[#allocation3 + $0x464] sm:$0xf]  ;;  %v3227_v6 = vld [vmem:[#allocation3 + $0x470] sm:$0xf0]  ;;  %v3630_v30 = vor.u32 %v3928_v2, %v3627_v46  ;;  %v3751_v1 = vld [vmem:[#allocation3 + $0x1f4] sm:$0xf0] }
 0x126   :  { %1935 = vmatmul.bf16.vlgmr.msra.gmra.mxu0 %v4242_v21  ;;  %1948 = vmatmul.bf16.vlgmr.msra.gmra.mxu1 %v4244_v24  ;;  %v3860_v39 = vld [vmem:[#allocation3 + $0x564] sm:$0xf]  ;;  %v3355_v40 = vld [vmem:[#allocation3 + $0x570] sm:$0xf0]  ;;  %v3230_v20 = vor.u32 %v3828_v58, %v3227_v6  ;;  %v3041_v44 = vld [vmem:[#allocation3 + $0x2e8] sm:$0xf] }
 0x127   :  { %1979 = vmatpush.bf16.msrb.mxu0 %v3294_v34  ;;  %1992 = vmatpush.bf16.msrb.mxu1 %v3422_v35  ;;  %v3892_v41 = vld [vmem:[#allocation3 + $0x664] sm:$0xf]  ;;  %v3483_v54 = vld [vmem:[#allocation3 + $0x670] sm:$0xf0]  ;;  %v3358_v27 = vor.u32 %v3860_v39, %v3355_v40  ;;  %v3815_v58 = vld [vmem:[#allocation3 + $0x3f4] sm:$0xf0]  ;;  %v2914_v39 = vor.u32 %v3751_v1, %v2913_v61 }
 0x128   :  { %2005 = vmatpush.bf16.msrb.mxu2 %v3550_v42  ;;  %2018 = vmatpush.bf16.msrb.mxu3 %v3678_v45  ;;  %v3924_v55 = vld [vmem:[#allocation3 + $0x764] sm:$0xf]  ;;  %v3611_v19 = vld [vmem:[#allocation3 + $0x770] sm:$0xf0]  ;;  %v3486_v33 = vor.u32 %v3892_v41, %v3483_v54  ;;  %v2769_v40 = vld [vmem:[#allocation3 + $0xc8] sm:$0xf] }
 0x129   :  { %1961 = vmatmul.bf16.vlgmr.msra.gmra.mxu2 %v4246_v25  ;;  %1974 = vmatmul.bf16.vlgmr.msra.gmra.mxu3 %v4248_v26  ;;  %v3824_v29 = vld [vmem:[#allocation3 + $0x444] sm:$0xf]  ;;  %v3211_v32 = vld [vmem:[#allocation3 + $0x450] sm:$0xf0]  ;;  %v3614_v12 = vor.u32 %v3924_v55, %v3611_v19  ;;  %v3715_v41 = vld [vmem:[#allocation3 + $0xd4] sm:$0xf0] }
 0x12a   :  { %v3856_v31 = vld [vmem:[#allocation3 + $0x544] sm:$0xf]  ;;  %v3339_v34 = vld [vmem:[#allocation3 + $0x550] sm:$0xf0]  ;;  %v3214_v45 = vor.u32 %v3824_v29, %v3211_v32  ;;  %v2897_v19 = vld [vmem:[#allocation3 + $0x1c8] sm:$0xf] }
 0x12b   :  { %1980 = vmatpush.bf16.msrb.mxu0 %v3278_v57  ;;  %1993 = vmatpush.bf16.msrb.mxu1 %v3406_v59  ;;  %v3888_v35 = vld [vmem:[#allocation3 + $0x644] sm:$0xf]  ;;  %v3467_v36 = vld [vmem:[#allocation3 + $0x650] sm:$0xf0]  ;;  %v3342_v47 = vor.u32 %v3856_v31, %v3339_v34  ;;  %v3779_v29 = vld [vmem:[#allocation3 + $0x2d4] sm:$0xf0] }
 0x12c   :  { %2006 = vmatpush.bf16.msrb.mxu2 %v3534_v7  ;;  %2019 = vmatpush.bf16.msrb.mxu3 %v3662_v8  ;;  %v3920_v37 = vld [vmem:[#allocation3 + $0x744] sm:$0xf]  ;;  %v3595_v42 = vld [vmem:[#allocation3 + $0x750] sm:$0xf0]  ;;  %v3470_v53 = vor.u32 %v3888_v35, %v3467_v36  ;;  %v3153_v32 = vld [vmem:[#allocation3 + $0x3c8] sm:$0xf] }
 0x12d   :  { %v3820_v18 = vld [vmem:[#allocation3 + $0x424] sm:$0xf]  ;;  %v3195_v23 = vld [vmem:[#allocation3 + $0x430] sm:$0xf0]  ;;  %v3598_v49 = vor.u32 %v3920_v37, %v3595_v42  ;;  %v2753_v34 = vld [vmem:[#allocation3 + $0xa8] sm:$0xf] }
 0x12e   :  { %v3852_v15 = vld [vmem:[#allocation3 + $0x524] sm:$0xf]  ;;  %v3323_v57 = vld [vmem:[#allocation3 + $0x530] sm:$0xf0]  ;;  %v3198_v38 = vor.u32 %v3820_v18, %v3195_v23  ;;  %v3711_v35 = vld [vmem:[#allocation3 + $0xb4] sm:$0xf0] }
 0x12f   :  { %1981 = vmatpush.bf16.msrb.mxu0 %v3262_v3  ;;  %1994 = vmatpush.bf16.msrb.mxu1 %v3390_v4  ;;  %v3884_v59 = vld [vmem:[#allocation3 + $0x624] sm:$0xf]  ;;  %v3451_v60 = vld [vmem:[#allocation3 + $0x630] sm:$0xf0]  ;;  %v3326_v9 = vor.u32 %v3852_v15, %v3323_v57  ;;  %v2881_v42 = vld [vmem:[#allocation3 + $0x1a8] sm:$0xf] }
 0x130   :  { %2007 = vmatpush.bf16.msrb.mxu2 %v3518_v56  ;;  %2020 = vmatpush.bf16.msrb.mxu3 %v3646_v52  ;;  %v3916_v62 = vld [vmem:[#allocation3 + $0x724] sm:$0xf]  ;;  %v3579_v7 = vld [vmem:[#allocation3 + $0x730] sm:$0xf0]  ;;  %v3454_v11 = vor.u32 %v3884_v59, %v3451_v60  ;;  %v2785_v52 = vld [vmem:[#allocation3 + $0xe8] sm:$0xf] }
 0x131   :  { %v3816_v8 = vld [vmem:[#allocation3 + $0x404] sm:$0xf]  ;;  %v3179_v17 = vld [vmem:[#allocation3 + $0x410] sm:$0xf0]  ;;  %v3582_v3 = vor.u32 %v3916_v62, %v3579_v7  ;;  %v3775_v18 = vld [vmem:[#allocation3 + $0x2b4] sm:$0xf0] }
 0x132   :  { %v3848_v63 = vld [vmem:[#allocation3 + $0x504] sm:$0xf]  ;;  %v3307_v0 = vld [vmem:[#allocation3 + $0x510] sm:$0xf0]  ;;  %v3182_v2 = vor.u32 %v3816_v8, %v3179_v17  ;;  %v3137_v23 = vld [vmem:[#allocation3 + $0x3a8] sm:$0xf] }
 0x133   :  { %1982 = vmatpush.bf16.msrb.mxu0 %v3246_v5  ;;  %1995 = vmatpush.bf16.msrb.mxu1 %v3374_v43  ;;  %v3880_v4 = vld [vmem:[#allocation3 + $0x604] sm:$0xf]  ;;  %v3435_v14 = vld [vmem:[#allocation3 + $0x610] sm:$0xf0]  ;;  %v3310_v46 = vor.u32 %v3848_v63, %v3307_v0  ;;  %v3783_v5 = vld [vmem:[#allocation3 + $0x2f4] sm:$0xf0] }
 0x134   :  { %2008 = vmatpush.bf16.msrb.mxu2 %v3502_v13  ;;  %2021 = vmatpush.bf16.msrb.mxu3 %v3630_v30  ;;  %v3912_v28 = vld [vmem:[#allocation3 + $0x704] sm:$0xf]  ;;  %v3563_v56 = vld [vmem:[#allocation3 + $0x710] sm:$0xf0]  ;;  %v3169_v43 = vld [vmem:[#allocation3 + $0x3e8] sm:$0xf]  ;;  %v3438_v6 = vor.u32 %v3880_v4, %v3435_v14  ;;  %v2786_v30 = vor.u32 %v3719_v16, %v2785_v52  ;;  %v3042_v54 = vor.u32 %v3783_v5, %v3041_v44 }
 0x135   :  { %v3566_v13 = vor.u32 %v3912_v28, %v3563_v56  ;;  %v3170_v55 = vor.u32 %v3815_v58, %v3169_v43  ;;  %v2737_v57 = vld [vmem:[#allocation3 + $0x88] sm:$0xf]  ;;  %v3707_v59 = vld [vmem:[#allocation3 + $0x94] sm:$0xf0] }
 0x136   :  { %v2865_v7 = vld [vmem:[#allocation3 + $0x188] sm:$0xf]  ;;  %v3739_v8 = vld [vmem:[#allocation3 + $0x194] sm:$0xf0]  ;;  %v2738_v0 = vor.u32 %v3707_v59, %v2737_v57 }
 0x137   :  { %1983 = vmatpush.bf16.msrb.mxu0 %v3230_v20  ;;  %1996 = vmatpush.bf16.msrb.mxu1 %v3358_v27  ;;  %v3747_v20 = vld [vmem:[#allocation3 + $0x1d4] sm:$0xf0]  ;;  %v3025_v27 = vld [vmem:[#allocation3 + $0x2c8] sm:$0xf] }
 0x138   :  { %2009 = vmatpush.bf16.msrb.mxu2 %v3486_v33  ;;  %2022 = vmatpush.bf16.msrb.mxu3 %v3614_v12  ;;  %v3811_v33 = vld [vmem:[#allocation3 + $0x3d4] sm:$0xf0]  ;;  %v2770_v12 = vor.u32 %v3715_v41, %v2769_v40  ;;  %v2898_v31 = vor.u32 %v3747_v20, %v2897_v19  ;;  %v3026_v36 = vor.u32 %v3779_v29, %v3025_v27  ;;  %v3121_v17 = vld [vmem:[#allocation3 + $0x388] sm:$0xf] }
 0x139   :  { %v3154_v37 = vor.u32 %v3811_v33, %v3153_v32  ;;  %v3803_v63 = vld [vmem:[#allocation3 + $0x394] sm:$0xf0]  ;;  %v2849_v56 = vld [vmem:[#allocation3 + $0x168] sm:$0xf] }
 0x13a   :  { %v3703_v4 = vld [vmem:[#allocation3 + $0x74] sm:$0xf0]  ;;  %v3122_v28 = vor.u32 %v3803_v63, %v3121_v17  ;;  %v2977_v16 = vld [vmem:[#allocation3 + $0x268] sm:$0xf] }
 0x13b   :  { %1984 = vmatpush.bf16.msrb.mxu0 %v3214_v45  ;;  %1997 = vmatpush.bf16.msrb.mxu1 %v3342_v47  ;;  %v3743_v45 = vld [vmem:[#allocation3 + $0x1b4] sm:$0xf0]  ;;  %v3009_v47 = vld [vmem:[#allocation3 + $0x2a8] sm:$0xf] }
 0x13c   :  { %2010 = vmatpush.bf16.msrb.mxu2 %v3470_v53  ;;  %2023 = vmatpush.bf16.msrb.mxu3 %v3598_v49  ;;  %v3807_v53 = vld [vmem:[#allocation3 + $0x3b4] sm:$0xf0]  ;;  %v2754_v49 = vor.u32 %v3711_v35, %v2753_v34  ;;  %v2882_v15 = vor.u32 %v3743_v45, %v2881_v42  ;;  %v3010_v60 = vor.u32 %v3775_v18, %v3009_v47  ;;  %v3105_v1 = vld [vmem:[#allocation3 + $0x368] sm:$0xf] }
 0x13d   :  { %v3138_v62 = vor.u32 %v3807_v53, %v3137_v23  ;;  %v3735_v52 = vld [vmem:[#allocation3 + $0x174] sm:$0xf0]  ;;  %v2705_v5 = vld [vmem:[#allocation3 + $0x48] sm:$0xf] }
 0x13e   :  { %v3767_v61 = vld [vmem:[#allocation3 + $0x274] sm:$0xf0]  ;;  %v3089_v41 = vld [vmem:[#allocation3 + $0x348] sm:$0xf] }
 0x13f   :  { %1985 = vmatpush.bf16.msrb.mxu0 %v3198_v38  ;;  %1998 = vmatpush.bf16.msrb.mxu1 %v3326_v9  ;;  %v2993_v38 = vld [vmem:[#allocation3 + $0x288] sm:$0xf]  ;;  %v3771_v9 = vld [vmem:[#allocation3 + $0x294] sm:$0xf0]  ;;  %v2978_v58 = vor.u32 %v3767_v61, %v2977_v16 }
 0x140   :  { %2011 = vmatpush.bf16.msrb.mxu2 %v3454_v11  ;;  %2024 = vmatpush.bf16.msrb.mxu3 %v3582_v3  ;;  %v2866_v11 = vor.u32 %v3739_v8, %v2865_v7  ;;  %v2721_v3 = vld [vmem:[#allocation3 + $0x68] sm:$0xf]  ;;  %v2994_v14 = vor.u32 %v3771_v9, %v2993_v38  ;;  %v3799_v44 = vld [vmem:[#allocation3 + $0x374] sm:$0xf0] }
 0x141   :  { %v3699_v43 = vld [vmem:[#allocation3 + $0x54] sm:$0xf0]  ;;  %v2689_v20 = vld [vmem:[#allocation3 + $0x28] sm:$0xf] }
 0x142   :  { %v3763_v40 = vld [vmem:[#allocation3 + $0x254] sm:$0xf0]  ;;  %v2817_v33 = vld [vmem:[#allocation3 + $0x128] sm:$0xf] }
 0x143   :  { %1986 = vmatpush.bf16.msrb.mxu0 %v3182_v2  ;;  %1999 = vmatpush.bf16.msrb.mxu1 %v3310_v46  ;;  %v2722_v2 = vor.u32 %v3703_v4, %v2721_v3  ;;  %v2850_v46 = vor.u32 %v3735_v52, %v2849_v56  ;;  %v3695_v27 = vld [vmem:[#allocation3 + $0x34] sm:$0xf0]  ;;  %v3073_v35 = vld [vmem:[#allocation3 + $0x328] sm:$0xf] }
 0x144   :  { %2012 = vmatpush.bf16.msrb.mxu2 %v3438_v6  ;;  %2025 = vmatpush.bf16.msrb.mxu3 %v3566_v13  ;;  %v3106_v6 = vor.u32 %v3799_v44, %v3105_v1  ;;  %v2833_v13 = vld [vmem:[#allocation3 + $0x148] sm:$0xf]  ;;  %v3759_v34 = vld [vmem:[#allocation3 + $0x234] sm:$0xf0]  ;;  %v2690_v42 = vor.u32 %v3695_v27, %v2689_v20 }
 0x145   :  { %v3691_v47 = vld [vmem:[#allocation3 + $0x14] sm:$0xf0]  ;;  %v2801_v18 = vld [vmem:[#allocation3 + $0x108] sm:$0xf] }
 0x146   :  { %1987 = vmatmul.bf16.vlgmr.msrb.gmra.mxu0 %v4301_v48  ;;  %2000 = vmatmul.bf16.vlgmr.msrb.gmra.mxu1 %v4303_v50  ;;  %v3723_v23 = vld [vmem:[#allocation3 + $0x114] sm:$0xf0]  ;;  %v3057_v59 = vld [vmem:[#allocation3 + $0x308] sm:$0xf] }
 0x147   :  { %2031 = vmatpush.bf16.msra.mxu0 %v2786_v30  ;;  %2044 = vmatpush.bf16.msra.mxu1 %v2914_v39  ;;  %v3731_v30 = vld [vmem:[#allocation3 + $0x154] sm:$0xf0]  ;;  %v2961_v39 = vld [vmem:[#allocation3 + $0x248] sm:$0xf]  ;;  %v2802_v63 = vor.u32 %v3723_v23, %v2801_v18 }
 0x148   :  { %2057 = vmatpush.bf16.msra.mxu2 %v3042_v54  ;;  %2070 = vmatpush.bf16.msra.mxu3 %v3170_v55  ;;  %v3795_v54 = vld [vmem:[#allocation3 + $0x354] sm:$0xf0]  ;;  %v2706_v55 = vor.u32 %v3699_v43, %v2705_v5  ;;  %v2834_v19 = vor.u32 %v3731_v30, %v2833_v13  ;;  %v2962_v29 = vor.u32 %v3763_v40, %v2961_v39  ;;  %v3425_v8 = vld [vmem:[#allocation3 + $0x5e8] sm:$0xf] }
 0x149   :  { %2013 = vmatmul.bf16.vlgmr.msrb.gmra.mxu2 %v4305_v22  ;;  %2026 = vmatmul.bf16.vlgmr.msrb.gmra.mxu3 %v4307_v51  ;;  %v3090_v32 = vor.u32 %v3795_v54, %v3089_v41  ;;  %v3755_v57 = vld [vmem:[#allocation3 + $0x214] sm:$0xf0]  ;;  %v3553_v9 = vld [vmem:[#allocation3 + $0x6e8] sm:$0xf] }
 0x14a   :  { %v3847_v7 = vld [vmem:[#allocation3 + $0x4f4] sm:$0xf0]  ;;  %v3281_v52 = vld [vmem:[#allocation3 + $0x4c8] sm:$0xf] }
 0x14b   :  { %2032 = vmatpush.bf16.msra.mxu0 %v2770_v12  ;;  %2045 = vmatpush.bf16.msra.mxu1 %v2898_v31  ;;  %v3727_v12 = vld [vmem:[#allocation3 + $0x134] sm:$0xf0]  ;;  %v2945_v31 = vld [vmem:[#allocation3 + $0x228] sm:$0xf] }
 0x14c   :  { %2058 = vmatpush.bf16.msra.mxu2 %v3026_v36  ;;  %2071 = vmatpush.bf16.msra.mxu3 %v3154_v37  ;;  %v3791_v36 = vld [vmem:[#allocation3 + $0x334] sm:$0xf0]  ;;  %v2673_v37 = vld [vmem:[#allocation3 + $0x8] sm:$0xf]  ;;  %v2818_v45 = vor.u32 %v3727_v12, %v2817_v33  ;;  %v2946_v53 = vor.u32 %v3759_v34, %v2945_v31 }
 0x14d   :  { %v3879_v38 = vld [vmem:[#allocation3 + $0x5f4] sm:$0xf0]  ;;  %v2674_v17 = vor.u32 %v3691_v47, %v2673_v37  ;;  %v3409_v44 = vld [vmem:[#allocation3 + $0x5c8] sm:$0xf] }
 0x14e   :  { %v3943_v3 = vld [vmem:[#allocation3 + $0x7f4] sm:$0xf0]  ;;  %v3426_v56 = vor.u32 %v3879_v38, %v3425_v8  ;;  %v3665_v43 = vld [vmem:[#allocation3 + $0x7c8] sm:$0xf] }
 0x14f   :  { %2033 = vmatpush.bf16.msra.mxu0 %v2754_v49  ;;  %2046 = vmatpush.bf16.msra.mxu1 %v2882_v15  ;;  %v3074_v49 = vor.u32 %v3791_v36, %v3073_v35  ;;  %v2929_v15 = vld [vmem:[#allocation3 + $0x208] sm:$0xf]  ;;  %v3843_v16 = vld [vmem:[#allocation3 + $0x4d4] sm:$0xf0] }
 0x150   :  { %2059 = vmatpush.bf16.msra.mxu2 %v3010_v60  ;;  %2072 = vmatpush.bf16.msra.mxu3 %v3138_v62  ;;  %v3787_v60 = vld [vmem:[#allocation3 + $0x314] sm:$0xf0]  ;;  %v3297_v62 = vld [vmem:[#allocation3 + $0x4e8] sm:$0xf]  ;;  %v2930_v4 = vor.u32 %v3755_v57, %v2929_v15 }
 0x151   :  { %v3907_v5 = vld [vmem:[#allocation3 + $0x6d4] sm:$0xf0]  ;;  %v3265_v30 = vld [vmem:[#allocation3 + $0x4a8] sm:$0xf] }
 0x152   :  { %v3839_v39 = vld [vmem:[#allocation3 + $0x4b4] sm:$0xf0]  ;;  %v3393_v54 = vld [vmem:[#allocation3 + $0x5a8] sm:$0xf] }
 0x153   :  { %2034 = vmatpush.bf16.msra.mxu0 %v2738_v0  ;;  %2047 = vmatpush.bf16.msra.mxu1 %v2866_v11  ;;  %v3911_v0 = vld [vmem:[#allocation3 + $0x6f4] sm:$0xf0]  ;;  %v3681_v11 = vld [vmem:[#allocation3 + $0x7e8] sm:$0xf] }
 0x154   :  { %2060 = vmatpush.bf16.msra.mxu2 %v2994_v14  ;;  %2073 = vmatpush.bf16.msra.mxu3 %v3122_v28  ;;  %v3058_v14 = vor.u32 %v3787_v60, %v3057_v59  ;;  %v3298_v28 = vor.u32 %v3847_v7, %v3297_v62  ;;  %v3554_v61 = vor.u32 %v3911_v0, %v3553_v9  ;;  %v3903_v20 = vld [vmem:[#allocation3 + $0x6b4] sm:$0xf0]  ;;  %v3649_v27 = vld [vmem:[#allocation3 + $0x7a8] sm:$0xf] }
 0x155   :  { %v3682_v1 = vor.u32 %v3943_v3, %v3681_v11  ;;  %v3249_v12 = vld [vmem:[#allocation3 + $0x488] sm:$0xf]  ;;  %v3835_v31 = vld [vmem:[#allocation3 + $0x494] sm:$0xf0] }
 0x156   :  { %v3377_v36 = vld [vmem:[#allocation3 + $0x588] sm:$0xf]  ;;  %v3867_v37 = vld [vmem:[#allocation3 + $0x594] sm:$0xf0]  ;;  %v3250_v23 = vor.u32 %v3835_v31, %v3249_v12 }
 0x157   :  { %2035 = vmatpush.bf16.msra.mxu0 %v2722_v2  ;;  %2048 = vmatpush.bf16.msra.mxu1 %v2850_v46  ;;  %v3875_v2 = vld [vmem:[#allocation3 + $0x5d4] sm:$0xf0]  ;;  %v3537_v46 = vld [vmem:[#allocation3 + $0x6c8] sm:$0xf] }
 0x158   :  { %2061 = vmatpush.bf16.msra.mxu2 %v2978_v58  ;;  %2074 = vmatpush.bf16.msra.mxu3 %v3106_v6  ;;  %v3939_v58 = vld [vmem:[#allocation3 + $0x7d4] sm:$0xf0]  ;;  %v3282_v6 = vor.u32 %v3843_v16, %v3281_v52  ;;  %v3410_v13 = vor.u32 %v3875_v2, %v3409_v44  ;;  %v3538_v40 = vor.u32 %v3907_v5, %v3537_v46  ;;  %v3633_v47 = vld [vmem:[#allocation3 + $0x788] sm:$0xf] }
 0x159   :  { %v3666_v41 = vor.u32 %v3939_v58, %v3665_v43  ;;  %v3931_v18 = vld [vmem:[#allocation3 + $0x794] sm:$0xf0]  ;;  %v3361_v60 = vld [vmem:[#allocation3 + $0x568] sm:$0xf] }
 0x15a   :  { %v3831_v15 = vld [vmem:[#allocation3 + $0x474] sm:$0xf0]  ;;  %v3634_v59 = vor.u32 %v3931_v18, %v3633_v47  ;;  %v3489_v7 = vld [vmem:[#allocation3 + $0x668] sm:$0xf] }
 0x15b   :  { %2036 = vmatpush.bf16.msra.mxu0 %v2706_v55  ;;  %2049 = vmatpush.bf16.msra.mxu1 %v2834_v19  ;;  %v3871_v55 = vld [vmem:[#allocation3 + $0x5b4] sm:$0xf0]  ;;  %v3521_v19 = vld [vmem:[#allocation3 + $0x6a8] sm:$0xf] }
 0x15c   :  { %2062 = vmatpush.bf16.msra.mxu2 %v2962_v29  ;;  %2075 = vmatpush.bf16.msra.mxu3 %v3090_v32  ;;  %v3935_v29 = vld [vmem:[#allocation3 + $0x7b4] sm:$0xf0]  ;;  %v3266_v32 = vor.u32 %v3839_v39, %v3265_v30  ;;  %v3394_v33 = vor.u32 %v3871_v55, %v3393_v54  ;;  %v3522_v34 = vor.u32 %v3903_v20, %v3521_v19  ;;  %v3617_v38 = vld [vmem:[#allocation3 + $0x768] sm:$0xf] }
 0x15d   :  { %v3650_v35 = vor.u32 %v3935_v29, %v3649_v27  ;;  %v3863_v62 = vld [vmem:[#allocation3 + $0x574] sm:$0xf0]  ;;  %v3217_v0 = vld [vmem:[#allocation3 + $0x448] sm:$0xf] }
 0x15e   :  { %v3895_v8 = vld [vmem:[#allocation3 + $0x674] sm:$0xf0]  ;;  %v3601_v16 = vld [vmem:[#allocation3 + $0x748] sm:$0xf] }
 0x15f   :  { %2037 = vmatpush.bf16.msra.mxu0 %v2690_v42  ;;  %2050 = vmatpush.bf16.msra.mxu1 %v2818_v45  ;;  %v3505_v42 = vld [vmem:[#allocation3 + $0x688] sm:$0xf]  ;;  %v3899_v45 = vld [vmem:[#allocation3 + $0x694] sm:$0xf0]  ;;  %v3490_v3 = vor.u32 %v3895_v8, %v3489_v7  ;;  %v2771_v7 = vld [vmem:[#allocation3 + $0xd8] sm:$0xf0] }
 0x160   :  { %2063 = vmatpush.bf16.msra.mxu2 %v2946_v53  ;;  %2076 = vmatpush.bf16.msra.mxu3 %v3074_v49  ;;  %v3378_v53 = vor.u32 %v3867_v37, %v3377_v36  ;;  %v3233_v49 = vld [vmem:[#allocation3 + $0x468] sm:$0xf]  ;;  %v3506_v57 = vor.u32 %v3899_v45, %v3505_v42  ;;  %v3927_v9 = vld [vmem:[#allocation3 + $0x774] sm:$0xf0]  ;;  %v2787_v36 = vld [vmem:[#allocation3 + $0xf8] sm:$0xf0] }
 0x161   :  { %v3827_v11 = vld [vmem:[#allocation3 + $0x454] sm:$0xf0]  ;;  %v3201_v2 = vld [vmem:[#allocation3 + $0x428] sm:$0xf]  ;;  %v3749_v37 = vld [vmem:[#allocation3 + $0x1ec] sm:$0xf] }
 0x162   :  { %v3891_v52 = vld [vmem:[#allocation3 + $0x654] sm:$0xf0]  ;;  %v3329_v58 = vld [vmem:[#allocation3 + $0x528] sm:$0xf]  ;;  %v2915_v42 = vld [vmem:[#allocation3 + $0x1f8] sm:$0xf0] }
 0x163   :  { %2038 = vmatpush.bf16.msra.mxu0 %v2674_v17  ;;  %2051 = vmatpush.bf16.msra.mxu1 %v2802_v63  ;;  %v3234_v17 = vor.u32 %v3831_v15, %v3233_v49  ;;  %v3362_v63 = vor.u32 %v3863_v62, %v3361_v60  ;;  %v3823_v46 = vld [vmem:[#allocation3 + $0x434] sm:$0xf0]  ;;  %v3585_v39 = vld [vmem:[#allocation3 + $0x728] sm:$0xf]  ;;  %v3781_v45 = vld [vmem:[#allocation3 + $0x2ec] sm:$0xf]  ;;  %v2918_v60 = vor.u32 %v3749_v37, %v2915_v42 }
 0x164   :  { %2064 = vmatpush.bf16.msra.mxu2 %v2930_v4  ;;  %2077 = vmatpush.bf16.msra.mxu3 %v3058_v14  ;;  %v3618_v4 = vor.u32 %v3927_v9, %v3617_v38  ;;  %v3345_v14 = vld [vmem:[#allocation3 + $0x548] sm:$0xf]  ;;  %v3887_v30 = vld [vmem:[#allocation3 + $0x634] sm:$0xf0]  ;;  %v3202_v54 = vor.u32 %v3823_v46, %v3201_v2  ;;  %v3171_v49 = vld [vmem:[#allocation3 + $0x3f8] sm:$0xf0] }
 0x165   :  { %v3819_v19 = vld [vmem:[#allocation3 + $0x414] sm:$0xf0]  ;;  %v3313_v20 = vld [vmem:[#allocation3 + $0x508] sm:$0xf]  ;;  %v3713_v62 = vld [vmem:[#allocation3 + $0xcc] sm:$0xf] }
 0x166   :  { %2039 = vmatmul.bf16.vlgmr.msra.gmra.mxu0 %v4242_v21  ;;  %2052 = vmatmul.bf16.vlgmr.msra.gmra.mxu1 %v4244_v24  ;;  %v3851_v27 = vld [vmem:[#allocation3 + $0x514] sm:$0xf0]  ;;  %v3569_v31 = vld [vmem:[#allocation3 + $0x708] sm:$0xf]  ;;  %v3745_v8 = vld [vmem:[#allocation3 + $0x1cc] sm:$0xf] }
 0x167   :  { %2083 = vmatpush.bf16.msrb.mxu0 %v3298_v28  ;;  %2096 = vmatpush.bf16.msrb.mxu1 %v3426_v56  ;;  %v3859_v28 = vld [vmem:[#allocation3 + $0x554] sm:$0xf0]  ;;  %v3473_v56 = vld [vmem:[#allocation3 + $0x648] sm:$0xf]  ;;  %v3314_v18 = vor.u32 %v3851_v27, %v3313_v20  ;;  %v2883_v2 = vld [vmem:[#allocation3 + $0x1b8] sm:$0xf0] }
 0x168   :  { %2109 = vmatpush.bf16.msrb.mxu2 %v3554_v61  ;;  %2122 = vmatpush.bf16.msrb.mxu3 %v3682_v1  ;;  %v3923_v61 = vld [vmem:[#allocation3 + $0x754] sm:$0xf0]  ;;  %v3218_v1 = vor.u32 %v3827_v11, %v3217_v0  ;;  %v3346_v44 = vor.u32 %v3859_v28, %v3345_v14  ;;  %v3474_v5 = vor.u32 %v3891_v52, %v3473_v56  ;;  %v4328_v0 = vld [vmem:[%s4641_s5] sm:$0xf]  ;;  %v3027_v11 = vld [vmem:[#allocation3 + $0x2d8] sm:$0xf0] }
 0x169   :  { %2065 = vmatmul.bf16.vlgmr.msra.gmra.mxu2 %v4246_v25  ;;  %2078 = vmatmul.bf16.vlgmr.msra.gmra.mxu3 %v4248_v26  ;;  %v3602_v43 = vor.u32 %v3923_v61, %v3601_v16  ;;  %v3883_v12 = vld [vmem:[#allocation3 + $0x614] sm:$0xf0]  ;;  %v2774_v14 = vor.u32 %v3713_v62, %v2771_v7  ;;  %v3709_v56 = vld [vmem:[#allocation3 + $0xac] sm:$0xf]  ;;  %v2755_v52 = vld [vmem:[#allocation3 + $0xb8] sm:$0xf0] }
 0x16a   :  { %v535_v16 = vperm.slane %v4328_v0, 0  ;;  %v3773_v46 = vld [vmem:[#allocation3 + $0x2ac] sm:$0xf]  ;;  %v2867_v27 = vld [vmem:[#allocation3 + $0x198] sm:$0xf0] }
 0x16b   :  { %2084 = vmatpush.bf16.msrb.mxu0 %v3282_v6  ;;  %2097 = vmatpush.bf16.msrb.mxu1 %v3410_v13  ;;  %v3855_v6 = vld [vmem:[#allocation3 + $0x534] sm:$0xf0]  ;;  %v3457_v13 = vld [vmem:[#allocation3 + $0x628] sm:$0xf]  ;;  %v3737_v20 = vld [vmem:[#allocation3 + $0x18c] sm:$0xf] }
 0x16c   :  { %2110 = vmatpush.bf16.msrb.mxu2 %v3538_v40  ;;  %2123 = vmatpush.bf16.msrb.mxu3 %v3666_v41  ;;  %v3919_v40 = vld [vmem:[#allocation3 + $0x734] sm:$0xf0]  ;;  %v3185_v41 = vld [vmem:[#allocation3 + $0x408] sm:$0xf]  ;;  %v3330_v55 = vor.u32 %v3855_v6, %v3329_v58  ;;  %v3458_v29 = vor.u32 %v3887_v30, %v3457_v13  ;;  %v3139_v58 = vld [vmem:[#allocation3 + $0x3b8] sm:$0xf0]  ;;  %v2758_v30 = vor.u32 %v3709_v56, %v2755_v52 }
 0x16d   :  { %v3186_v47 = vor.u32 %v3819_v19, %v3185_v41  ;;  %v3705_v41 = vld [vmem:[#allocation3 + $0x8c] sm:$0xf]  ;;  %v2723_v37 = vld [vmem:[#allocation3 + $0x78] sm:$0xf0] }
 0x16e   :  { %v2963_v56 = vld [vmem:[#allocation3 + $0x258] sm:$0xf0]  ;;  %v3793_v52 = vld [vmem:[#allocation3 + $0x34c] sm:$0xf] }
 0x16f   :  { %2085 = vmatpush.bf16.msrb.mxu0 %v3266_v32  ;;  %2098 = vmatpush.bf16.msrb.mxu1 %v3394_v33  ;;  %v3586_v32 = vor.u32 %v3919_v40, %v3585_v39  ;;  %v3441_v33 = vld [vmem:[#allocation3 + $0x608] sm:$0xf] }
 0x170   :  { %2111 = vmatpush.bf16.msrb.mxu2 %v3522_v34  ;;  %2124 = vmatpush.bf16.msrb.mxu3 %v3650_v35  ;;  %v3915_v34 = vld [vmem:[#allocation3 + $0x714] sm:$0xf0]  ;;  %v3717_v35 = vld [vmem:[#allocation3 + $0xec] sm:$0xf]  ;;  %v3442_v15 = vor.u32 %v3883_v12, %v3441_v33  ;;  %v2995_v33 = vld [vmem:[#allocation3 + $0x298] sm:$0xf0] }
 0x171   :  { %v3801_v12 = vld [vmem:[#allocation3 + $0x38c] sm:$0xf] }
 0x173   :  { %2086 = vmatpush.bf16.msrb.mxu0 %v3250_v23  ;;  %2099 = vmatpush.bf16.msrb.mxu1 %v3378_v53  ;;  %v3043_v23 = vld [vmem:[#allocation3 + $0x2f8] sm:$0xf0]  ;;  %v3813_v53 = vld [vmem:[#allocation3 + $0x3ec] sm:$0xf] }
 0x174   :  { %2112 = vmatpush.bf16.msrb.mxu2 %v3506_v57  ;;  %2125 = vmatpush.bf16.msrb.mxu3 %v3634_v59  ;;  %v3570_v57 = vor.u32 %v3915_v34, %v3569_v31  ;;  %v2790_v59 = vor.u32 %v3717_v35, %v2787_v36  ;;  %v3046_v38 = vor.u32 %v3781_v45, %v3043_v23  ;;  %v3123_v31 = vld [vmem:[#allocation3 + $0x398] sm:$0xf0]  ;;  %v3701_v36 = vld [vmem:[#allocation3 + $0x6c] sm:$0xf] }
 0x175   :  { %v3174_v9 = vor.u32 %v3813_v53, %v3171_v49  ;;  %v2870_v35 = vor.u32 %v3737_v20, %v2867_v27  ;;  %v3126_v45 = vor.u32 %v3801_v12, %v3123_v31  ;;  %v3765_v23 = vld [vmem:[#allocation3 + $0x26c] sm:$0xf] }
 0x177   :  { %2087 = vmatpush.bf16.msrb.mxu0 %v3234_v17  ;;  %2100 = vmatpush.bf16.msrb.mxu1 %v3362_v63  ;;  %v2899_v17 = vld [vmem:[#allocation3 + $0x1d8] sm:$0xf0]  ;;  %v3777_v63 = vld [vmem:[#allocation3 + $0x2cc] sm:$0xf] }
 0x178   :  { %2113 = vmatpush.bf16.msrb.mxu2 %v3490_v3  ;;  %2126 = vmatpush.bf16.msrb.mxu3 %v3618_v4  ;;  %v3809_v3 = vld [vmem:[#allocation3 + $0x3cc] sm:$0xf]  ;;  %v3155_v4 = vld [vmem:[#allocation3 + $0x3d8] sm:$0xf0]  ;;  %v2902_v28 = vor.u32 %v3745_v8, %v2899_v17  ;;  %v3030_v61 = vor.u32 %v3777_v63, %v3027_v11  ;;  %v2726_v8 = vor.u32 %v3701_v36, %v2723_v37 }
 0x179   :  { %v2707_v17 = vld [vmem:[#allocation3 + $0x58] sm:$0xf0]  ;;  %v3785_v36 = vld [vmem:[#allocation3 + $0x30c] sm:$0xf] }
 0x17a   :  { %v3059_v37 = vld [vmem:[#allocation3 + $0x318] sm:$0xf0] }
 0x17b   :  { %2088 = vmatpush.bf16.msrb.mxu0 %v3218_v1  ;;  %2101 = vmatpush.bf16.msrb.mxu1 %v3346_v44  ;;  %v3158_v1 = vor.u32 %v3809_v3, %v3155_v4  ;;  %v3741_v44 = vld [vmem:[#allocation3 + $0x1ac] sm:$0xf] }
 0x17c   :  { %2114 = vmatpush.bf16.msrb.mxu2 %v3474_v5  ;;  %2127 = vmatpush.bf16.msrb.mxu3 %v3602_v43  ;;  %v3011_v5 = vld [vmem:[#allocation3 + $0x2b8] sm:$0xf0]  ;;  %v3805_v43 = vld [vmem:[#allocation3 + $0x3ac] sm:$0xf]  ;;  %v2886_v39 = vor.u32 %v3741_v44, %v2883_v2 }
 0x17d   :  { %v3142_v19 = vor.u32 %v3805_v43, %v3139_v58  ;;  %v3729_v4 = vld [vmem:[#allocation3 + $0x14c] sm:$0xf]  ;;  %v2691_v2 = vld [vmem:[#allocation3 + $0x38] sm:$0xf0] }
 0x17e   :  { %v3693_v44 = vld [vmem:[#allocation3 + $0x2c] sm:$0xf]  ;;  %v2819_v58 = vld [vmem:[#allocation3 + $0x138] sm:$0xf0] }
 0x17f   :  { %2089 = vmatpush.bf16.msrb.mxu0 %v3202_v54  ;;  %2102 = vmatpush.bf16.msrb.mxu1 %v3330_v55  ;;  %v2739_v54 = vld [vmem:[#allocation3 + $0x98] sm:$0xf0]  ;;  %v3014_v55 = vor.u32 %v3773_v46, %v3011_v5  ;;  %v3725_v43 = vld [vmem:[#allocation3 + $0x12c] sm:$0xf]  ;;  %v2694_v20 = vor.u32 %v3693_v44, %v2691_v2 }
 0x180   :  { %2115 = vmatpush.bf16.msrb.mxu2 %v3458_v29  ;;  %2128 = vmatpush.bf16.msrb.mxu3 %v3586_v32  ;;  %v3769_v29 = vld [vmem:[#allocation3 + $0x28c] sm:$0xf]  ;;  %v2742_v34 = vor.u32 %v3705_v41, %v2739_v54  ;;  %v3075_v41 = vld [vmem:[#allocation3 + $0x338] sm:$0xf0]  ;;  %v2822_v27 = vor.u32 %v3725_v43, %v2819_v58 }
 0x181   :  { %v2998_v42 = vor.u32 %v3769_v29, %v2995_v33  ;;  %v2675_v29 = vld [vmem:[#allocation3 + $0x18] sm:$0xf0] }
 0x182   :  { %v1832_v6 = vpop.f32.mrf.mxu0  ;;  %v1845_v13 = vpop.f32.mrf.mxu1  ;;  %v2803_v33 = vld [vmem:[#allocation3 + $0x118] sm:$0xf0] }
 0x183   :  { %2090 = vmatpush.bf16.msrb.mxu0 %v3186_v47  ;;  %2103 = vmatpush.bf16.msrb.mxu1 %v3314_v18  ;;  %v1833_v40 = vadd.f32 %v1832_v6, %v535_v16  ;;  %v3733_v47 = vld [vmem:[#allocation3 + $0x16c] sm:$0xf]  ;;  %v2851_v18 = vld [vmem:[#allocation3 + $0x178] sm:$0xf0] }
 0x184   :  { %2116 = vmatpush.bf16.msrb.mxu2 %v3442_v15  ;;  %2129 = vmatpush.bf16.msrb.mxu3 %v3570_v57  ;;  %v2979_v15 = vld [vmem:[#allocation3 + $0x278] sm:$0xf0]  ;;  %v3797_v57 = vld [vmem:[#allocation3 + $0x36c] sm:$0xf] }
 0x185   :  { %v1846_v32 = vadd.f32 %v1845_v13, %v1833_v40  ;;  %v2982_v11 = vor.u32 %v3765_v23, %v2979_v15  ;;  %v3091_v16 = vld [vmem:[#allocation3 + $0x358] sm:$0xf0]  ;;  %v3757_v6 = vld [vmem:[#allocation3 + $0x22c] sm:$0xf] }
 0x186   :  { %2091 = vmatmul.bf16.vlgmr.msrb.gmra.mxu0 %v4301_v48  ;;  %2104 = vmatmul.bf16.vlgmr.msrb.gmra.mxu1 %v4303_v50  ;;  %v3094_v5 = vor.u32 %v3793_v52, %v3091_v16  ;;  %v3789_v40 = vld [vmem:[#allocation3 + $0x32c] sm:$0xf]  ;;  %v3555_v15 = vld [vmem:[#allocation3 + $0x6f8] sm:$0xf0] }
 0x187   :  { %2135 = vmatpush.bf16.msra.mxu0 %v2790_v59  ;;  %2148 = vmatpush.bf16.msra.mxu1 %v2918_v60  ;;  %v3107_v59 = vld [vmem:[#allocation3 + $0x378] sm:$0xf0]  ;;  %v3078_v31 = vor.u32 %v3789_v40, %v3075_v41  ;;  %v3909_v23 = vld [vmem:[#allocation3 + $0x6ec] sm:$0xf] }
 0x188   :  { %2161 = vmatpush.bf16.msra.mxu2 %v3046_v38  ;;  %2174 = vmatpush.bf16.msra.mxu3 %v3174_v9  ;;  %v2854_v38 = vor.u32 %v3733_v47, %v2851_v18  ;;  %v3697_v9 = vld [vmem:[#allocation3 + $0x4c] sm:$0xf]  ;;  %v3110_v3 = vor.u32 %v3797_v57, %v3107_v59  ;;  %v3427_v18 = vld [vmem:[#allocation3 + $0x5f8] sm:$0xf0] }
 0x189   :  { %2117 = vmatmul.bf16.vlgmr.msrb.gmra.mxu2 %v4305_v22  ;;  %2130 = vmatmul.bf16.vlgmr.msrb.gmra.mxu3 %v4307_v51  ;;  %v1858_v53 = vpop.f32.mrf.mxu2  ;;  %v1871_v49 = vpop.f32.mrf.mxu3  ;;  %v3877_v47 = vld [vmem:[#allocation3 + $0x5ec] sm:$0xf]  ;;  %v3683_v59 = vld [vmem:[#allocation3 + $0x7f8] sm:$0xf0] }
 0x18a   :  { %v1859_v60 = vadd.f32 %v1858_v53, %v1846_v32  ;;  %v1834_v62 = vpop.f32.mrf.mxu0  ;;  %v1847_v7 = vpop.f32.mrf.mxu1  ;;  %v3721_v32 = vld [vmem:[#allocation3 + $0x10c] sm:$0xf]  ;;  %v3411_v52 = vld [vmem:[#allocation3 + $0x5d8] sm:$0xf0] }
 0x18b   :  { %2136 = vmatpush.bf16.msra.mxu0 %v2774_v14  ;;  %2149 = vmatpush.bf16.msra.mxu1 %v2902_v28  ;;  %v2835_v14 = vld [vmem:[#allocation3 + $0x158] sm:$0xf0]  ;;  %v3761_v28 = vld [vmem:[#allocation3 + $0x24c] sm:$0xf]  ;;  %v3062_v62 = vor.u32 %v3785_v36, %v3059_v37 }
 0x18c   :  { %2162 = vmatpush.bf16.msra.mxu2 %v3030_v61  ;;  %2175 = vmatpush.bf16.msra.mxu3 %v3158_v1  ;;  %v4335_v63 = vadd.f32 %v1871_v49, %v1859_v60  ;;  %v2710_v61 = vor.u32 %v3697_v9, %v2707_v17  ;;  %v2838_v1 = vor.u32 %v3729_v4, %v2835_v14  ;;  %v3941_v57 = vld [vmem:[#allocation3 + $0x7ec] sm:$0xf]  ;;  %v3667_v44 = vld [vmem:[#allocation3 + $0x7d8] sm:$0xf0] }
 0x18d   :  { %v2966_v46 = vor.u32 %v3761_v28, %v2963_v56  ;;  %v2806_v49 = vor.u32 %v3721_v32, %v2803_v33  ;;  %v3841_v17 = vld [vmem:[#allocation3 + $0x4cc] sm:$0xf]  ;;  %v3686_v4 = vor.u32 %v3941_v57, %v3683_v59  ;;  %v3267_v43 = vld [vmem:[#allocation3 + $0x4b8] sm:$0xf0] }
 0x18e   :  { %v3873_v56 = vld [vmem:[#allocation3 + $0x5cc] sm:$0xf]  ;;  %v3523_v40 = vld [vmem:[#allocation3 + $0x6b8] sm:$0xf0] }
 0x18f   :  { %2137 = vmatpush.bf16.msra.mxu0 %v2758_v30  ;;  %2150 = vmatpush.bf16.msra.mxu1 %v2886_v39  ;;  %v2947_v39 = vld [vmem:[#allocation3 + $0x238] sm:$0xf0]  ;;  %v3905_v16 = vld [vmem:[#allocation3 + $0x6cc] sm:$0xf] }
 0x190   :  { %2163 = vmatpush.bf16.msra.mxu2 %v3014_v55  ;;  %2176 = vmatpush.bf16.msra.mxu3 %v3142_v19  ;;  %v3689_v19 = vld [vmem:[#allocation3 + $0xc] sm:$0xf]  ;;  %v2950_v12 = vor.u32 %v3757_v6, %v2947_v39  ;;  %v3507_v36 = vld [vmem:[#allocation3 + $0x698] sm:$0xf0] }
 0x191   :  { %v1860_v13 = vpop.f32.mrf.mxu2  ;;  %v1873_v30 = vpop.f32.mrf.mxu3  ;;  %v2678_v53 = vor.u32 %v3689_v19, %v2675_v29  ;;  %v3901_v39 = vld [vmem:[#allocation3 + $0x6ac] sm:$0xf]  ;;  %v3651_v19 = vld [vmem:[#allocation3 + $0x7b8] sm:$0xf0] }
 0x192   :  { %v4337_v54 = vpop.f32.mrf.mxu0  ;;  %v4339_v55 = vpop.f32.mrf.mxu1  ;;  %v3869_v13 = vld [vmem:[#allocation3 + $0x5ac] sm:$0xf]  ;;  %v3395_v30 = vld [vmem:[#allocation3 + $0x5b8] sm:$0xf0] }
 0x193   :  { %2138 = vmatpush.bf16.msra.mxu0 %v2742_v34  ;;  %2151 = vmatpush.bf16.msra.mxu1 %v2870_v35  ;;  %v3753_v34 = vld [vmem:[#allocation3 + $0x20c] sm:$0xf]  ;;  %v2931_v35 = vld [vmem:[#allocation3 + $0x218] sm:$0xf0] }
 0x194   :  { %2164 = vmatpush.bf16.msra.mxu2 %v2998_v42  ;;  %2177 = vmatpush.bf16.msra.mxu3 %v3126_v45  ;;  %v3845_v42 = vld [vmem:[#allocation3 + $0x4ec] sm:$0xf]  ;;  %v3299_v45 = vld [vmem:[#allocation3 + $0x4f8] sm:$0xf0]  ;;  %v2934_v60 = vor.u32 %v3753_v34, %v2931_v35 }
 0x195   :  { %v3302_v7 = vor.u32 %v3845_v42, %v3299_v45  ;;  %v3933_v41 = vld [vmem:[#allocation3 + $0x7ac] sm:$0xf]  ;;  %v3379_v34 = vld [vmem:[#allocation3 + $0x598] sm:$0xf0] }
 0x196   :  { %v3833_v33 = vld [vmem:[#allocation3 + $0x48c] sm:$0xf]  ;;  %v3363_v57 = vld [vmem:[#allocation3 + $0x578] sm:$0xf0] }
 0x197   :  { %2139 = vmatpush.bf16.msra.mxu0 %v2726_v8  ;;  %2152 = vmatpush.bf16.msra.mxu1 %v2854_v38  ;;  %v3430_v8 = vor.u32 %v3877_v47, %v3427_v18  ;;  %v3897_v35 = vld [vmem:[#allocation3 + $0x68c] sm:$0xf] }
 0x198   :  { %2165 = vmatpush.bf16.msra.mxu2 %v2982_v11  ;;  %2178 = vmatpush.bf16.msra.mxu3 %v3110_v3  ;;  %v3283_v11 = vld [vmem:[#allocation3 + $0x4d8] sm:$0xf0]  ;;  %v3558_v3 = vor.u32 %v3909_v23, %v3555_v15  ;;  %v3929_v37 = vld [vmem:[#allocation3 + $0x78c] sm:$0xf] }
 0x199   :  { %v4341_v38 = vpop.f32.mrf.mxu2  ;;  %v4343_v9 = vpop.f32.mrf.mxu3  ;;  %v3286_v2 = vor.u32 %v3841_v17, %v3283_v11  ;;  %v3829_v18 = vld [vmem:[#allocation3 + $0x46c] sm:$0xf]  ;;  %v3235_v23 = vld [vmem:[#allocation3 + $0x478] sm:$0xf0] }
 0x19a   :  { %v1886_v14 = vpop.f32.mrf.mxu0  ;;  %v1899_v28 = vpop.f32.mrf.mxu1  ;;  %v3861_v15 = vld [vmem:[#allocation3 + $0x56c] sm:$0xf] }
 0x19b   :  { %2140 = vmatpush.bf16.msra.mxu0 %v2710_v61  ;;  %2153 = vmatpush.bf16.msra.mxu1 %v2838_v1  ;;  %v3539_v61 = vld [vmem:[#allocation3 + $0x6d8] sm:$0xf0]  ;;  %v3937_v1 = vld [vmem:[#allocation3 + $0x7cc] sm:$0xf]  ;;  %v3366_v17 = vor.u32 %v3861_v15, %v3363_v57  ;;  %v536_v57 = vperm.slane %v4328_v0, 1 }
 0x19c   :  { %2166 = vmatpush.bf16.msra.mxu2 %v2966_v46  ;;  %2179 = vmatpush.bf16.msra.mxu3 %v3094_v5  ;;  %v3414_v46 = vor.u32 %v3873_v56, %v3411_v52  ;;  %v3837_v5 = vld [vmem:[#allocation3 + $0x4ac] sm:$0xf]  ;;  %v3542_v58 = vor.u32 %v3905_v16, %v3539_v61  ;;  %v3670_v6 = vor.u32 %v3937_v1, %v3667_v44  ;;  %v3347_v56 = vld [vmem:[#allocation3 + $0x558] sm:$0xf0] }
 0x19d   :  { %v3893_v59 = vld [vmem:[#allocation3 + $0x66c] sm:$0xf]  ;;  %v3475_v1 = vld [vmem:[#allocation3 + $0x658] sm:$0xf0] }
 0x19e   :  { %v3825_v11 = vld [vmem:[#allocation3 + $0x44c] sm:$0xf] }
 0x19f   :  { %2141 = vmatpush.bf16.msra.mxu0 %v2694_v20  ;;  %2154 = vmatpush.bf16.msra.mxu1 %v2822_v27  ;;  %v3270_v20 = vor.u32 %v3837_v5, %v3267_v43  ;;  %v3398_v27 = vor.u32 %v3869_v13, %v3395_v30  ;;  %v3857_v28 = vld [vmem:[#allocation3 + $0x54c] sm:$0xf]  ;;  %v3203_v13 = vld [vmem:[#allocation3 + $0x438] sm:$0xf0] }
 0x1a0   :  { %2167 = vmatpush.bf16.msra.mxu2 %v2950_v12  ;;  %2180 = vmatpush.bf16.msra.mxu3 %v3078_v31  ;;  %v3251_v12 = vld [vmem:[#allocation3 + $0x498] sm:$0xf0]  ;;  %v3654_v31 = vor.u32 %v3933_v41, %v3651_v19  ;;  %v3889_v52 = vld [vmem:[#allocation3 + $0x64c] sm:$0xf] }
 0x1a1   :  { %v1912_v29 = vpop.f32.mrf.mxu2  ;;  %v1925_v32 = vpop.f32.mrf.mxu3  ;;  %v3254_v45 = vor.u32 %v3833_v33, %v3251_v12  ;;  %v3921_v44 = vld [vmem:[#allocation3 + $0x74c] sm:$0xf]  ;;  %v3478_v30 = vor.u32 %v3889_v52, %v3475_v1  ;;  %v3331_v41 = vld [vmem:[#allocation3 + $0x538] sm:$0xf0]  ;;  %v2276_v52 = vld [vmem:[%s4642_s6 + $0xc8] sm:$0xff] }
 0x1a2   :  { %v3885_v19 = vld [vmem:[#allocation3 + $0x62c] sm:$0xf]  ;;  %v3587_v29 = vld [vmem:[#allocation3 + $0x738] sm:$0xf0] }
 0x1a3   :  { %2142 = vmatpush.bf16.msra.mxu0 %v2678_v53  ;;  %2155 = vmatpush.bf16.msra.mxu1 %v2806_v49  ;;  %v4349_v42 = vpop.f32.mrf.mxu0  ;;  %v3510_v53 = vor.u32 %v3897_v35, %v3507_v36  ;;  %v3817_v12 = vld [vmem:[#allocation3 + $0x40c] sm:$0xf]  ;;  %v3315_v35 = vld [vmem:[#allocation3 + $0x518] sm:$0xf0] }
 0x1a4   :  { %2168 = vmatpush.bf16.msra.mxu2 %v2934_v60  ;;  %2181 = vmatpush.bf16.msra.mxu3 %v3062_v62  ;;  %v3491_v60 = vld [vmem:[#allocation3 + $0x678] sm:$0xf0]  ;;  %v3925_v62 = vld [vmem:[#allocation3 + $0x76c] sm:$0xf] }
 0x1a5   :  { %v3881_v36 = vld [vmem:[#allocation3 + $0x60c] sm:$0xf] }
 0x1a6   :  { %2143 = vmatmul.bf16.vlgmr.msra.gmra.mxu0 %v4242_v21  ;;  %2156 = vmatmul.bf16.vlgmr.msra.gmra.mxu1 %v4244_v24  ;;  %v3526_v21 = vor.u32 %v3901_v39, %v3523_v40  ;;  %v3865_v24 = vld [vmem:[#allocation3 + $0x58c] sm:$0xf] }
 0x1a7   :  { %2187 = vmatpush.bf16.msrb.mxu0 %v3302_v7  ;;  %2200 = vmatpush.bf16.msrb.mxu1 %v3430_v8  ;;  %v3382_v47 = vor.u32 %v3865_v24, %v3379_v34  ;;  %v3619_v7 = vld [vmem:[#allocation3 + $0x778] sm:$0xf0]  ;;  %v3238_v8 = vor.u32 %v3829_v18, %v3235_v23  ;;  %v3853_v40 = vld [vmem:[#allocation3 + $0x52c] sm:$0xf] }
 0x1a8   :  { %2213 = vmatpush.bf16.msrb.mxu2 %v3558_v3  ;;  %2226 = vmatpush.bf16.msrb.mxu3 %v3686_v4  ;;  %v3219_v3 = vld [vmem:[#allocation3 + $0x458] sm:$0xf0]  ;;  %v3494_v4 = vor.u32 %v3893_v59, %v3491_v60  ;;  %v3622_v14 = vor.u32 %v3925_v62, %v3619_v7  ;;  %v3334_v33 = vor.u32 %v3853_v40, %v3331_v41  ;;  %v3849_v34 = vld [vmem:[#allocation3 + $0x50c] sm:$0xf]  ;;  %v2266_v59 = vld [vmem:[%s4642_s6 + $0x78] sm:$0xff] }
 0x1a9   :  { %2169 = vmatmul.bf16.vlgmr.msra.gmra.mxu2 %v4246_v25  ;;  %2182 = vmatmul.bf16.vlgmr.msra.gmra.mxu3 %v4248_v26  ;;  %v3635_v25 = vld [vmem:[#allocation3 + $0x798] sm:$0xf0]  ;;  %v4351_v26 = vpop.f32.mrf.mxu1  ;;  %v3222_v43 = vor.u32 %v3825_v11, %v3219_v3  ;;  %v2282_v60 = vld [vmem:[%s4642_s6 + $0xf8] sm:$0xff]  ;;  %v2280_v11 = vld [vmem:[%s4642_s6 + $0xe8] sm:$0xff] }
 0x1aa   :  { %v3638_v49 = vor.u32 %v3929_v37, %v3635_v25  ;;  %v3571_v18 = vld [vmem:[#allocation3 + $0x718] sm:$0xf0]  ;;  %v2259_v1 = vld [vmem:[%s4642_s6 + $0x40] sm:$0xff]  ;;  %v2256_v41 = vld [vmem:[%s4642_s6 + $0x28] sm:$0xff] }
 0x1ab   :  { %2188 = vmatpush.bf16.msrb.mxu0 %v3286_v2  ;;  %2201 = vmatpush.bf16.msrb.mxu1 %v3414_v46  ;;  %v3603_v2 = vld [vmem:[#allocation3 + $0x758] sm:$0xf0]  ;;  %v1938_v46 = vpop.f32.mrf.mxu0 }
 0x1ac   :  { %2214 = vmatpush.bf16.msrb.mxu2 %v3542_v58  ;;  %2227 = vmatpush.bf16.msrb.mxu3 %v3670_v6  ;;  %v4353_v16 = vpop.f32.mrf.mxu2  ;;  %v4355_v61 = vpop.f32.mrf.mxu3  ;;  %v3350_v58 = vor.u32 %v3857_v28, %v3347_v56  ;;  %v3821_v6 = vld [vmem:[#allocation3 + $0x42c] sm:$0xf]  ;;  %v3606_v39 = vor.u32 %v3921_v44, %v3603_v2  ;;  %v2265_v62 = vld [vmem:[%s4642_s6 + $0x70] sm:$0xff]  ;;  %v2260_v56 = vld [vmem:[%s4642_s6 + $0x48] sm:$0xff]  ;;  %v1885_v2 = vadd.f32 %v4337_v54, %v4335_v63 }
 0x1ad   :  { %v3206_v32 = vor.u32 %v3821_v6, %v3203_v13  ;;  %v2281_v7 = vld [vmem:[%s4642_s6 + $0xf0] sm:$0xff]  ;;  %v2275_v44 = vld [vmem:[%s4642_s6 + $0xc0] sm:$0xff]  ;;  %v2298_v63 = vld [vmem:[%s4642_s6 + $0x178] sm:$0xff] }
 0x1ae   :  { %v2277_v28 = vld [vmem:[%s4642_s6 + $0xd0] sm:$0xff] }
 0x1af   :  { %2189 = vmatpush.bf16.msrb.mxu0 %v3270_v20  ;;  %2202 = vmatpush.bf16.msrb.mxu1 %v3398_v27  ;;  %v3459_v20 = vld [vmem:[#allocation3 + $0x638] sm:$0xf0]  ;;  %v3917_v27 = vld [vmem:[#allocation3 + $0x72c] sm:$0xf] }
 0x1b0   :  { %2215 = vmatpush.bf16.msrb.mxu2 %v3526_v21  ;;  %2228 = vmatpush.bf16.msrb.mxu3 %v3654_v31  ;;  %v3187_v21 = vld [vmem:[#allocation3 + $0x418] sm:$0xf0]  ;;  %v3462_v31 = vor.u32 %v3885_v19, %v3459_v20  ;;  %v3590_v24 = vor.u32 %v3917_v27, %v3587_v29  ;;  %v2272_v19 = vld [vmem:[%s4642_s6 + $0xa8] sm:$0xff]  ;;  %v2271_v29 = vld [vmem:[%s4642_s6 + $0xa0] sm:$0xff] }
 0x1b1   :  { %v1951_v5 = vpop.f32.mrf.mxu1  ;;  %v3190_v23 = vor.u32 %v3817_v12, %v3187_v21  ;;  %v2257_v54 = vld [vmem:[%s4642_s6 + $0x30] sm:$0xff]  ;;  %v2270_v12 = vld [vmem:[%s4642_s6 + $0x98] sm:$0xff] }
 0x1b2   :  { %v2274_v5 = vld [vmem:[%s4642_s6 + $0xb8] sm:$0xff] }
 0x1b3   :  { %2190 = vmatpush.bf16.msrb.mxu0 %v3254_v45  ;;  %2203 = vmatpush.bf16.msrb.mxu1 %v3382_v47  ;;  %v3443_v45 = vld [vmem:[#allocation3 + $0x618] sm:$0xf0]  ;;  %v3913_v47 = vld [vmem:[#allocation3 + $0x70c] sm:$0xf] }
 0x1b4   :  { %2216 = vmatpush.bf16.msrb.mxu2 %v3510_v53  ;;  %2229 = vmatpush.bf16.msrb.mxu3 %v3638_v49  ;;  %v1964_v37 = vpop.f32.mrf.mxu2  ;;  %v1977_v25 = vpop.f32.mrf.mxu3  ;;  %v3318_v53 = vor.u32 %v3849_v34, %v3315_v35  ;;  %v3446_v49 = vor.u32 %v3881_v36, %v3443_v45  ;;  %v3574_v15 = vor.u32 %v3913_v47, %v3571_v18  ;;  %v2295_v35 = vld [vmem:[%s4642_s6 + $0x160] sm:$0xff]  ;;  %v2253_v36 = vld [vmem:[%s4642_s6 + $0x10] sm:$0xff]  ;;  %v2268_v45 = vld [vmem:[%s4642_s6 + $0x88] sm:$0xff] }
 0x1b5   :  { %v2269_v37 = vld [vmem:[%s4642_s6 + $0x90] sm:$0xff]  ;;  %v2252_v25 = vld [vmem:[%s4642_s6 + $0x8] sm:$0xff] }
 0x1b7   :  { %2191 = vmatpush.bf16.msrb.mxu0 %v3238_v8  ;;  %2204 = vmatpush.bf16.msrb.mxu1 %v3366_v17  ;;  %v1937_v8 = vadd.f32 %v4349_v42, %v536_v57  ;;  %v2264_v17 = vld [vmem:[%s4642_s6 + $0x68] sm:$0xff]  ;;  %v2278_v42 = vld [vmem:[%s4642_s6 + $0xd8] sm:$0xff] }
 0x1b8   :  { %2217 = vmatpush.bf16.msrb.mxu2 %v3494_v4  ;;  %2230 = vmatpush.bf16.msrb.mxu3 %v3622_v14 }
 0x1bb   :  { %2192 = vmatpush.bf16.msrb.mxu0 %v3222_v43  ;;  %2205 = vmatpush.bf16.msrb.mxu1 %v3350_v58 }
 0x1bc   :  { %2218 = vmatpush.bf16.msrb.mxu2 %v3478_v30  ;;  %2231 = vmatpush.bf16.msrb.mxu3 %v3606_v39  ;;  %v2273_v30 = vld [vmem:[%s4642_s6 + $0xb0] sm:$0xff]  ;;  %v1898_v39 = vadd.f32 %v4339_v55, %v1885_v2  ;;  %v2255_v55 = vld [vmem:[%s4642_s6 + $0x20] sm:$0xff] }
 0x1be   :  { %v1911_v20 = vadd.f32 %v4341_v38, %v1898_v39  ;;  %v2296_v38 = vld [vmem:[%s4642_s6 + $0x168] sm:$0xff] }
 0x1bf   :  { %2193 = vmatpush.bf16.msrb.mxu0 %v3206_v32  ;;  %2206 = vmatpush.bf16.msrb.mxu1 %v3334_v33  ;;  %v2297_v32 = vld [vmem:[%s4642_s6 + $0x170] sm:$0xff]  ;;  %v2254_v33 = vld [vmem:[%s4642_s6 + $0x18] sm:$0xff] }
 0x1c0   :  { %2219 = vmatpush.bf16.msrb.mxu2 %v3462_v31  ;;  %2232 = vmatpush.bf16.msrb.mxu3 %v3590_v24  ;;  %v1924_v24 = vadd.f32 %v4343_v9, %v1911_v20  ;;  %v2294_v9 = vld [vmem:[%s4642_s6 + $0x158] sm:$0xff] }
 0x1c2   :  { %v2243_v47 = vmul.f32 0.01, %v1924_v24  ;;  %vm2239_vm1 = vcmp.ge.f32.partialorder %v1924_v24, 0.0 }
 0x1c3   :  { %2194 = vmatpush.bf16.msrb.mxu0 %v3190_v23  ;;  %2207 = vmatpush.bf16.msrb.mxu1 %v3318_v53  ;;  %v1988_v4 = vpop.f32.mrf.mxu0  ;;  %v2001_v14 = vpop.f32.mrf.mxu1  ;;  %v2293_v23 = vld [vmem:[%s4642_s6 + $0x150] sm:$0xff]  ;;  %v2251_v53 = vld [vmem:[%s4642_s6] sm:$0xff] }
 0x1c4   :  { %2220 = vmatpush.bf16.msrb.mxu2 %v3446_v49  ;;  %2233 = vmatpush.bf16.msrb.mxu3 %v3574_v15  ;;  %v2267_v49 = vld [vmem:[%s4642_s6 + $0x80] sm:$0xff]  ;;  %v2292_v15 = vld [vmem:[%s4642_s6 + $0x148] sm:$0xff]  ;;  %v2247_v57 = vsel %vm2239_vm1, %v1924_v24, %v2243_v47 }
 0x1c6   :  { %2195 = vmatmul.bf16.vlgmr.msrb.gmra.mxu0 %v4301_v48  ;;  %2208 = vmatmul.bf16.vlgmr.msrb.gmra.mxu1 %v4303_v50  ;;  %v2263_v48 = vld [vmem:[%s4642_s6 + $0x60] sm:$0xff] }
 0x1c7   :  { %2319 = vmatpush.msra.mxu0 %v2266_v59  ;;  %2339 = vmatpush.msra.mxu1 %v2282_v60  ;;  %v2279_v50 = vld [vmem:[%s4642_s6 + $0xe0] sm:$0xff] }
 0x1c8   :  { %2221 = vmatmul.bf16.vlgmr.msrb.gmra.mxu2 %v4305_v22  ;;  %2234 = vmatmul.bf16.vlgmr.msrb.gmra.mxu3 %v4307_v51  ;;  %v1950_v22 = vadd.f32 %v4351_v26, %v1937_v8  ;;  %v2262_v51 = vld [vmem:[%s4642_s6 + $0x58] sm:$0xff]  ;;  %v2261_v26 = vld [vmem:[%s4642_s6 + $0x50] sm:$0xff]  ;;  %v2291_v60 = vld [vmem:[%s4642_s6 + $0x140] sm:$0xff] }
 0x1c9   :  { %2320 = vmatpush.msra.mxu0 %v2265_v62  ;;  %2340 = vmatpush.msra.mxu1 %v2281_v7  ;;  %v2290_v62 = vld [vmem:[%s4642_s6 + $0x138] sm:$0xff] }
 0x1ca   :  { %v1963_v3 = vadd.f32 %v4353_v16, %v1950_v22  ;;  %2359 = vmatpush.msra.mxu2 %v2298_v63 }
 0x1cb   :  { %2321 = vmatpush.msra.mxu0 %v2264_v17  ;;  %2341 = vmatpush.msra.mxu1 %v2280_v11  ;;  %v1990_v6 = vpop.f32.mrf.mxu0  ;;  %v2003_v13 = vpop.f32.mrf.mxu1  ;;  %v2289_v17 = vld [vmem:[%s4642_s6 + $0x130] sm:$0xff]  ;;  %v2288_v11 = vld [vmem:[%s4642_s6 + $0x128] sm:$0xff] }
 0x1cc   :  { %v1976_v16 = vadd.f32 %v4355_v61, %v1963_v3  ;;  %v2258_v61 = vld [vmem:[%s4642_s6 + $0x38] sm:$0xff]  ;;  %v2014_v43 = vpop.f32.mrf.mxu2  ;;  %v2027_v58 = vpop.f32.mrf.mxu3  ;;  %2360 = vmatpush.msra.mxu2 %v2297_v32 }
 0x1cd   :  { %2322 = vmatpush.msra.mxu0 %v2263_v48  ;;  %2342 = vmatpush.msra.mxu1 %v2279_v50  ;;  %v2287_v48 = vld [vmem:[%s4642_s6 + $0x120] sm:$0xff]  ;;  %v2286_v3 = vld [vmem:[%s4642_s6 + $0x118] sm:$0xff] }
 0x1ce   :  { %v1989_v46 = vadd.f32 %v1988_v4, %v1976_v16  ;;  %2361 = vmatpush.msra.mxu2 %v2296_v38  ;;  %v2285_v4 = vld [vmem:[%s4642_s6 + $0x110] sm:$0xff]  ;;  %v2310_v32 = vld [vmem:[%s4642_s6 + $0x1d8] sm:$0xff] }
 0x1cf   :  { %2323 = vmatpush.msra.mxu0 %v2262_v51  ;;  %2343 = vmatpush.msra.mxu1 %v2278_v42  ;;  %v2309_v38 = vld [vmem:[%s4642_s6 + $0x1d0] sm:$0xff] }
 0x1d0   :  { %v2002_v40 = vadd.f32 %v2001_v14, %v1989_v46  ;;  %2362 = vmatpush.msra.mxu2 %v2295_v35  ;;  %v2284_v14 = vld [vmem:[%s4642_s6 + $0x108] sm:$0xff] }
 0x1d1   :  { %2324 = vmatpush.msra.mxu0 %v2261_v26  ;;  %2344 = vmatpush.msra.mxu1 %v2277_v28  ;;  %v2283_v26 = vld [vmem:[%s4642_s6 + $0x100] sm:$0xff]  ;;  %v2304_v35 = vld [vmem:[%s4642_s6 + $0x1a8] sm:$0xff] }
 0x1d2   :  { %v2015_v27 = vadd.f32 %v2014_v43, %v2002_v40  ;;  %2363 = vmatpush.msra.mxu2 %v2294_v9 }
 0x1d3   :  { %2325 = vmatpush.msra.mxu0 %v2260_v56  ;;  %2345 = vmatpush.msra.mxu1 %v2276_v52  ;;  %v537_v52 = vperm.slane %v4328_v0, 2 }
 0x1d4   :  { %v2016_v21 = vpop.f32.mrf.mxu2  ;;  %v2029_v31 = vpop.f32.mrf.mxu3  ;;  %v2028_v34 = vadd.f32 %v2027_v58, %v2015_v27  ;;  %2364 = vmatpush.msra.mxu2 %v2293_v23  ;;  %v2300_v23 = vld [vmem:[%s4642_s6 + $0x188] sm:$0xff] }
 0x1d5   :  { %2326 = vmatpush.msra.mxu0 %v2259_v1  ;;  %2346 = vmatpush.msra.mxu1 %v2275_v44  ;;  %v2306_v21 = vld [vmem:[%s4642_s6 + $0x1b8] sm:$0xff] }
 0x1d6   :  { %v2244_v18 = vmul.f32 0.01, %v2028_v34  ;;  %vm2240_vm2 = vcmp.ge.f32.partialorder %v2028_v34, 0.0  ;;  %2365 = vmatpush.msra.mxu2 %v2292_v15 }
 0x1d7   :  { %2327 = vmatpush.msra.mxu0 %v2258_v61  ;;  %2347 = vmatpush.msra.mxu1 %v2274_v5 }
 0x1d8   :  { %v2248_v59 = vsel %vm2240_vm2, %v2028_v34, %v2244_v18  ;;  %2366 = vmatpush.msra.mxu2 %v2291_v60  ;;  %v2305_v34 = vld [vmem:[%s4642_s6 + $0x1b0] sm:$0xff] }
 0x1d9   :  { %2328 = vmatpush.msra.mxu0 %v2257_v54  ;;  %2348 = vmatpush.msra.mxu1 %v2273_v30  ;;  %v2314_v30 = vld [vmem:[%s4642_s6 + $0x1f8] sm:$0xff]  ;;  %v2301_v18 = vld [vmem:[%s4642_s6 + $0x190] sm:$0xff] }
 0x1da   :  { %2367 = vmatpush.msra.mxu2 %v2290_v62  ;;  %2379 = vmatpush.msra.mxu3 %v2314_v30 }
 0x1db   :  { %2329 = vmatpush.msra.mxu0 %v2256_v41  ;;  %2349 = vmatpush.msra.mxu1 %v2272_v19  ;;  %v2313_v41 = vld [vmem:[%s4642_s6 + $0x1f0] sm:$0xff]  ;;  %v2312_v19 = vld [vmem:[%s4642_s6 + $0x1e8] sm:$0xff] }
 0x1dc   :  { %2368 = vmatpush.msra.mxu2 %v2289_v17  ;;  %2380 = vmatpush.msra.mxu3 %v2313_v41 }
 0x1dd   :  { %2330 = vmatpush.msra.mxu0 %v2255_v55  ;;  %2350 = vmatpush.msra.mxu1 %v2271_v29  ;;  %v2311_v29 = vld [vmem:[%s4642_s6 + $0x1e0] sm:$0xff] }
 0x1de   :  { %2369 = vmatpush.msra.mxu2 %v2288_v11  ;;  %2381 = vmatpush.msra.mxu3 %v2312_v19 }
 0x1df   :  { %2331 = vmatpush.msra.mxu0 %v2254_v33  ;;  %2351 = vmatpush.msra.mxu1 %v2270_v12  ;;  %v2308_v33 = vld [vmem:[%s4642_s6 + $0x1c8] sm:$0xff]  ;;  %v2307_v12 = vld [vmem:[%s4642_s6 + $0x1c0] sm:$0xff] }
 0x1e0   :  { %2370 = vmatpush.msra.mxu2 %v2287_v48  ;;  %2382 = vmatpush.msra.mxu3 %v2311_v29  ;;  %v4032_v29 = vmov 5  }
 0x1e1   :  { %2332 = vmatpush.msra.mxu0 %v2253_v36  ;;  %2352 = vmatpush.msra.mxu1 %v2269_v37  ;;  %v2303_v36 = vld [vmem:[%s4642_s6 + $0x1a0] sm:$0xff] }
 0x1e2   :  { %2371 = vmatpush.msra.mxu2 %v2286_v3  ;;  %2383 = vmatpush.msra.mxu3 %v2310_v32  ;;  %v3995_v32 = vld [vmem:[%s4645_s9] ss:$0 sm:$0xff] }
 0x1e3   :  { %2333 = vmatpush.msra.mxu0 %v2252_v25  ;;  %2353 = vmatpush.msra.mxu1 %v2268_v45  ;;  %v2040_v7 = vpop.f32.mrf.mxu0  ;;  %v2053_v8 = vpop.f32.mrf.mxu1  ;;  %v2302_v25 = vld [vmem:[%s4642_s6 + $0x198] sm:$0xff] }
 0x1e4   :  { %2372 = vmatpush.msra.mxu2 %v2285_v4  ;;  %v2041_v16 = vadd.f32 %v2040_v7, %v537_v52  ;;  %2384 = vmatpush.msra.mxu3 %v2309_v38  ;;  %v2408_v52 = vld [vmem:[%s4644_s8 + $0x30] sm:$0xff] }
 0x1e5   :  { %2334 = vmatpush.msra.mxu0 %v2251_v53  ;;  %2354 = vmatpush.msra.mxu1 %v2267_v49  ;;  %v2299_v53 = vld [vmem:[%s4642_s6 + $0x180] sm:$0xff]  ;;  %v538_v49 = vperm.slane %v4328_v0, 3 }
 0x1e6   :  { %2335 = vmatmul.f32.vlgmr.msra.gmra.mxu0 %v2247_v57  ;;  %2355 = vmatmul.f32.vlgmr.msra.gmra.mxu1 %v2248_v59  ;;  %v2054_v1 = vadd.f32 %v2053_v8, %v2041_v16  ;;  %v2407_v16 = vld [vmem:[%s4644_s8 + $0x28] sm:$0xff] }
 0x1e7   :  { %2373 = vmatpush.msra.mxu2 %v2284_v14  ;;  %2385 = vmatpush.msra.mxu3 %v2308_v33 }
 0x1e9   :  { %2374 = vmatpush.msra.mxu2 %v2283_v26  ;;  %2386 = vmatpush.msra.mxu3 %v2307_v12  ;;  %v4033_v12 = vmov 10  }
 0x1eb   :  { %v2042_v51 = vpop.f32.mrf.mxu0  ;;  %v2055_v42 = vpop.f32.mrf.mxu1  ;;  %2387 = vmatpush.msra.mxu3 %v2306_v21  ;;  %v4034_v21 = vmov 15  }
 0x1ec   :  { %v2066_v50 = vpop.f32.mrf.mxu2  ;;  %v2079_v22 = vpop.f32.mrf.mxu3 }
 0x1ed   :  { %v2067_v44 = vadd.f32 %v2066_v50, %v2054_v1  ;;  %2388 = vmatpush.msra.mxu3 %v2305_v34  ;;  %v2406_v1 = vld [vmem:[%s4644_s8 + $0x20] sm:$0xff]  ;;  %v4037_v34 = vmov 8  }
 0x1ef   :  { %v2080_v2 = vadd.f32 %v2079_v22, %v2067_v44  ;;  %2389 = vmatpush.msra.mxu3 %v2304_v35  ;;  %v2405_v44 = vld [vmem:[%s4644_s8 + $0x18] sm:$0xff]  ;;  %v4038_v35 = vmov 7  }
 0x1f1   :  { %2390 = vmatpush.msra.mxu3 %v2303_v36  ;;  %v4039_v36 = vmov 11  }
 0x1f3   :  { %2391 = vmatpush.msra.mxu3 %v2302_v25  ;;  %v4042_v25 = vmov 12  }
 0x1f4   :  { %v2068_v28 = vpop.f32.mrf.mxu2  ;;  %v2081_v56 = vpop.f32.mrf.mxu3 }
 0x1f5   :  { %2392 = vmatpush.msra.mxu3 %v2301_v18  ;;  %v2409_v56 = vld [vmem:[%s4644_s8 + $0x38] sm:$0xff] }
 0x1f6   :  { %2426 = vmatpush.msrb.mxu0 %v2409_v56 }
 0x1f7   :  { %2393 = vmatpush.msra.mxu3 %v2300_v23  ;;  %v2439_v23 = vld [vmem:[%s4646_s10] sm:$0xf] }
 0x1f8   :  { %2427 = vmatpush.msrb.mxu0 %v2408_v52 }
 0x1f9   :  { %2394 = vmatpush.msra.mxu3 %v2299_v53 }
 0x1fa   :  { %2428 = vmatpush.msrb.mxu0 %v2407_v16 }
 0x1fc   :  { %2429 = vmatpush.msrb.mxu0 %v2406_v1 }
 0x1fe   :  { %2430 = vmatpush.msrb.mxu0 %v2405_v44 }
 0x203   :  { %v2092_v46 = vpop.f32.mrf.mxu0  ;;  %v2105_v61 = vpop.f32.mrf.mxu1 }
 0x204   :  { %v2093_v5 = vadd.f32 %v2092_v46, %v2080_v2  ;;  %v2404_v2 = vld [vmem:[%s4644_s8 + $0x10] sm:$0xff]  ;;  %v2403_v46 = vld [vmem:[%s4644_s8 + $0x8] sm:$0xff] }
 0x205   :  { %2431 = vmatpush.msrb.mxu0 %v2404_v2 }
 0x206   :  { %v2106_v43 = vadd.f32 %v2105_v61, %v2093_v5  ;;  %v2402_v61 = vld [vmem:[%s4644_s8] sm:$0xff] }
 0x207   :  { %2432 = vmatpush.msrb.mxu0 %v2403_v46  ;;  %v2438_v5 = vld [vmem:[%s4637_s1] sm:$0xff] }
 0x208   :  { %2443 = vperm.xlu0 %3966, %v2438_v5  }
 0x209   :  { %2433 = vmatpush.msrb.mxu0 %v2402_v61 }
 0x20b   :  { %v2094_v63 = vpop.f32.mrf.mxu0  ;;  %v2107_v54 = vpop.f32.mrf.mxu1 }
 0x20c   :  { %v2118_v58 = vpop.f32.mrf.mxu2  ;;  %v2131_v6 = vpop.f32.mrf.mxu3  ;;  %v4031_v54 = vmov 3  }
 0x20d   :  { %v2119_v13 = vadd.f32 %v2118_v58, %v2106_v43  ;;  %v4029_v43 = vmov 1   ;;  %v4030_v58 = vmov 2  }
 0x20e   :  { %3967 = vset.pattern.permute.xlu2 %v4029_v43 }
 0x20f   :  { %v2132_v39 = vadd.f32 %v2131_v6, %v2119_v13  ;;  %2453 = vperm.xlu2 %3967, %v2438_v5   ;;  %v3994_v6 = vld [vmem:[%s4643_s7] ss:$0 sm:$0xff] }
 0x210   :  { %3974 = vset.pattern.permute.xlu0 %v4032_v29 }
 0x211   :  { %vm2241_vm3 = vcmp.ge.f32.partialorder %v2132_v39, 0.0  ;;  %v2245_v40 = vmul.f32 0.01, %v2132_v39 }
 0x213   :  { %v2249_v20 = vsel %vm2241_vm3, %v2132_v39, %v2245_v40 }
 0x214   :  { %v2120_v27 = vpop.f32.mrf.mxu2  ;;  %v2133_v55 = vpop.f32.mrf.mxu3  ;;  %2375 = vmatmul.f32.vlgmr.msra.gmra.mxu2 %v2249_v20 }
 0x217   :  { %3968 = vset.pattern.permute.xlu2 %v4030_v58 }
 0x218   :  { %2460 = vperm.xlu2 %3968, %v2438_v5  }
 0x220   :  { %3969 = vset.pattern.permute.xlu2 %v4031_v54 }
 0x221   :  { %2467 = vperm.xlu2 %3969, %v2438_v5  }
 0x223   :  { %v2144_v31 = vpop.f32.mrf.mxu0  ;;  %v2157_v24 = vpop.f32.mrf.mxu1 }
 0x224   :  { %v2145_v59 = vadd.f32 %v2144_v31, %v538_v49  ;;  %v4035_v31 = vmov 6   ;;  %v2446_v49 = vperm.slane %v2439_v23, 0 }
 0x226   :  { %v2158_v60 = vadd.f32 %v2157_v24, %v2145_v59  ;;  %v4036_v24 = vmov 4   ;;  %v3996_v59 = vld [vmem:[%s4648_s12] ss:$0 sm:$0xff] }
 0x229   :  { %3970 = vset.pattern.permute.xlu2 %v4029_v43 }
 0x22b   :  { %v2146_v45 = vpop.f32.mrf.mxu0  ;;  %v2159_v47 = vpop.f32.mrf.mxu1 }
 0x22c   :  { %v2170_v37 = vpop.f32.mrf.mxu2  ;;  %v2183_v9 = vpop.f32.mrf.mxu3  ;;  %v4043_v45 = vmov 14  }
 0x22d   :  { %v2171_v62 = vadd.f32 %v2170_v37, %v2158_v60  ;;  %v4040_v37 = vmov 9  }
 0x22f   :  { %v2184_v7 = vadd.f32 %v2183_v9, %v2171_v62  ;;  %v4041_v9 = vmov 13   ;;  %v2463_v62 = vperm.slane %v2439_v23, 2 }
 0x234   :  { %v2172_v15 = vpop.f32.mrf.mxu2  ;;  %v2185_v57 = vpop.f32.mrf.mxu3 }
 0x235   :  { %v2456_v57 = vperm.slane %v2439_v23, 1 }
 0x243   :  { %v2196_v8 = vpop.f32.mrf.mxu0  ;;  %v2209_v17 = vpop.f32.mrf.mxu1 }
 0x244   :  { %v2197_v11 = vadd.f32 %v2196_v8, %v2184_v7 }
 0x246   :  { %v2210_v48 = vadd.f32 %v2209_v17, %v2197_v11 }
 0x24b   :  { %v2222_v50 = vpop.f32.mrf.mxu2  ;;  %v2235_v22 = vpop.f32.mrf.mxu3 }
 0x24c   :  { %v2223_v51 = vadd.f32 %v2222_v50, %v2210_v48  ;;  %v2198_v42 = vpop.f32.mrf.mxu0  ;;  %v2211_v3 = vpop.f32.mrf.mxu1  ;;  %v2470_v48 = vperm.slane %v2439_v23, 3 }
 0x24e   :  { %v2236_v4 = vadd.f32 %v2235_v22, %v2223_v51  ;;  %v2473_v22 = vld [vmem:[%s4647_s11] sm:$0xff] }
 0x24f   :  { %v2480_v51 = vperm.slane %v2473_v22, 0  ;;  %v2494_v56 = vperm.slane %v2473_v22, 2  ;;  %v2501_v44 = vperm.slane %v2473_v22, 3  ;;  %v2508_v46 = vperm.slane %v2473_v22, 4 }
 0x250   :  { %vm2242_vm4 = vcmp.ge.f32.partialorder %v2236_v4, 0.0  ;;  %v2246_v14 = vmul.f32 0.01, %v2236_v4 }
 0x252   :  { %v2250_v26 = vsel %vm2242_vm4, %v2236_v4, %v2246_v14 }
 0x253   :  { %v2224_v0 = vpop.f32.mrf.mxu2  ;;  %v2237_v28 = vpop.f32.mrf.mxu3  ;;  %2395 = vmatmul.f32.vlgmr.msra.gmra.mxu3 %v2250_v26 }
 0x254   :  { %v2487_v0 = vperm.slane %v2473_v22, 1 }
 0x263   :  { %v2336_v13 = vpop.f32.mrf.mxu0  ;;  %v2356_v30 = vpop.f32.mrf.mxu1 }
 0x264   :  { %v2337_v63 = vadd.f32 %v3994_v6, %v2336_v13 }
 0x266   :  { %v2357_v40 = vadd.f32 %v2356_v30, %v2337_v63  ;;  %v2515_v63 = vperm.slane %v2473_v22, 5 }
 0x269   :  { %v2454_v47 = vpop.permute.xlu2 %2453 }
 0x26a   :  { %v2457_v60 = vmul.f32 %v2456_v57, %v2454_v47 }
 0x272   :  { %v2461_v18 = vpop.permute.xlu2 %2460 }
 0x273   :  { %v2464_v11 = vmul.f32 %v2463_v62, %v2461_v18 }
 0x27a   :  { %v2444_v15 = vpop.permute.xlu0 %2443 }
 0x27b   :  { %v2468_v53 = vpop.permute.xlu2 %2467 }
 0x27c   :  { %v2471_v42 = vmul.f32 %v2470_v48, %v2468_v53 }
 0x297   :  { %v2376_v39 = vpop.f32.mrf.mxu2 }
 0x298   :  { %v2377_v41 = vadd.f32 %v2376_v39, %v2357_v40 }
 0x2d6   :  { %v2396_v19 = vpop.f32.mrf.mxu3 }
 0x2d7   :  { %v2397_v20 = vadd.f32 %v2396_v19, %v2377_v41  ;;  %v2522_v41 = vperm.slane %v2473_v22, 6 }
 0x2d9   :  { %vm2399_vm5 = vcmp.ge.f32.partialorder %v2397_v20, 0.0  ;;  %v2400_v27 = vmul.f32 0.01, %v2397_v20 }
 0x2db   :  { %v2401_v55 = vsel %vm2399_vm5, %v2397_v20, %v2400_v27  ;;  %v2529_v20 = vperm.slane %v2473_v22, 7 }
 0x2dc   :  { %3687 = vmatmul.msk.f32.vlgmr.msrb.gmra.mxu0 %vm2414_vm6, %v2401_v55 }
 0x359   :  { %v2435_v38 = vpop.f32.mrf.mxu0 }
 0x35a   :  { %v2436_v33 = vadd.f32 %v3995_v32, %v2435_v38  ;;  %v2474_v32 = vld [vmem:[%s4647_s11 + $0x8] sm:$0xff] }
 0x35b   :  { %v2564_v57 = vperm.slane %v2474_v32, 4  ;;  %v2578_v48 = vperm.slane %v2474_v32, 6 }
 0x35c   :  { %2512 = vperm.xlu0 %3974, %v2436_v33   ;;  %2484 = vperm.xlu2 %3970, %v2436_v33  }
 0x35d   :  { %2477 = vperm.xlu1 %3964, %v2436_v33  }
 0x364   :  { %3979 = vset.pattern.permute.xlu0 %v4033_v12  ;;  %3972 = vset.pattern.permute.xlu2 %v4031_v54 }
 0x365   :  { %3971 = vset.pattern.permute.xlu1 %v4030_v58  ;;  %2547 = vperm.xlu0 %3979, %v2436_v33  }
 0x366   :  { %2498 = vperm.xlu2 %3972, %v2436_v33   ;;  %2491 = vperm.xlu1 %3971, %v2436_v33  }
 0x36d   :  { %3984 = vset.pattern.permute.xlu0 %v4034_v21  ;;  %v2536_v21 = vperm.slane %v2474_v32, 0 }
 0x36e   :  { %3975 = vset.pattern.permute.xlu2 %v4035_v31  ;;  %3973 = vset.pattern.permute.xlu1 %v4036_v24 }
 0x36f   :  { %2582 = vperm.xlu0 %3984, %v2436_v33   ;;  %2519 = vperm.xlu2 %3975, %v2436_v33  }
 0x370   :  { %2505 = vperm.xlu1 %3973, %v2436_v33  }
 0x377   :  { %3977 = vset.pattern.permute.xlu2 %v4037_v34  ;;  %3989 = vset.pattern.permute.xlu0 %v4036_v24  ;;  %v2543_v34 = vperm.slane %v2474_v32, 1 }
 0x378   :  { %3976 = vset.pattern.permute.xlu1 %v4038_v35  ;;  %2533 = vperm.xlu2 %3977, %v2436_v33  }
 0x379   :  { %2526 = vperm.xlu1 %3976, %v2436_v33  }
 0x380   :  { %3980 = vset.pattern.permute.xlu2 %v4039_v36 }
 0x381   :  { %3978 = vset.pattern.permute.xlu1 %v4040_v37  ;;  %2554 = vperm.xlu2 %3980, %v2436_v33  }
 0x382   :  { %2540 = vperm.xlu1 %3978, %v2436_v33  }
 0x389   :  { %3982 = vset.pattern.permute.xlu2 %v4041_v9 }
 0x38a   :  { %3981 = vset.pattern.permute.xlu1 %v4042_v25  ;;  %2568 = vperm.xlu2 %3982, %v2436_v33  }
 0x38b   :  { %2561 = vperm.xlu1 %3981, %v2436_v33  }
 0x392   :  { %3985 = vset.pattern.permute.xlu2 %v4028_v10  ;;  %v2447_v10 = vmul.f32 %v2446_v49, %v2444_v15  ;;  %v2557_v15 = vperm.slane %v2474_v32, 3 }
 0x393   :  { %3983 = vset.pattern.permute.xlu1 %v4043_v45  ;;  %v2550_v45 = vperm.slane %v2474_v32, 2 }
 0x394   :  { %2575 = vperm.xlu1 %3983, %v2436_v33   ;;  %v2451_v7 = vadd.f32 %v3996_v59, %v2447_v10 }
 0x396   :  { %v2458_v50 = vadd.f32 %v2457_v60, %v2451_v7  ;;  %v2571_v7 = vperm.slane %v2474_v32, 5 }
 0x398   :  { %v2465_v3 = vadd.f32 %v2464_v11, %v2458_v50  ;;  %v2585_v50 = vperm.slane %v2474_v32, 7 }
 0x39a   :  { %v2472_v28 = vadd.f32 %v2471_v42, %v2465_v3 }
 0x39c   :  { %3986 = vset.pattern.permute.xlu1 %v4029_v43 }
 0x3b6   :  { %v2485_v17 = vpop.permute.xlu2 %2484 }
 0x3b7   :  { %v2488_v16 = vmul.f32 %v2487_v0, %v2485_v17 }
 0x3c0   :  { %v2499_v26 = vpop.permute.xlu2 %2498 }
 0x3c1   :  { %v2502_v6 = vmul.f32 %v2501_v44, %v2499_v26 }
 0x3c9   :  { %v2520_v43 = vpop.permute.xlu2 %2519 }
 0x3ca   :  { %v2523_v33 = vmul.f32 %v2522_v41, %v2520_v43 }
 0x3ce   :  { %v2513_v39 = vpop.permute.xlu0 %2512 }
 0x3cf   :  { %v2478_v8 = vpop.permute.xlu1 %2477  ;;  %v2516_v19 = vmul.f32 %v2515_v63, %v2513_v39 }
 0x3d0   :  { %v2481_v14 = vmul.f32 %v2480_v51, %v2478_v8 }
 0x3d2   :  { %v2482_v52 = vadd.f32 %v2481_v14, %v2472_v28  ;;  %v2534_v38 = vpop.permute.xlu2 %2533 }
 0x3d3   :  { %v2537_v9 = vmul.f32 %v2536_v21, %v2534_v38 }
 0x3d4   :  { %v2489_v2 = vadd.f32 %v2488_v16, %v2482_v52 }
 0x3d7   :  { %v2548_v18 = vpop.permute.xlu0 %2547 }
 0x3d8   :  { %v2492_v4 = vpop.permute.xlu1 %2491  ;;  %v2551_v49 = vmul.f32 %v2550_v45, %v2548_v18 }
 0x3d9   :  { %v2495_v1 = vmul.f32 %v2494_v56, %v2492_v4 }
 0x3db   :  { %v2496_v5 = vadd.f32 %v2495_v1, %v2489_v2  ;;  %v2555_v23 = vpop.permute.xlu2 %2554 }
 0x3dc   :  { %v2558_v60 = vmul.f32 %v2557_v15, %v2555_v23 }
 0x3dd   :  { %v2503_v30 = vadd.f32 %v2502_v6, %v2496_v5 }
 0x3e1   :  { %v2583_v51 = vpop.permute.xlu0 %2582 }
 0x3e2   :  { %v2506_v61 = vpop.permute.xlu1 %2505  ;;  %v2586_v14 = vmul.f32 %v2585_v50, %v2583_v51 }
 0x3e3   :  { %v2509_v13 = vmul.f32 %v2508_v46, %v2506_v61 }
 0x3e4   :  { %v2569_v17 = vpop.permute.xlu2 %2568 }
 0x3e5   :  { %v2510_v40 = vadd.f32 %v2509_v13, %v2503_v30  ;;  %v2572_v22 = vmul.f32 %v2571_v7, %v2569_v17 }
 0x3e7   :  { %v2517_v55 = vadd.f32 %v2516_v19, %v2510_v40 }
 0x3e9   :  { %v2524_v24 = vadd.f32 %v2523_v33, %v2517_v55 }
 0x3eb   :  { %v2527_v27 = vpop.permute.xlu1 %2526 }
 0x3ec   :  { %v2530_v12 = vmul.f32 %v2529_v20, %v2527_v27 }
 0x3ee   :  { %v2531_v36 = vadd.f32 %v2530_v12, %v2524_v24 }
 0x3f0   :  { %v2538_v47 = vadd.f32 %v2537_v9, %v2531_v36 }
 0x3f4   :  { %v2541_v37 = vpop.permute.xlu1 %2540 }
 0x3f5   :  { %v2544_v25 = vmul.f32 %v2543_v34, %v2541_v37 }
 0x3f7   :  { %v2545_v53 = vadd.f32 %v2544_v25, %v2538_v47 }
 0x3f9   :  { %v2552_v59 = vadd.f32 %v2551_v49, %v2545_v53 }
 0x3fb   :  { %v2559_v8 = vadd.f32 %v2558_v60, %v2552_v59 }
 0x3fd   :  { %v2562_v10 = vpop.permute.xlu1 %2561 }
 0x3fe   :  { %v2565_v62 = vmul.f32 %v2564_v57, %v2562_v10 }
 0x400   :  { %v2566_v11 = vadd.f32 %v2565_v62, %v2559_v8 }
 0x402   :  { %v2573_v3 = vadd.f32 %v2572_v22, %v2566_v11 }
 0x406   :  { %v2576_v42 = vpop.permute.xlu1 %2575 }
 0x407   :  { %v2579_v4 = vmul.f32 %v2578_v48, %v2576_v42 }
 0x409   :  { %v2580_v26 = vadd.f32 %v2579_v4, %v2573_v3 }
 0x40b   :  { %v2587_v0 = vadd.f32 %v2586_v14, %v2580_v26 }
 0x40d   :  { %vm2588_vm7 = vcmp.ge.f32.partialorder %v2587_v0, 0.0  ;;  %v2589_v28 = vmul.f32 0.01, %v2587_v0 }
 0x40f   :  { %v2590_v56 = vsel %vm2588_vm7, %v2587_v0, %v2589_v28 }
 0x410   :  { %2626 = vperm.xlu0 %3989, %v2590_v56   ;;  %2605 = vperm.xlu1 %3986, %v2590_v56  }
 0x411   :  { %2595 = vperm.xlu2 %3985, %v2590_v56  }
 0x418   :  { %3988 = vset.pattern.permute.xlu1 %v4031_v54  ;;  %3993 = vset.pattern.permute.xlu0 %v4038_v35  ;;  %v2591_v54 = vld [vmem:[%s4649_s13] sm:$0xff] }
 0x419   :  { %3987 = vset.pattern.permute.xlu2 %v4030_v58  ;;  %2619 = vperm.xlu1 %3988, %v2590_v56   ;;  %v2598_v16 = vperm.slane %v2591_v54, 0  ;;  %v2608_v44 = vperm.slane %v2591_v54, 1  ;;  %v3997_v58 = vld [vmem:[%s4650_s14] ss:$0 sm:$0xff]  ;;  %v2615_v61 = vperm.slane %v2591_v54, 2  ;;  %v2629_v13 = vperm.slane %v2591_v54, 4 }
 0x41a   :  { %2612 = vperm.xlu2 %3987, %v2590_v56   ;;  %v2636_v19 = vperm.slane %v2591_v54, 5  ;;  %v2643_v55 = vperm.slane %v2591_v54, 6  ;;  %v2650_v38 = vperm.slane %v2591_v54, 7 }
 0x421   :  { %3991 = vset.pattern.permute.xlu1 %v4035_v31 }
 0x422   :  { %3990 = vset.pattern.permute.xlu2 %v4032_v29  ;;  %2640 = vperm.xlu1 %3991, %v2590_v56  }
 0x423   :  { %2633 = vperm.xlu2 %3990, %v2590_v56  }
 0x42b   :  { %3992 = vset.pattern.permute.xlu2 %v4038_v35  ;;  %v2622_v35 = vperm.slane %v2591_v54, 3 }
 0x42c   :  { %2647 = vperm.xlu2 %3992, %v2590_v56  }
 0x46b   :  { %v2596_v52 = vpop.permute.xlu2 %2595 }
 0x46c   :  { %v2599_v31 = vmul.f32 %v2598_v16, %v2596_v52 }
 0x46e   :  { %v2603_v46 = vadd.f32 %v3997_v58, %v2599_v31 }
 0x474   :  { %v2613_v1 = vpop.permute.xlu2 %2612 }
 0x475   :  { %v2616_v43 = vmul.f32 %v2615_v61, %v2613_v1 }
 0x47d   :  { %v2634_v6 = vpop.permute.xlu2 %2633 }
 0x47e   :  { %v2637_v32 = vmul.f32 %v2636_v19, %v2634_v6 }
 0x482   :  { %v2606_v2 = vpop.permute.xlu1 %2605  ;;  %v2627_v30 = vpop.permute.xlu0 %2626 }
 0x483   :  { %v2609_v29 = vmul.f32 %v2608_v44, %v2606_v2  ;;  %v2630_v20 = vmul.f32 %v2629_v13, %v2627_v30 }
 0x485   :  { %v2610_v5 = vadd.f32 %v2609_v29, %v2603_v46 }
 0x486   :  { %v2648_v33 = vpop.permute.xlu2 %2647 }
 0x487   :  { %v2617_v39 = vadd.f32 %v2616_v43, %v2610_v5  ;;  %v2651_v34 = vmul.f32 %v2650_v38, %v2648_v33 }
 0x48b   :  { %v2620_v63 = vpop.permute.xlu1 %2619 }
 0x48c   :  { %v2623_v40 = vmul.f32 %v2622_v35, %v2620_v63 }
 0x48e   :  { %v2624_v41 = vadd.f32 %v2623_v40, %v2617_v39 }
 0x490   :  { %v2631_v27 = vadd.f32 %v2630_v20, %v2624_v41 }
 0x492   :  { %v2638_v21 = vadd.f32 %v2637_v32, %v2631_v27 }
 0x494   :  { %v2641_v12 = vpop.permute.xlu1 %2640 }
 0x495   :  { %v2644_v24 = vmul.f32 %v2643_v55, %v2641_v12 }
 0x497   :  { %v2645_v36 = vadd.f32 %v2644_v24, %v2638_v21 }
 0x499   :  { %v2652_v37 = vadd.f32 %v2651_v34, %v2645_v36 }
 0x49b   :  { %vm2653_vm9 = vcmp.ge.f32.partialorder %v2652_v37, 0.0  ;;  %v2654_v9 = vmul.f32 0.01, %v2652_v37 }
 0x49d   :  { %v2655_v25 = vsel %vm2653_vm9, %v2652_v37, %v2654_v9 }
 0x49e   :  { %2657 = vst.msk [vmem:[%s4651_s15] sm:$0xff] %vm2656_vm8, %v2655_v25 }
 0x49f   :  { %2662 = vsyncpa [#allocation4], 1 }

</bundles_post_ra>
